<compile_context>
chip_gen: v6e
topology: v6e:2x2x1
jax: 0.10.0
libtpu: 0.0.40
codegen_flags: <defaults>
</compile_context>

<pallas_src>
import functools

import jax
import jax.numpy as jnp
from jax import lax
from jax.experimental import pallas as pl
from jax.experimental.pallas import tpu as pltpu

VOCAB_SIZE = 2080


def _lstm_last_kernel(x_ref, wih_ref, whh_ref, bias_ref, lens_ref, out_ref,
                      h_ref, c_ref):
    """One grid step = one block of Bblk batch rows (batch on lanes).

    x_ref    : VMEM f32[T, E, Bblk]   raw token embeddings, time-major
    wih_ref  : VMEM f32[4H, E]        input->gates weights (PyTorch layout)
    whh_ref  : VMEM f32[4H, H]        hidden->gates weights (PyTorch layout)
    bias_ref : VMEM f32[4H, Bblk]     (b_ih + b_hh) pre-broadcast over lanes
    lens_ref : VMEM i32[1, Bblk]      valid length per row
    out_ref  : VMEM f32[H, Bblk]      last valid hidden state per row
    h_ref    : VMEM f32[H, Bblk]      recurrent hidden state (scratch)
    c_ref    : VMEM f32[H, Bblk]      recurrent cell state (scratch)
    """
    T = x_ref.shape[0]
    H = out_ref.shape[0]

    wih = wih_ref[...]        # (4H, E)
    whh = whh_ref[...]        # (4H, H)
    bias = bias_ref[...]      # (4H, Bblk)
    lens = lens_ref[...]      # (1, Bblk) int32

    h_ref[...] = jnp.zeros_like(h_ref)
    c_ref[...] = jnp.zeros_like(c_ref)

    # T is a small static constant: unroll so the MXU/EUP/VPU work of adjacent
    # timesteps can co-issue in the VLIW bundles.  Only whh @ h is on the
    # serial h->h chain; the input projection is independent of h and gets
    # hoisted/pipelined by the scheduler.
    for t in range(T):
        h = h_ref[...]
        c = c_ref[...]
        xg = jnp.dot(wih, x_ref[t], preferred_element_type=jnp.float32) + bias
        gates = xg + jnp.dot(whh, h, preferred_element_type=jnp.float32)
        # Gate quarters are sublane slices at vreg boundaries (rows 0/32/64/96)
        # of a lane-dense (4H, Bblk) value -> free slices, lane-full EUP work.
        i_g = jax.nn.sigmoid(gates[0 * H:1 * H])
        f_g = jax.nn.sigmoid(gates[1 * H:2 * H])
        g_g = jnp.tanh(gates[2 * H:3 * H])
        o_g = jax.nn.sigmoid(gates[3 * H:4 * H])
        c_new = f_g * c + i_g * g_g
        h_new = o_g * jnp.tanh(c_new)
        # Freeze h/c once t >= length so the final h equals outputs[-1] of the
        # per-row LSTM; rows with length 0 stay all-zero (PyTorch semantics).
        keep = lens > t                       # (1, Bblk) -> broadcast over H
        h_ref[...] = jnp.where(keep, h_new, h)
        c_ref[...] = jnp.where(keep, c_new, c)

    out_ref[...] = h_ref[...].astype(out_ref.dtype)


@functools.partial(jax.jit, static_argnames=("block_b",))
def sentence_embedding_simple(word_ids, lengths, params, block_b=128):
    """Forward pass of SentenceEmbeddingSimple.

    word_ids : int32[B, T]   padded token ids
    lengths  : int32[B]      valid length per row
    returns  : float32[B, H] sentence embeddings
    """
    emb_table = params["embedding"].astype(jnp.float32)     # (VOCAB, E)
    w_ih = params["w_ih"].astype(jnp.float32)               # (4H, E)  PyTorch conv.
    w_hh = params["w_hh"].astype(jnp.float32)               # (4H, H)
    b_ih = params["b_ih"].astype(jnp.float32)               # (4H,)
    b_hh = params["b_hh"].astype(jnp.float32)               # (4H,)

    B, T = word_ids.shape
    G, E = w_ih.shape
    H = w_hh.shape[1]

    # Gather raw embeddings (128 B/token) and lay them out time-major with the
    # batch on the lane (minor) axis: (T, E, B).
    x = jnp.take(emb_table, word_ids.T, axis=0)              # (T, B, E)
    x = jnp.transpose(x, (0, 2, 1))                          # (T, E, B)
    lengths = lengths.astype(jnp.int32)

    # Pad the batch to a multiple of block_b (lane-full blocks).  Padded rows
    # have length 0 and zero embeddings -> output zeros, sliced off again.
    n_blocks = pl.cdiv(B, block_b)
    bp = n_blocks * block_b
    b_pad = bp - B
    if b_pad:
        x = jnp.pad(x, ((0, 0), (0, 0), (0, b_pad)))
        lengths = jnp.pad(lengths, (0, b_pad))
    lens2d = lengths.reshape(1, bp)

    # Combined bias pre-broadcast over the lane axis (64 KiB, VMEM-resident).
    bias = jnp.broadcast_to((b_ih + b_hh)[:, None], (G, block_b))

    grid_spec = pltpu.PrefetchScalarGridSpec(
        num_scalar_prefetch=0,
        grid=(n_blocks,),
        in_specs=[
            pl.BlockSpec((T, E, block_b), lambda b: (0, 0, b)),  # embeddings
            pl.BlockSpec((G, E), lambda b: (0, 0)),              # W_ih
            pl.BlockSpec((G, H), lambda b: (0, 0)),              # W_hh
            pl.BlockSpec((G, block_b), lambda b: (0, 0)),        # bias
            pl.BlockSpec((1, block_b), lambda b: (0, b)),        # lengths
        ],
        out_specs=pl.BlockSpec((H, block_b), lambda b: (0, b)),
        scratch_shapes=[
            pltpu.VMEM((H, block_b), jnp.float32),               # h state
            pltpu.VMEM((H, block_b), jnp.float32),               # c state
        ],
    )

    out_t = pl.pallas_call(
        _lstm_last_kernel,
        out_shape=jax.ShapeDtypeStruct((H, bp), jnp.float32),
        grid_spec=grid_spec,
        compiler_params=pltpu.CompilerParams(
            dimension_semantics=("parallel",),   # independent batch blocks
        ),
    )(x, w_ih, w_hh, bias, lens2d)

    # (H, bp) -> (B, H)
    return out_t.T[:B]


def _reference_forward(word_ids, lengths, params):
    """Pure-JAX reference matching the PyTorch module semantics."""
    emb_table = params["embedding"]
    w_ih, w_hh = params["w_ih"], params["w_hh"]
    b_ih, b_hh = params["b_ih"], params["b_hh"]
    H = w_hh.shape[1]
    B, T = word_ids.shape
    x = emb_table[word_ids]  # (B, T, E)

    def per_example(x_i, L):
        def step(carry, t):
            h, c = carry
            x_t = x_i[t][None, :]
            gates = (
                jnp.dot(x_t, w_ih.T, precision=lax.Precision.HIGHEST)
                + jnp.dot(h, w_hh.T, precision=lax.Precision.HIGHEST)
                + b_ih + b_hh
            )
            i_g, f_g, g_g, o_g = jnp.split(gates, 4, axis=-1)
            i_g = jax.nn.sigmoid(i_g)
            f_g = jax.nn.sigmoid(f_g)
            g_g = jnp.tanh(g_g)
            o_g = jax.nn.sigmoid(o_g)
            c_new = f_g * c + i_g * g_g
            h_new = o_g * jnp.tanh(c_new)
            m = (t < L).astype(jnp.float32)
            return (m * h_new + (1 - m) * h, m * c_new + (1 - m) * c), None

        (h, _), _ = lax.scan(
            step, (jnp.zeros((1, H)), jnp.zeros((1, H))), jnp.arange(T)
        )
        return h[0]

    return jax.vmap(per_example)(x, lengths)


if __name__ == "__main__":
    # Small shapes consistent with the module: word_embedding_size=32,
    # embed_size (lstm hidden) = 32, batch=3 (includes a length-0 row), T=8.
    B, T = 3, 8
    WORD_EMB, EMBED = 32, 32

    key = jax.random.PRNGKey(0)
    k_emb, k_wih, k_whh, k_ids = jax.random.split(key, 4)

    # Deterministic synthetic parameter init (module init_weights: normal
    # embedding, xavier-ish LSTM weights, zero biases).
    params = {
        "embedding": jax.random.normal(k_emb, (VOCAB_SIZE, WORD_EMB), jnp.float32),
        "w_ih": jax.random.normal(k_wih, (4 * EMBED, WORD_EMB), jnp.float32)
        * (2.0 / (4 * EMBED + WORD_EMB)) ** 0.5,
        "w_hh": jax.random.normal(k_whh, (4 * EMBED, EMBED), jnp.float32)
        * (2.0 / (4 * EMBED + EMBED)) ** 0.5,
        "b_ih": jnp.zeros((4 * EMBED,), jnp.float32),
        "b_hh": jnp.zeros((4 * EMBED,), jnp.float32),
    }

    word_ids = jax.random.randint(k_ids, (B, T), 0, VOCAB_SIZE, dtype=jnp.int32)
    lengths = jnp.array([5, 8, 0], dtype=jnp.int32)

    out = sentence_embedding_simple(word_ids, lengths, params)
    out = jax.block_until_ready(out)

    ref = _reference_forward(word_ids, lengths, params)
    assert out.shape == (B, EMBED)
    assert jnp.allclose(out, ref, atol=1e-4, rtol=1e-4), "mismatch vs reference"

    print("KERNEL_OK")
</pallas_src>

<mosaic_0001>
module attributes {stable_mosaic.version = 11 : i64} {
  func.func @_lstm_last_kernel(%arg0: i32, %arg1: memref<8x32x128xf32, #tpu.memory_space<vmem>>, %arg2: memref<128x32xf32, #tpu.memory_space<vmem>>, %arg3: memref<128x32xf32, #tpu.memory_space<vmem>>, %arg4: memref<128x128xf32, #tpu.memory_space<vmem>>, %arg5: memref<1x128xi32, #tpu.memory_space<vmem>>, %arg6: memref<32x128xf32, #tpu.memory_space<vmem>>, %arg7: memref<32x128xf32, #tpu.memory_space<vmem>>, %arg8: memref<32x128xf32, #tpu.memory_space<vmem>>) attributes {dimension_semantics = [#tpu.dimension_semantics<parallel>], iteration_bounds = array<i64: 1>, scalar_prefetch = 0 : i64, scratch_operands = 2 : i64, tpu.core_type = #tpu.core_type<tc>, window_params = [{transform_indices = @transform_0, window_bounds = array<i64: 8, 32, 128>}, {pipeline_mode = #tpu.pipeline_mode<synchronous>, transform_indices = @transform_1, window_bounds = array<i64: 128, 32>}, {pipeline_mode = #tpu.pipeline_mode<synchronous>, transform_indices = @transform_2, window_bounds = array<i64: 128, 32>}, {pipeline_mode = #tpu.pipeline_mode<synchronous>, transform_indices = @transform_3, window_bounds = array<i64: 128, 128>}, {transform_indices = @transform_4, window_bounds = array<i64: 1, 128>}, {transform_indices = @transform_5, window_bounds = array<i64: 32, 128>}]} {
    %c0 = arith.constant 0 : index
    %c0_0 = arith.constant 0 : index
    %0 = vector.load %arg2[%c0, %c0_0] : memref<128x32xf32, #tpu.memory_space<vmem>>, vector<128x32xf32>
    %c0_1 = arith.constant 0 : index
    %c0_2 = arith.constant 0 : index
    %1 = vector.load %arg3[%c0_1, %c0_2] : memref<128x32xf32, #tpu.memory_space<vmem>>, vector<128x32xf32>
    %c0_3 = arith.constant 0 : index
    %c0_4 = arith.constant 0 : index
    %2 = vector.load %arg4[%c0_3, %c0_4] : memref<128x128xf32, #tpu.memory_space<vmem>>, vector<128x128xf32>
    %c0_5 = arith.constant 0 : index
    %c0_6 = arith.constant 0 : index
    %3 = vector.load %arg5[%c0_5, %c0_6] : memref<1x128xi32, #tpu.memory_space<vmem>>, vector<1x128xi32>
    %cst = arith.constant 0.000000e+00 : f32
    %4 = vector.broadcast %cst : f32 to vector<32x128xf32>
    %c0_7 = arith.constant 0 : index
    %c0_8 = arith.constant 0 : index
    %5 = vector.load %arg7[%c0_7, %c0_8] : memref<32x128xf32, #tpu.memory_space<vmem>>, vector<32x128xf32>
    tpu.vector_store %arg7[%c0_7, %c0_8], %4 {strides = array<i32>} : memref<32x128xf32, #tpu.memory_space<vmem>>, vector<32x128xf32>,
    %cst_9 = arith.constant 0.000000e+00 : f32
    %6 = vector.broadcast %cst_9 : f32 to vector<32x128xf32>
    %c0_10 = arith.constant 0 : index
    %c0_11 = arith.constant 0 : index
    %7 = vector.load %arg8[%c0_10, %c0_11] : memref<32x128xf32, #tpu.memory_space<vmem>>, vector<32x128xf32>
    tpu.vector_store %arg8[%c0_10, %c0_11], %6 {strides = array<i32>} : memref<32x128xf32, #tpu.memory_space<vmem>>, vector<32x128xf32>,
    %c0_12 = arith.constant 0 : index
    %c0_13 = arith.constant 0 : index
    %8 = vector.load %arg7[%c0_12, %c0_13] : memref<32x128xf32, #tpu.memory_space<vmem>>, vector<32x128xf32>
    %c0_14 = arith.constant 0 : index
    %c0_15 = arith.constant 0 : index
    %9 = vector.load %arg8[%c0_14, %c0_15] : memref<32x128xf32, #tpu.memory_space<vmem>>, vector<32x128xf32>
    %c0_16 = arith.constant 0 : index
    %c0_17 = arith.constant 0 : index
    %c0_18 = arith.constant 0 : index
    %10 = vector.load %arg1[%c0_16, %c0_17, %c0_18] : memref<8x32x128xf32, #tpu.memory_space<vmem>>, vector<1x32x128xf32>
    %11 = vector.shape_cast %10 : vector<1x32x128xf32> to vector<32x128xf32>
    %cst_19 = arith.constant dense<0.000000e+00> : vector<128x128xf32>
    %12 = tpu.matmul %0, %11, %cst_19 {dimension_numbers = #tpu.dot_dimension_numbers<[1], [0], [0], [1], [0, 0, 1, 1], [], []>} : vector<128x32xf32>, vector<32x128xf32>, vector<128x128xf32> -> vector<128x128xf32>
    %13 = arith.addf %12, %2 : vector<128x128xf32>
    %cst_20 = arith.constant dense<0.000000e+00> : vector<128x128xf32>
    %14 = tpu.matmul %1, %8, %cst_20 {dimension_numbers = #tpu.dot_dimension_numbers<[1], [0], [0], [1], [0, 0, 1, 1], [], []>} : vector<128x32xf32>, vector<32x128xf32>, vector<128x128xf32> -> vector<128x128xf32>
    %15 = arith.addf %13, %14 : vector<128x128xf32>
    %16 = vector.extract_strided_slice %15 {offsets = [0, 0], sizes = [32, 128], strides = [1, 1]} : vector<128x128xf32> to vector<32x128xf32>
    %17 = arith.negf %16 : vector<32x128xf32>
    %18 = math.exp %17 : vector<32x128xf32>
    %cst_21 = arith.constant 1.000000e+00 : f32
    %19 = vector.broadcast %cst_21 : f32 to vector<32x128xf32>
    %20 = arith.addf %19, %18 : vector<32x128xf32>
    %21 = arith.divf %19, %20 : vector<32x128xf32>
    %22 = vector.extract_strided_slice %15 {offsets = [32, 0], sizes = [32, 128], strides = [1, 1]} : vector<128x128xf32> to vector<32x128xf32>
    %23 = arith.negf %22 : vector<32x128xf32>
    %24 = math.exp %23 : vector<32x128xf32>
    %cst_22 = arith.constant 1.000000e+00 : f32
    %25 = vector.broadcast %cst_22 : f32 to vector<32x128xf32>
    %26 = arith.addf %25, %24 : vector<32x128xf32>
    %27 = arith.divf %25, %26 : vector<32x128xf32>
    %28 = vector.extract_strided_slice %15 {offsets = [64, 0], sizes = [32, 128], strides = [1, 1]} : vector<128x128xf32> to vector<32x128xf32>
    %29 = math.tanh %28 : vector<32x128xf32>
    %30 = vector.extract_strided_slice %15 {offsets = [96, 0], sizes = [32, 128], strides = [1, 1]} : vector<128x128xf32> to vector<32x128xf32>
    %31 = arith.negf %30 : vector<32x128xf32>
    %32 = math.exp %31 : vector<32x128xf32>
    %cst_23 = arith.constant 1.000000e+00 : f32
    %33 = vector.broadcast %cst_23 : f32 to vector<32x128xf32>
    %34 = arith.addf %33, %32 : vector<32x128xf32>
    %35 = arith.divf %33, %34 : vector<32x128xf32>
    %36 = arith.mulf %27, %9 : vector<32x128xf32>
    %37 = arith.mulf %21, %29 : vector<32x128xf32>
    %38 = arith.addf %36, %37 : vector<32x128xf32>
    %39 = math.tanh %38 : vector<32x128xf32>
    %40 = arith.mulf %35, %39 : vector<32x128xf32>
    %c0_i32 = arith.constant 0 : i32
    %41 = vector.broadcast %c0_i32 : i32 to vector<1x128xi32>
    %42 = arith.cmpi sgt, %3, %41 : vector<1x128xi32>
    %43 = vector.shape_cast %42 : vector<1x128xi1> to vector<1x128xi1>
    %44 = vector.broadcast %43 : vector<1x128xi1> to vector<32x128xi1>
    %45 = arith.select %44, %40, %8 : vector<32x128xi1>, vector<32x128xf32>
    %c0_24 = arith.constant 0 : index
    %c0_25 = arith.constant 0 : index
    %46 = vector.load %arg7[%c0_24, %c0_25] : memref<32x128xf32, #tpu.memory_space<vmem>>, vector<32x128xf32>
    tpu.vector_store %arg7[%c0_24, %c0_25], %45 {strides = array<i32>} : memref<32x128xf32, #tpu.memory_space<vmem>>, vector<32x128xf32>,
    %47 = vector.shape_cast %42 : vector<1x128xi1> to vector<1x128xi1>
    %48 = vector.broadcast %47 : vector<1x128xi1> to vector<32x128xi1>
    %49 = arith.select %48, %38, %9 : vector<32x128xi1>, vector<32x128xf32>
    %c0_26 = arith.constant 0 : index
    %c0_27 = arith.constant 0 : index
    %50 = vector.load %arg8[%c0_26, %c0_27] : memref<32x128xf32, #tpu.memory_space<vmem>>, vector<32x128xf32>
    tpu.vector_store %arg8[%c0_26, %c0_27], %49 {strides = array<i32>} : memref<32x128xf32, #tpu.memory_space<vmem>>, vector<32x128xf32>,
    %c0_28 = arith.constant 0 : index
    %c0_29 = arith.constant 0 : index
    %51 = vector.load %arg7[%c0_28, %c0_29] : memref<32x128xf32, #tpu.memory_space<vmem>>, vector<32x128xf32>
    %c0_30 = arith.constant 0 : index
    %c0_31 = arith.constant 0 : index
    %52 = vector.load %arg8[%c0_30, %c0_31] : memref<32x128xf32, #tpu.memory_space<vmem>>, vector<32x128xf32>
    %c1 = arith.constant 1 : index
    %c0_32 = arith.constant 0 : index
    %c0_33 = arith.constant 0 : index
    %53 = vector.load %arg1[%c1, %c0_32, %c0_33] : memref<8x32x128xf32, #tpu.memory_space<vmem>>, vector<1x32x128xf32>
    %54 = vector.shape_cast %53 : vector<1x32x128xf32> to vector<32x128xf32>
    %cst_34 = arith.constant dense<0.000000e+00> : vector<128x128xf32>
    %55 = tpu.matmul %0, %54, %cst_34 {dimension_numbers = #tpu.dot_dimension_numbers<[1], [0], [0], [1], [0, 0, 1, 1], [], []>} : vector<128x32xf32>, vector<32x128xf32>, vector<128x128xf32> -> vector<128x128xf32>
    %56 = arith.addf %55, %2 : vector<128x128xf32>
    %cst_35 = arith.constant dense<0.000000e+00> : vector<128x128xf32>
    %57 = tpu.matmul %1, %51, %cst_35 {dimension_numbers = #tpu.dot_dimension_numbers<[1], [0], [0], [1], [0, 0, 1, 1], [], []>} : vector<128x32xf32>, vector<32x128xf32>, vector<128x128xf32> -> vector<128x128xf32>
    %58 = arith.addf %56, %57 : vector<128x128xf32>
    %59 = vector.extract_strided_slice %58 {offsets = [0, 0], sizes = [32, 128], strides = [1, 1]} : vector<128x128xf32> to vector<32x128xf32>
    %60 = arith.negf %59 : vector<32x128xf32>
    %61 = math.exp %60 : vector<32x128xf32>
    %cst_36 = arith.constant 1.000000e+00 : f32
    %62 = vector.broadcast %cst_36 : f32 to vector<32x128xf32>
    %63 = arith.addf %62, %61 : vector<32x128xf32>
    %64 = arith.divf %62, %63 : vector<32x128xf32>
    %65 = vector.extract_strided_slice %58 {offsets = [32, 0], sizes = [32, 128], strides = [1, 1]} : vector<128x128xf32> to vector<32x128xf32>
    %66 = arith.negf %65 : vector<32x128xf32>
    %67 = math.exp %66 : vector<32x128xf32>
    %cst_37 = arith.constant 1.000000e+00 : f32
    %68 = vector.broadcast %cst_37 : f32 to vector<32x128xf32>
    %69 = arith.addf %68, %67 : vector<32x128xf32>
    %70 = arith.divf %68, %69 : vector<32x128xf32>
    %71 = vector.extract_strided_slice %58 {offsets = [64, 0], sizes = [32, 128], strides = [1, 1]} : vector<128x128xf32> to vector<32x128xf32>
    %72 = math.tanh %71 : vector<32x128xf32>
    %73 = vector.extract_strided_slice %58 {offsets = [96, 0], sizes = [32, 128], strides = [1, 1]} : vector<128x128xf32> to vector<32x128xf32>
    %74 = arith.negf %73 : vector<32x128xf32>
    %75 = math.exp %74 : vector<32x128xf32>
    %cst_38 = arith.constant 1.000000e+00 : f32
    %76 = vector.broadcast %cst_38 : f32 to vector<32x128xf32>
    %77 = arith.addf %76, %75 : vector<32x128xf32>
    %78 = arith.divf %76, %77 : vector<32x128xf32>
    %79 = arith.mulf %70, %52 : vector<32x128xf32>
    %80 = arith.mulf %64, %72 : vector<32x128xf32>
    %81 = arith.addf %79, %80 : vector<32x128xf32>
    %82 = math.tanh %81 : vector<32x128xf32>
    %83 = arith.mulf %78, %82 : vector<32x128xf32>
    %c1_i32 = arith.constant 1 : i32
    %84 = vector.broadcast %c1_i32 : i32 to vector<1x128xi32>
    %85 = arith.cmpi sgt, %3, %84 : vector<1x128xi32>
    %86 = vector.shape_cast %85 : vector<1x128xi1> to vector<1x128xi1>
    %87 = vector.broadcast %86 : vector<1x128xi1> to vector<32x128xi1>
    %88 = arith.select %87, %83, %51 : vector<32x128xi1>, vector<32x128xf32>
    %c0_39 = arith.constant 0 : index
    %c0_40 = arith.constant 0 : index
    %89 = vector.load %arg7[%c0_39, %c0_40] : memref<32x128xf32, #tpu.memory_space<vmem>>, vector<32x128xf32>
    tpu.vector_store %arg7[%c0_39, %c0_40], %88 {strides = array<i32>} : memref<32x128xf32, #tpu.memory_space<vmem>>, vector<32x128xf32>,
    %90 = vector.shape_cast %85 : vector<1x128xi1> to vector<1x128xi1>
    %91 = vector.broadcast %90 : vector<1x128xi1> to vector<32x128xi1>
    %92 = arith.select %91, %81, %52 : vector<32x128xi1>, vector<32x128xf32>
    %c0_41 = arith.constant 0 : index
    %c0_42 = arith.constant 0 : index
    %93 = vector.load %arg8[%c0_41, %c0_42] : memref<32x128xf32, #tpu.memory_space<vmem>>, vector<32x128xf32>
    tpu.vector_store %arg8[%c0_41, %c0_42], %92 {strides = array<i32>} : memref<32x128xf32, #tpu.memory_space<vmem>>, vector<32x128xf32>,
    %c0_43 = arith.constant 0 : index
    %c0_44 = arith.constant 0 : index
    %94 = vector.load %arg7[%c0_43, %c0_44] : memref<32x128xf32, #tpu.memory_space<vmem>>, vector<32x128xf32>
    %c0_45 = arith.constant 0 : index
    %c0_46 = arith.constant 0 : index
    %95 = vector.load %arg8[%c0_45, %c0_46] : memref<32x128xf32, #tpu.memory_space<vmem>>, vector<32x128xf32>
    %c2 = arith.constant 2 : index
    %c0_47 = arith.constant 0 : index
    %c0_48 = arith.constant 0 : index
    %96 = vector.load %arg1[%c2, %c0_47, %c0_48] : memref<8x32x128xf32, #tpu.memory_space<vmem>>, vector<1x32x128xf32>
    %97 = vector.shape_cast %96 : vector<1x32x128xf32> to vector<32x128xf32>
    %cst_49 = arith.constant dense<0.000000e+00> : vector<128x128xf32>
    %98 = tpu.matmul %0, %97, %cst_49 {dimension_numbers = #tpu.dot_dimension_numbers<[1], [0], [0], [1], [0, 0, 1, 1], [], []>} : vector<128x32xf32>, vector<32x128xf32>, vector<128x128xf32> -> vector<128x128xf32>
    %99 = arith.addf %98, %2 : vector<128x128xf32>
    %cst_50 = arith.constant dense<0.000000e+00> : vector<128x128xf32>
    %100 = tpu.matmul %1, %94, %cst_50 {dimension_numbers = #tpu.dot_dimension_numbers<[1], [0], [0], [1], [0, 0, 1, 1], [], []>} : vector<128x32xf32>, vector<32x128xf32>, vector<128x128xf32> -> vector<128x128xf32>
    %101 = arith.addf %99, %100 : vector<128x128xf32>
    %102 = vector.extract_strided_slice %101 {offsets = [0, 0], sizes = [32, 128], strides = [1, 1]} : vector<128x128xf32> to vector<32x128xf32>
    %103 = arith.negf %102 : vector<32x128xf32>
    %104 = math.exp %103 : vector<32x128xf32>
    %cst_51 = arith.constant 1.000000e+00 : f32
    %105 = vector.broadcast %cst_51 : f32 to vector<32x128xf32>
    %106 = arith.addf %105, %104 : vector<32x128xf32>
    %107 = arith.divf %105, %106 : vector<32x128xf32>
    %108 = vector.extract_strided_slice %101 {offsets = [32, 0], sizes = [32, 128], strides = [1, 1]} : vector<128x128xf32> to vector<32x128xf32>
    %109 = arith.negf %108 : vector<32x128xf32>
    %110 = math.exp %109 : vector<32x128xf32>
    %cst_52 = arith.constant 1.000000e+00 : f32
    %111 = vector.broadcast %cst_52 : f32 to vector<32x128xf32>
    %112 = arith.addf %111, %110 : vector<32x128xf32>
    %113 = arith.divf %111, %112 : vector<32x128xf32>
    %114 = vector.extract_strided_slice %101 {offsets = [64, 0], sizes = [32, 128], strides = [1, 1]} : vector<128x128xf32> to vector<32x128xf32>
    %115 = math.tanh %114 : vector<32x128xf32>
    %116 = vector.extract_strided_slice %101 {offsets = [96, 0], sizes = [32, 128], strides = [1, 1]} : vector<128x128xf32> to vector<32x128xf32>
    %117 = arith.negf %116 : vector<32x128xf32>
    %118 = math.exp %117 : vector<32x128xf32>
    %cst_53 = arith.constant 1.000000e+00 : f32
    %119 = vector.broadcast %cst_53 : f32 to vector<32x128xf32>
    %120 = arith.addf %119, %118 : vector<32x128xf32>
    %121 = arith.divf %119, %120 : vector<32x128xf32>
    %122 = arith.mulf %113, %95 : vector<32x128xf32>
    %123 = arith.mulf %107, %115 : vector<32x128xf32>
    %124 = arith.addf %122, %123 : vector<32x128xf32>
    %125 = math.tanh %124 : vector<32x128xf32>
    %126 = arith.mulf %121, %125 : vector<32x128xf32>
    %c2_i32 = arith.constant 2 : i32
    %127 = vector.broadcast %c2_i32 : i32 to vector<1x128xi32>
    %128 = arith.cmpi sgt, %3, %127 : vector<1x128xi32>
    %129 = vector.shape_cast %128 : vector<1x128xi1> to vector<1x128xi1>
    %130 = vector.broadcast %129 : vector<1x128xi1> to vector<32x128xi1>
    %131 = arith.select %130, %126, %94 : vector<32x128xi1>, vector<32x128xf32>
    %c0_54 = arith.constant 0 : index
    %c0_55 = arith.constant 0 : index
    %132 = vector.load %arg7[%c0_54, %c0_55] : memref<32x128xf32, #tpu.memory_space<vmem>>, vector<32x128xf32>
    tpu.vector_store %arg7[%c0_54, %c0_55], %131 {strides = array<i32>} : memref<32x128xf32, #tpu.memory_space<vmem>>, vector<32x128xf32>,
    %133 = vector.shape_cast %128 : vector<1x128xi1> to vector<1x128xi1>
    %134 = vector.broadcast %133 : vector<1x128xi1> to vector<32x128xi1>
    %135 = arith.select %134, %124, %95 : vector<32x128xi1>, vector<32x128xf32>
    %c0_56 = arith.constant 0 : index
    %c0_57 = arith.constant 0 : index
    %136 = vector.load %arg8[%c0_56, %c0_57] : memref<32x128xf32, #tpu.memory_space<vmem>>, vector<32x128xf32>
    tpu.vector_store %arg8[%c0_56, %c0_57], %135 {strides = array<i32>} : memref<32x128xf32, #tpu.memory_space<vmem>>, vector<32x128xf32>,
    %c0_58 = arith.constant 0 : index
    %c0_59 = arith.constant 0 : index
    %137 = vector.load %arg7[%c0_58, %c0_59] : memref<32x128xf32, #tpu.memory_space<vmem>>, vector<32x128xf32>
    %c0_60 = arith.constant 0 : index
    %c0_61 = arith.constant 0 : index
    %138 = vector.load %arg8[%c0_60, %c0_61] : memref<32x128xf32, #tpu.memory_space<vmem>>, vector<32x128xf32>
    %c3 = arith.constant 3 : index
    %c0_62 = arith.constant 0 : index
    %c0_63 = arith.constant 0 : index
    %139 = vector.load %arg1[%c3, %c0_62, %c0_63] : memref<8x32x128xf32, #tpu.memory_space<vmem>>, vector<1x32x128xf32>
    %140 = vector.shape_cast %139 : vector<1x32x128xf32> to vector<32x128xf32>
    %cst_64 = arith.constant dense<0.000000e+00> : vector<128x128xf32>
    %141 = tpu.matmul %0, %140, %cst_64 {dimension_numbers = #tpu.dot_dimension_numbers<[1], [0], [0], [1], [0, 0, 1, 1], [], []>} : vector<128x32xf32>, vector<32x128xf32>, vector<128x128xf32> -> vector<128x128xf32>
    %142 = arith.addf %141, %2 : vector<128x128xf32>
    %cst_65 = arith.constant dense<0.000000e+00> : vector<128x128xf32>
    %143 = tpu.matmul %1, %137, %cst_65 {dimension_numbers = #tpu.dot_dimension_numbers<[1], [0], [0], [1], [0, 0, 1, 1], [], []>} : vector<128x32xf32>, vector<32x128xf32>, vector<128x128xf32> -> vector<128x128xf32>
    %144 = arith.addf %142, %143 : vector<128x128xf32>
    %145 = vector.extract_strided_slice %144 {offsets = [0, 0], sizes = [32, 128], strides = [1, 1]} : vector<128x128xf32> to vector<32x128xf32>
    %146 = arith.negf %145 : vector<32x128xf32>
    %147 = math.exp %146 : vector<32x128xf32>
    %cst_66 = arith.constant 1.000000e+00 : f32
    %148 = vector.broadcast %cst_66 : f32 to vector<32x128xf32>
    %149 = arith.addf %148, %147 : vector<32x128xf32>
    %150 = arith.divf %148, %149 : vector<32x128xf32>
    %151 = vector.extract_strided_slice %144 {offsets = [32, 0], sizes = [32, 128], strides = [1, 1]} : vector<128x128xf32> to vector<32x128xf32>
    %152 = arith.negf %151 : vector<32x128xf32>
    %153 = math.exp %152 : vector<32x128xf32>
    %cst_67 = arith.constant 1.000000e+00 : f32
    %154 = vector.broadcast %cst_67 : f32 to vector<32x128xf32>
    %155 = arith.addf %154, %153 : vector<32x128xf32>
    %156 = arith.divf %154, %155 : vector<32x128xf32>
    %157 = vector.extract_strided_slice %144 {offsets = [64, 0], sizes = [32, 128], strides = [1, 1]} : vector<128x128xf32> to vector<32x128xf32>
    %158 = math.tanh %157 : vector<32x128xf32>
    %159 = vector.extract_strided_slice %144 {offsets = [96, 0], sizes = [32, 128], strides = [1, 1]} : vector<128x128xf32> to vector<32x128xf32>
    %160 = arith.negf %159 : vector<32x128xf32>
    %161 = math.exp %160 : vector<32x128xf32>
    %cst_68 = arith.constant 1.000000e+00 : f32
    %162 = vector.broadcast %cst_68 : f32 to vector<32x128xf32>
    %163 = arith.addf %162, %161 : vector<32x128xf32>
    %164 = arith.divf %162, %163 : vector<32x128xf32>
    %165 = arith.mulf %156, %138 : vector<32x128xf32>
    %166 = arith.mulf %150, %158 : vector<32x128xf32>
    %167 = arith.addf %165, %166 : vector<32x128xf32>
    %168 = math.tanh %167 : vector<32x128xf32>
    %169 = arith.mulf %164, %168 : vector<32x128xf32>
    %c3_i32 = arith.constant 3 : i32
    %170 = vector.broadcast %c3_i32 : i32 to vector<1x128xi32>
    %171 = arith.cmpi sgt, %3, %170 : vector<1x128xi32>
    %172 = vector.shape_cast %171 : vector<1x128xi1> to vector<1x128xi1>
    %173 = vector.broadcast %172 : vector<1x128xi1> to vector<32x128xi1>
    %174 = arith.select %173, %169, %137 : vector<32x128xi1>, vector<32x128xf32>
    %c0_69 = arith.constant 0 : index
    %c0_70 = arith.constant 0 : index
    %175 = vector.load %arg7[%c0_69, %c0_70] : memref<32x128xf32, #tpu.memory_space<vmem>>, vector<32x128xf32>
    tpu.vector_store %arg7[%c0_69, %c0_70], %174 {strides = array<i32>} : memref<32x128xf32, #tpu.memory_space<vmem>>, vector<32x128xf32>,
    %176 = vector.shape_cast %171 : vector<1x128xi1> to vector<1x128xi1>
    %177 = vector.broadcast %176 : vector<1x128xi1> to vector<32x128xi1>
    %178 = arith.select %177, %167, %138 : vector<32x128xi1>, vector<32x128xf32>
    %c0_71 = arith.constant 0 : index
    %c0_72 = arith.constant 0 : index
    %179 = vector.load %arg8[%c0_71, %c0_72] : memref<32x128xf32, #tpu.memory_space<vmem>>, vector<32x128xf32>
    tpu.vector_store %arg8[%c0_71, %c0_72], %178 {strides = array<i32>} : memref<32x128xf32, #tpu.memory_space<vmem>>, vector<32x128xf32>,
    %c0_73 = arith.constant 0 : index
    %c0_74 = arith.constant 0 : index
    %180 = vector.load %arg7[%c0_73, %c0_74] : memref<32x128xf32, #tpu.memory_space<vmem>>, vector<32x128xf32>
    %c0_75 = arith.constant 0 : index
    %c0_76 = arith.constant 0 : index
    %181 = vector.load %arg8[%c0_75, %c0_76] : memref<32x128xf32, #tpu.memory_space<vmem>>, vector<32x128xf32>
    %c4 = arith.constant 4 : index
    %c0_77 = arith.constant 0 : index
    %c0_78 = arith.constant 0 : index
    %182 = vector.load %arg1[%c4, %c0_77, %c0_78] : memref<8x32x128xf32, #tpu.memory_space<vmem>>, vector<1x32x128xf32>
    %183 = vector.shape_cast %182 : vector<1x32x128xf32> to vector<32x128xf32>
    %cst_79 = arith.constant dense<0.000000e+00> : vector<128x128xf32>
    %184 = tpu.matmul %0, %183, %cst_79 {dimension_numbers = #tpu.dot_dimension_numbers<[1], [0], [0], [1], [0, 0, 1, 1], [], []>} : vector<128x32xf32>, vector<32x128xf32>, vector<128x128xf32> -> vector<128x128xf32>
    %185 = arith.addf %184, %2 : vector<128x128xf32>
    %cst_80 = arith.constant dense<0.000000e+00> : vector<128x128xf32>
    %186 = tpu.matmul %1, %180, %cst_80 {dimension_numbers = #tpu.dot_dimension_numbers<[1], [0], [0], [1], [0, 0, 1, 1], [], []>} : vector<128x32xf32>, vector<32x128xf32>, vector<128x128xf32> -> vector<128x128xf32>
    %187 = arith.addf %185, %186 : vector<128x128xf32>
    %188 = vector.extract_strided_slice %187 {offsets = [0, 0], sizes = [32, 128], strides = [1, 1]} : vector<128x128xf32> to vector<32x128xf32>
    %189 = arith.negf %188 : vector<32x128xf32>
    %190 = math.exp %189 : vector<32x128xf32>
    %cst_81 = arith.constant 1.000000e+00 : f32
    %191 = vector.broadcast %cst_81 : f32 to vector<32x128xf32>
    %192 = arith.addf %191, %190 : vector<32x128xf32>
    %193 = arith.divf %191, %192 : vector<32x128xf32>
    %194 = vector.extract_strided_slice %187 {offsets = [32, 0], sizes = [32, 128], strides = [1, 1]} : vector<128x128xf32> to vector<32x128xf32>
    %195 = arith.negf %194 : vector<32x128xf32>
    %196 = math.exp %195 : vector<32x128xf32>
    %cst_82 = arith.constant 1.000000e+00 : f32
    %197 = vector.broadcast %cst_82 : f32 to vector<32x128xf32>
    %198 = arith.addf %197, %196 : vector<32x128xf32>
    %199 = arith.divf %197, %198 : vector<32x128xf32>
    %200 = vector.extract_strided_slice %187 {offsets = [64, 0], sizes = [32, 128], strides = [1, 1]} : vector<128x128xf32> to vector<32x128xf32>
    %201 = math.tanh %200 : vector<32x128xf32>
    %202 = vector.extract_strided_slice %187 {offsets = [96, 0], sizes = [32, 128], strides = [1, 1]} : vector<128x128xf32> to vector<32x128xf32>
    %203 = arith.negf %202 : vector<32x128xf32>
    %204 = math.exp %203 : vector<32x128xf32>
    %cst_83 = arith.constant 1.000000e+00 : f32
    %205 = vector.broadcast %cst_83 : f32 to vector<32x128xf32>
    %206 = arith.addf %205, %204 : vector<32x128xf32>
    %207 = arith.divf %205, %206 : vector<32x128xf32>
    %208 = arith.mulf %199, %181 : vector<32x128xf32>
    %209 = arith.mulf %193, %201 : vector<32x128xf32>
    %210 = arith.addf %208, %209 : vector<32x128xf32>
    %211 = math.tanh %210 : vector<32x128xf32>
    %212 = arith.mulf %207, %211 : vector<32x128xf32>
    %c4_i32 = arith.constant 4 : i32
    %213 = vector.broadcast %c4_i32 : i32 to vector<1x128xi32>
    %214 = arith.cmpi sgt, %3, %213 : vector<1x128xi32>
    %215 = vector.shape_cast %214 : vector<1x128xi1> to vector<1x128xi1>
    %216 = vector.broadcast %215 : vector<1x128xi1> to vector<32x128xi1>
    %217 = arith.select %216, %212, %180 : vector<32x128xi1>, vector<32x128xf32>
    %c0_84 = arith.constant 0 : index
    %c0_85 = arith.constant 0 : index
    %218 = vector.load %arg7[%c0_84, %c0_85] : memref<32x128xf32, #tpu.memory_space<vmem>>, vector<32x128xf32>
    tpu.vector_store %arg7[%c0_84, %c0_85], %217 {strides = array<i32>} : memref<32x128xf32, #tpu.memory_space<vmem>>, vector<32x128xf32>,
    %219 = vector.shape_cast %214 : vector<1x128xi1> to vector<1x128xi1>
    %220 = vector.broadcast %219 : vector<1x128xi1> to vector<32x128xi1>
    %221 = arith.select %220, %210, %181 : vector<32x128xi1>, vector<32x128xf32>
    %c0_86 = arith.constant 0 : index
    %c0_87 = arith.constant 0 : index
    %222 = vector.load %arg8[%c0_86, %c0_87] : memref<32x128xf32, #tpu.memory_space<vmem>>, vector<32x128xf32>
    tpu.vector_store %arg8[%c0_86, %c0_87], %221 {strides = array<i32>} : memref<32x128xf32, #tpu.memory_space<vmem>>, vector<32x128xf32>,
    %c0_88 = arith.constant 0 : index
    %c0_89 = arith.constant 0 : index
    %223 = vector.load %arg7[%c0_88, %c0_89] : memref<32x128xf32, #tpu.memory_space<vmem>>, vector<32x128xf32>
    %c0_90 = arith.constant 0 : index
    %c0_91 = arith.constant 0 : index
    %224 = vector.load %arg8[%c0_90, %c0_91] : memref<32x128xf32, #tpu.memory_space<vmem>>, vector<32x128xf32>
    %c5 = arith.constant 5 : index
    %c0_92 = arith.constant 0 : index
    %c0_93 = arith.constant 0 : index
    %225 = vector.load %arg1[%c5, %c0_92, %c0_93] : memref<8x32x128xf32, #tpu.memory_space<vmem>>, vector<1x32x128xf32>
    %226 = vector.shape_cast %225 : vector<1x32x128xf32> to vector<32x128xf32>
    %cst_94 = arith.constant dense<0.000000e+00> : vector<128x128xf32>
    %227 = tpu.matmul %0, %226, %cst_94 {dimension_numbers = #tpu.dot_dimension_numbers<[1], [0], [0], [1], [0, 0, 1, 1], [], []>} : vector<128x32xf32>, vector<32x128xf32>, vector<128x128xf32> -> vector<128x128xf32>
    %228 = arith.addf %227, %2 : vector<128x128xf32>
    %cst_95 = arith.constant dense<0.000000e+00> : vector<128x128xf32>
    %229 = tpu.matmul %1, %223, %cst_95 {dimension_numbers = #tpu.dot_dimension_numbers<[1], [0], [0], [1], [0, 0, 1, 1], [], []>} : vector<128x32xf32>, vector<32x128xf32>, vector<128x128xf32> -> vector<128x128xf32>
    %230 = arith.addf %228, %229 : vector<128x128xf32>
    %231 = vector.extract_strided_slice %230 {offsets = [0, 0], sizes = [32, 128], strides = [1, 1]} : vector<128x128xf32> to vector<32x128xf32>
    %232 = arith.negf %231 : vector<32x128xf32>
    %233 = math.exp %232 : vector<32x128xf32>
    %cst_96 = arith.constant 1.000000e+00 : f32
    %234 = vector.broadcast %cst_96 : f32 to vector<32x128xf32>
    %235 = arith.addf %234, %233 : vector<32x128xf32>
    %236 = arith.divf %234, %235 : vector<32x128xf32>
    %237 = vector.extract_strided_slice %230 {offsets = [32, 0], sizes = [32, 128], strides = [1, 1]} : vector<128x128xf32> to vector<32x128xf32>
    %238 = arith.negf %237 : vector<32x128xf32>
    %239 = math.exp %238 : vector<32x128xf32>
    %cst_97 = arith.constant 1.000000e+00 : f32
    %240 = vector.broadcast %cst_97 : f32 to vector<32x128xf32>
    %241 = arith.addf %240, %239 : vector<32x128xf32>
    %242 = arith.divf %240, %241 : vector<32x128xf32>
    %243 = vector.extract_strided_slice %230 {offsets = [64, 0], sizes = [32, 128], strides = [1, 1]} : vector<128x128xf32> to vector<32x128xf32>
    %244 = math.tanh %243 : vector<32x128xf32>
    %245 = vector.extract_strided_slice %230 {offsets = [96, 0], sizes = [32, 128], strides = [1, 1]} : vector<128x128xf32> to vector<32x128xf32>
    %246 = arith.negf %245 : vector<32x128xf32>
    %247 = math.exp %246 : vector<32x128xf32>
    %cst_98 = arith.constant 1.000000e+00 : f32
    %248 = vector.broadcast %cst_98 : f32 to vector<32x128xf32>
    %249 = arith.addf %248, %247 : vector<32x128xf32>
    %250 = arith.divf %248, %249 : vector<32x128xf32>
    %251 = arith.mulf %242, %224 : vector<32x128xf32>
    %252 = arith.mulf %236, %244 : vector<32x128xf32>
    %253 = arith.addf %251, %252 : vector<32x128xf32>
    %254 = math.tanh %253 : vector<32x128xf32>
    %255 = arith.mulf %250, %254 : vector<32x128xf32>
    %c5_i32 = arith.constant 5 : i32
    %256 = vector.broadcast %c5_i32 : i32 to vector<1x128xi32>
    %257 = arith.cmpi sgt, %3, %256 : vector<1x128xi32>
    %258 = vector.shape_cast %257 : vector<1x128xi1> to vector<1x128xi1>
    %259 = vector.broadcast %258 : vector<1x128xi1> to vector<32x128xi1>
    %260 = arith.select %259, %255, %223 : vector<32x128xi1>, vector<32x128xf32>
    %c0_99 = arith.constant 0 : index
    %c0_100 = arith.constant 0 : index
    %261 = vector.load %arg7[%c0_99, %c0_100] : memref<32x128xf32, #tpu.memory_space<vmem>>, vector<32x128xf32>
    tpu.vector_store %arg7[%c0_99, %c0_100], %260 {strides = array<i32>} : memref<32x128xf32, #tpu.memory_space<vmem>>, vector<32x128xf32>,
    %262 = vector.shape_cast %257 : vector<1x128xi1> to vector<1x128xi1>
    %263 = vector.broadcast %262 : vector<1x128xi1> to vector<32x128xi1>
    %264 = arith.select %263, %253, %224 : vector<32x128xi1>, vector<32x128xf32>
    %c0_101 = arith.constant 0 : index
    %c0_102 = arith.constant 0 : index
    %265 = vector.load %arg8[%c0_101, %c0_102] : memref<32x128xf32, #tpu.memory_space<vmem>>, vector<32x128xf32>
    tpu.vector_store %arg8[%c0_101, %c0_102], %264 {strides = array<i32>} : memref<32x128xf32, #tpu.memory_space<vmem>>, vector<32x128xf32>,
    %c0_103 = arith.constant 0 : index
    %c0_104 = arith.constant 0 : index
    %266 = vector.load %arg7[%c0_103, %c0_104] : memref<32x128xf32, #tpu.memory_space<vmem>>, vector<32x128xf32>
    %c0_105 = arith.constant 0 : index
    %c0_106 = arith.constant 0 : index
    %267 = vector.load %arg8[%c0_105, %c0_106] : memref<32x128xf32, #tpu.memory_space<vmem>>, vector<32x128xf32>
    %c6 = arith.constant 6 : index
    %c0_107 = arith.constant 0 : index
    %c0_108 = arith.constant 0 : index
    %268 = vector.load %arg1[%c6, %c0_107, %c0_108] : memref<8x32x128xf32, #tpu.memory_space<vmem>>, vector<1x32x128xf32>
    %269 = vector.shape_cast %268 : vector<1x32x128xf32> to vector<32x128xf32>
    %cst_109 = arith.constant dense<0.000000e+00> : vector<128x128xf32>
    %270 = tpu.matmul %0, %269, %cst_109 {dimension_numbers = #tpu.dot_dimension_numbers<[1], [0], [0], [1], [0, 0, 1, 1], [], []>} : vector<128x32xf32>, vector<32x128xf32>, vector<128x128xf32> -> vector<128x128xf32>
    %271 = arith.addf %270, %2 : vector<128x128xf32>
    %cst_110 = arith.constant dense<0.000000e+00> : vector<128x128xf32>
    %272 = tpu.matmul %1, %266, %cst_110 {dimension_numbers = #tpu.dot_dimension_numbers<[1], [0], [0], [1], [0, 0, 1, 1], [], []>} : vector<128x32xf32>, vector<32x128xf32>, vector<128x128xf32> -> vector<128x128xf32>
    %273 = arith.addf %271, %272 : vector<128x128xf32>
    %274 = vector.extract_strided_slice %273 {offsets = [0, 0], sizes = [32, 128], strides = [1, 1]} : vector<128x128xf32> to vector<32x128xf32>
    %275 = arith.negf %274 : vector<32x128xf32>
    %276 = math.exp %275 : vector<32x128xf32>
    %cst_111 = arith.constant 1.000000e+00 : f32
    %277 = vector.broadcast %cst_111 : f32 to vector<32x128xf32>
    %278 = arith.addf %277, %276 : vector<32x128xf32>
    %279 = arith.divf %277, %278 : vector<32x128xf32>
    %280 = vector.extract_strided_slice %273 {offsets = [32, 0], sizes = [32, 128], strides = [1, 1]} : vector<128x128xf32> to vector<32x128xf32>
    %281 = arith.negf %280 : vector<32x128xf32>
    %282 = math.exp %281 : vector<32x128xf32>
    %cst_112 = arith.constant 1.000000e+00 : f32
    %283 = vector.broadcast %cst_112 : f32 to vector<32x128xf32>
    %284 = arith.addf %283, %282 : vector<32x128xf32>
    %285 = arith.divf %283, %284 : vector<32x128xf32>
    %286 = vector.extract_strided_slice %273 {offsets = [64, 0], sizes = [32, 128], strides = [1, 1]} : vector<128x128xf32> to vector<32x128xf32>
    %287 = math.tanh %286 : vector<32x128xf32>
    %288 = vector.extract_strided_slice %273 {offsets = [96, 0], sizes = [32, 128], strides = [1, 1]} : vector<128x128xf32> to vector<32x128xf32>
    %289 = arith.negf %288 : vector<32x128xf32>
    %290 = math.exp %289 : vector<32x128xf32>
    %cst_113 = arith.constant 1.000000e+00 : f32
    %291 = vector.broadcast %cst_113 : f32 to vector<32x128xf32>
    %292 = arith.addf %291, %290 : vector<32x128xf32>
    %293 = arith.divf %291, %292 : vector<32x128xf32>
    %294 = arith.mulf %285, %267 : vector<32x128xf32>
    %295 = arith.mulf %279, %287 : vector<32x128xf32>
    %296 = arith.addf %294, %295 : vector<32x128xf32>
    %297 = math.tanh %296 : vector<32x128xf32>
    %298 = arith.mulf %293, %297 : vector<32x128xf32>
    %c6_i32 = arith.constant 6 : i32
    %299 = vector.broadcast %c6_i32 : i32 to vector<1x128xi32>
    %300 = arith.cmpi sgt, %3, %299 : vector<1x128xi32>
    %301 = vector.shape_cast %300 : vector<1x128xi1> to vector<1x128xi1>
    %302 = vector.broadcast %301 : vector<1x128xi1> to vector<32x128xi1>
    %303 = arith.select %302, %298, %266 : vector<32x128xi1>, vector<32x128xf32>
    %c0_114 = arith.constant 0 : index
    %c0_115 = arith.constant 0 : index
    %304 = vector.load %arg7[%c0_114, %c0_115] : memref<32x128xf32, #tpu.memory_space<vmem>>, vector<32x128xf32>
    tpu.vector_store %arg7[%c0_114, %c0_115], %303 {strides = array<i32>} : memref<32x128xf32, #tpu.memory_space<vmem>>, vector<32x128xf32>,
    %305 = vector.shape_cast %300 : vector<1x128xi1> to vector<1x128xi1>
    %306 = vector.broadcast %305 : vector<1x128xi1> to vector<32x128xi1>
    %307 = arith.select %306, %296, %267 : vector<32x128xi1>, vector<32x128xf32>
    %c0_116 = arith.constant 0 : index
    %c0_117 = arith.constant 0 : index
    %308 = vector.load %arg8[%c0_116, %c0_117] : memref<32x128xf32, #tpu.memory_space<vmem>>, vector<32x128xf32>
    tpu.vector_store %arg8[%c0_116, %c0_117], %307 {strides = array<i32>} : memref<32x128xf32, #tpu.memory_space<vmem>>, vector<32x128xf32>,
    %c0_118 = arith.constant 0 : index
    %c0_119 = arith.constant 0 : index
    %309 = vector.load %arg7[%c0_118, %c0_119] : memref<32x128xf32, #tpu.memory_space<vmem>>, vector<32x128xf32>
    %c0_120 = arith.constant 0 : index
    %c0_121 = arith.constant 0 : index
    %310 = vector.load %arg8[%c0_120, %c0_121] : memref<32x128xf32, #tpu.memory_space<vmem>>, vector<32x128xf32>
    %c7 = arith.constant 7 : index
    %c0_122 = arith.constant 0 : index
    %c0_123 = arith.constant 0 : index
    %311 = vector.load %arg1[%c7, %c0_122, %c0_123] : memref<8x32x128xf32, #tpu.memory_space<vmem>>, vector<1x32x128xf32>
    %312 = vector.shape_cast %311 : vector<1x32x128xf32> to vector<32x128xf32>
    %cst_124 = arith.constant dense<0.000000e+00> : vector<128x128xf32>
    %313 = tpu.matmul %0, %312, %cst_124 {dimension_numbers = #tpu.dot_dimension_numbers<[1], [0], [0], [1], [0, 0, 1, 1], [], []>} : vector<128x32xf32>, vector<32x128xf32>, vector<128x128xf32> -> vector<128x128xf32>
    %314 = arith.addf %313, %2 : vector<128x128xf32>
    %cst_125 = arith.constant dense<0.000000e+00> : vector<128x128xf32>
    %315 = tpu.matmul %1, %309, %cst_125 {dimension_numbers = #tpu.dot_dimension_numbers<[1], [0], [0], [1], [0, 0, 1, 1], [], []>} : vector<128x32xf32>, vector<32x128xf32>, vector<128x128xf32> -> vector<128x128xf32>
    %316 = arith.addf %314, %315 : vector<128x128xf32>
    %317 = vector.extract_strided_slice %316 {offsets = [0, 0], sizes = [32, 128], strides = [1, 1]} : vector<128x128xf32> to vector<32x128xf32>
    %318 = arith.negf %317 : vector<32x128xf32>
    %319 = math.exp %318 : vector<32x128xf32>
    %cst_126 = arith.constant 1.000000e+00 : f32
    %320 = vector.broadcast %cst_126 : f32 to vector<32x128xf32>
    %321 = arith.addf %320, %319 : vector<32x128xf32>
    %322 = arith.divf %320, %321 : vector<32x128xf32>
    %323 = vector.extract_strided_slice %316 {offsets = [32, 0], sizes = [32, 128], strides = [1, 1]} : vector<128x128xf32> to vector<32x128xf32>
    %324 = arith.negf %323 : vector<32x128xf32>
    %325 = math.exp %324 : vector<32x128xf32>
    %cst_127 = arith.constant 1.000000e+00 : f32
    %326 = vector.broadcast %cst_127 : f32 to vector<32x128xf32>
    %327 = arith.addf %326, %325 : vector<32x128xf32>
    %328 = arith.divf %326, %327 : vector<32x128xf32>
    %329 = vector.extract_strided_slice %316 {offsets = [64, 0], sizes = [32, 128], strides = [1, 1]} : vector<128x128xf32> to vector<32x128xf32>
    %330 = math.tanh %329 : vector<32x128xf32>
    %331 = vector.extract_strided_slice %316 {offsets = [96, 0], sizes = [32, 128], strides = [1, 1]} : vector<128x128xf32> to vector<32x128xf32>
    %332 = arith.negf %331 : vector<32x128xf32>
    %333 = math.exp %332 : vector<32x128xf32>
    %cst_128 = arith.constant 1.000000e+00 : f32
    %334 = vector.broadcast %cst_128 : f32 to vector<32x128xf32>
    %335 = arith.addf %334, %333 : vector<32x128xf32>
    %336 = arith.divf %334, %335 : vector<32x128xf32>
    %337 = arith.mulf %328, %310 : vector<32x128xf32>
    %338 = arith.mulf %322, %330 : vector<32x128xf32>
    %339 = arith.addf %337, %338 : vector<32x128xf32>
    %340 = math.tanh %339 : vector<32x128xf32>
    %341 = arith.mulf %336, %340 : vector<32x128xf32>
    %c7_i32 = arith.constant 7 : i32
    %342 = vector.broadcast %c7_i32 : i32 to vector<1x128xi32>
    %343 = arith.cmpi sgt, %3, %342 : vector<1x128xi32>
    %344 = vector.shape_cast %343 : vector<1x128xi1> to vector<1x128xi1>
    %345 = vector.broadcast %344 : vector<1x128xi1> to vector<32x128xi1>
    %346 = arith.select %345, %341, %309 : vector<32x128xi1>, vector<32x128xf32>
    %c0_129 = arith.constant 0 : index
    %c0_130 = arith.constant 0 : index
    %347 = vector.load %arg7[%c0_129, %c0_130] : memref<32x128xf32, #tpu.memory_space<vmem>>, vector<32x128xf32>
    tpu.vector_store %arg7[%c0_129, %c0_130], %346 {strides = array<i32>} : memref<32x128xf32, #tpu.memory_space<vmem>>, vector<32x128xf32>,
    %348 = vector.shape_cast %343 : vector<1x128xi1> to vector<1x128xi1>
    %349 = vector.broadcast %348 : vector<1x128xi1> to vector<32x128xi1>
    %350 = arith.select %349, %339, %310 : vector<32x128xi1>, vector<32x128xf32>
    %c0_131 = arith.constant 0 : index
    %c0_132 = arith.constant 0 : index
    %351 = vector.load %arg8[%c0_131, %c0_132] : memref<32x128xf32, #tpu.memory_space<vmem>>, vector<32x128xf32>
    tpu.vector_store %arg8[%c0_131, %c0_132], %350 {strides = array<i32>} : memref<32x128xf32, #tpu.memory_space<vmem>>, vector<32x128xf32>,
    %c0_133 = arith.constant 0 : index
    %c0_134 = arith.constant 0 : index
    %352 = vector.load %arg7[%c0_133, %c0_134] : memref<32x128xf32, #tpu.memory_space<vmem>>, vector<32x128xf32>
    %c0_135 = arith.constant 0 : index
    %c0_136 = arith.constant 0 : index
    %353 = vector.load %arg6[%c0_135, %c0_136] : memref<32x128xf32, #tpu.memory_space<vmem>>, vector<32x128xf32>
    tpu.vector_store %arg6[%c0_135, %c0_136], %352 {strides = array<i32>} : memref<32x128xf32, #tpu.memory_space<vmem>>, vector<32x128xf32>,
    return
  }
  func.func @transform_0(%arg0: i32) -> (i32, i32, i32) {
    %c0_i32 = arith.constant 0 : i32
    %c0_i32_0 = arith.constant 0 : i32
    %c0_i32_1 = arith.constant 0 : i32
    return %c0_i32, %c0_i32_0, %arg0 : i32, i32, i32
  }
  func.func @transform_1(%arg0: i32) -> (i32, i32) {
    %c0_i32 = arith.constant 0 : i32
    %c0_i32_0 = arith.constant 0 : i32
    %c0_i32_1 = arith.constant 0 : i32
    return %c0_i32, %c0_i32_0 : i32, i32
  }
  func.func @transform_2(%arg0: i32) -> (i32, i32) {
    %c0_i32 = arith.constant 0 : i32
    %c0_i32_0 = arith.constant 0 : i32
    %c0_i32_1 = arith.constant 0 : i32
    return %c0_i32, %c0_i32_0 : i32, i32
  }
  func.func @transform_3(%arg0: i32) -> (i32, i32) {
    %c0_i32 = arith.constant 0 : i32
    %c0_i32_0 = arith.constant 0 : i32
    %c0_i32_1 = arith.constant 0 : i32
    return %c0_i32, %c0_i32_0 : i32, i32
  }
  func.func @transform_4(%arg0: i32) -> (i32, i32) {
    %c0_i32 = arith.constant 0 : i32
    %c0_i32_0 = arith.constant 0 : i32
    return %c0_i32, %arg0 : i32, i32
  }
  func.func @transform_5(%arg0: i32) -> (i32, i32) {
    %c0_i32 = arith.constant 0 : i32
    %c0_i32_0 = arith.constant 0 : i32
    return %c0_i32, %arg0 : i32, i32
  }
}

</mosaic_0001>

<bundles_post_ra>
// kernel: sentence_embedding_simple.1
= control target key start
LH: loop header
LB: loop body
LE: loop exit
PB: predicated region body
PF: predicated region fallthrough
CT: control target
= control target key end

     0   :  { %vm89_vm0 = vcmask 261120   ;;  %v5508_v2 = vmov 0.0   ;;  %s7502_s0 = inlined_call_operand.vmem [shape: f32[8,32,128], index: 0, kind: input, shape index: {}]   ;;  %s7503_s1 = inlined_call_operand.vmem [shape: f32[128,32], index: 1, kind: input, shape index: {}]   ;;  %s7504_s2 = inlined_call_operand.vmem [shape: f32[128,32], index: 2, kind: input, shape index: {}]   ;;  %s7505_s3 = inlined_call_operand.vmem [shape: f32[128,128], index: 3, kind: input, shape index: {}]   ;;  %s7506_s4 = inlined_call_operand.vmem [shape: s32[1,128], index: 4, kind: input, shape index: {}]   ;;  %s7507_s5 = inlined_call_operand.vmem [shape: f32[32,128], index: 5, kind: output, shape index: {}]  }
   0x1   :  { %v88_v0 = vld [vmem:[%s7502_s0 + $0x18] sm:$0xff]  ;;  %v87_v1 = vld [vmem:[%s7502_s0 + $0x10] sm:$0xff]  ;;  %4422 = vmatprep.subr.mxu1 %v5508_v2  ;;  %v5549_v3 = vld [vmem:[%s7503_s1] sm:$0xff] }
   0x2   :  { %4390 = vmatprep.subr.mxu0 %v88_v0  ;;  %4423 = vmatpush3.msra.mxu1 %v5508_v2  ;;  %v5554_v4 = vld [vmem:[%s7504_s2] sm:$0xff]  ;;  %v86_v5 = vld [vmem:[%s7502_s0 + $0x8] sm:$0xff]  ;;  %v5571_v7 = vld [vmem:[%s7504_s2 + $0x10] sm:$0xff] }
   0x3   :  { %4391 = vmatpush3.msra.mxu0 %v88_v0  ;;  %4398 = vmatprep.mubr.msk.f32.mxu0 %vm89_vm0, %v5549_v3  ;;  %v5564_v6 = vld [vmem:[%s7504_s2 + $0x8] sm:$0xff]  ;;  %v85_v8 = vld [vmem:[%s7502_s0] sm:$0xff]  ;;  %v5583_v9 = vld [vmem:[%s7504_s2 + $0x18] sm:$0xff] }
   0x4   :  { %4392 = vmatprep.subr.mxu0 %v87_v1  ;;  %4424 = vmatprep.mubr.msk.f32.mxu1 %vm89_vm0, %v5554_v4  ;;  %v5588_v10 = vld [vmem:[%s7503_s1 + $0x8] sm:$0xff]  ;;  %v5593_v11 = vld [vmem:[%s7504_s2 + $0x20] sm:$0xff]  ;;  %v5598_v12 = vld [vmem:[%s7503_s1 + $0x10] sm:$0xff] }
   0x5   :  { %4393 = vmatpush3.msra.mxu0 %v87_v1  ;;  %4425 = vmatmul.mubr.msk.f32.vlgmr.msra.gmra.mxu1 %vm89_vm0, %v5564_v6  ;;  %v5609_v13 = vld [vmem:[%s7504_s2 + $0x28] sm:$0xff]  ;;  %v5616_v14 = vld [vmem:[%s7503_s1 + $0x18] sm:$0xff]  ;;  %v5621_v15 = vld [vmem:[%s7504_s2 + $0x30] sm:$0xff] }
   0x6   :  { %4394 = vmatprep.subr.mxu0 %v86_v5  ;;  %4427 = vmatprep.mubr.msk.f32.mxu1 %vm89_vm0, %v5571_v7  ;;  %v5626_v16 = vld [vmem:[%s7503_s1 + $0x20] sm:$0xff]  ;;  %v5637_v17 = vld [vmem:[%s7504_s2 + $0x38] sm:$0xff]  ;;  %v5644_v18 = vld [vmem:[%s7503_s1 + $0x28] sm:$0xff] }
   0x7   :  { %4395 = vmatpush3.msra.mxu0 %v86_v5  ;;  %v5649_v19 = vld [vmem:[%s7504_s2 + $0x40] sm:$0xff]  ;;  %v5654_v20 = vld [vmem:[%s7503_s1 + $0x30] sm:$0xff]  ;;  %v5665_v21 = vld [vmem:[%s7504_s2 + $0x48] sm:$0xff] }
   0x8   :  { %4396 = vmatprep.subr.mxu0 %v85_v8  ;;  %v5672_v22 = vld [vmem:[%s7503_s1 + $0x38] sm:$0xff]  ;;  %v5677_v23 = vld [vmem:[%s7504_s2 + $0x50] sm:$0xff]  ;;  %v5682_v24 = vld [vmem:[%s7503_s1 + $0x40] sm:$0xff] }
   0x9   :  { %4397 = vmatpush3.msra.mxu0 %v85_v8  ;;  %4428 = vmatmul.mubr.msk.f32.gmra.mxu1 %vm89_vm0, %v5583_v9  ;;  %v5693_v25 = vld [vmem:[%s7504_s2 + $0x58] sm:$0xff]  ;;  %v5700_v26 = vld [vmem:[%s7503_s1 + $0x48] sm:$0xff]  ;;  %v5705_v27 = vld [vmem:[%s7504_s2 + $0x60] sm:$0xff] }
   0xa   :  { %4399 = vmatmul.mubr.msk.f32.vlgmr.msra.gmra.mxu0 %vm89_vm0, %v5588_v10  ;;  %4430 = vmatprep.mubr.msk.f32.mxu1 %vm89_vm0, %v5593_v11  ;;  %v5710_v28 = vld [vmem:[%s7503_s1 + $0x50] sm:$0xff]  ;;  %v5721_v29 = vld [vmem:[%s7504_s2 + $0x68] sm:$0xff]  ;;  %v5728_v30 = vld [vmem:[%s7503_s1 + $0x58] sm:$0xff] }
   0xb   :  { %4401 = vmatprep.mubr.msk.f32.mxu0 %vm89_vm0, %v5598_v12  ;;  %v5733_v31 = vld [vmem:[%s7504_s2 + $0x70] sm:$0xff]  ;;  %v5738_v32 = vld [vmem:[%s7503_s1 + $0x60] sm:$0xff]  ;;  %v5749_v33 = vld [vmem:[%s7504_s2 + $0x78] sm:$0xff] }
   0xc   :  { %v5756_v34 = vld [vmem:[%s7503_s1 + $0x68] sm:$0xff]  ;;  %v5761_v35 = vld [vmem:[%s7503_s1 + $0x70] sm:$0xff]  ;;  %v5774_v36 = vld [vmem:[%s7503_s1 + $0x78] sm:$0xff] }
   0xd   :  { %4431 = vmatmul.mubr.msk.f32.gmra.mxu1 %vm89_vm0, %v5609_v13  ;;  %v3736_v37 = vld [vmem:[%s7502_s0 + $0x38] sm:$0xff]  ;;  %v3735_v38 = vld [vmem:[%s7502_s0 + $0x30] sm:$0xff]  ;;  %v3734_v39 = vld [vmem:[%s7502_s0 + $0x28] sm:$0xff] }
   0xe   :  { %4402 = vmatmul.mubr.msk.f32.gmra.mxu0 %vm89_vm0, %v5616_v14  ;;  %4433 = vmatprep.mubr.msk.f32.mxu1 %vm89_vm0, %v5621_v15  ;;  %v3733_v40 = vld [vmem:[%s7502_s0 + $0x20] sm:$0xff]  ;;  %v5827_v43 = vld [vmem:[%s7505_s3 + $0x8] sm:$0xff]  ;;  %v5838_v50 = vld [vmem:[%s7505_s3 + $0x18] sm:$0xff] }
   0xf   :  { %4404 = vmatprep.mubr.msk.f32.mxu0 %vm89_vm0, %v5626_v16  ;;  %4448 = vmatprep.subr.mxu1 %v3736_v37  ;;  %v5832_v46 = vld [vmem:[%s7505_s3] sm:$0xff]  ;;  %v5844_v55 = vld [vmem:[%s7505_s3 + $0x10] sm:$0xff]  ;;  %v5850_v61 = vld [vmem:[%s7505_s3 + $0x28] sm:$0xff] }
  0x10   :  { %4449 = vmatpush3.msra.mxu1 %v3736_v37  ;;  %v5856_v5 = vld [vmem:[%s7505_s3 + $0x20] sm:$0xff] }
  0x11   :  { %4434 = vmatmul.mubr.msk.f32.gmra.mxu1 %vm89_vm0, %v5637_v17  ;;  %4450 = vmatprep.subr.mxu1 %v3735_v38 }
  0x12   :  { %4405 = vmatmul.mubr.msk.f32.gmra.mxu0 %vm89_vm0, %v5644_v18  ;;  %4436 = vmatprep.mubr.msk.f32.mxu1 %vm89_vm0, %v5649_v19 }
  0x13   :  { %4407 = vmatprep.mubr.msk.f32.mxu0 %vm89_vm0, %v5654_v20  ;;  %4451 = vmatpush3.msra.mxu1 %v3735_v38 }
  0x14   :  { %4452 = vmatprep.subr.mxu1 %v3734_v39 }
  0x15   :  { %4437 = vmatmul.mubr.msk.f32.gmra.mxu1 %vm89_vm0, %v5665_v21 }
  0x16   :  { %4408 = vmatmul.mubr.msk.f32.gmra.mxu0 %vm89_vm0, %v5672_v22  ;;  %4439 = vmatprep.mubr.msk.f32.mxu1 %vm89_vm0, %v5677_v23 }
  0x17   :  { %4410 = vmatprep.mubr.msk.f32.mxu0 %vm89_vm0, %v5682_v24  ;;  %4453 = vmatpush3.msra.mxu1 %v3734_v39 }
  0x18   :  { %4454 = vmatprep.subr.mxu1 %v3733_v40 }
  0x19   :  { %4440 = vmatmul.mubr.msk.f32.gmra.mxu1 %vm89_vm0, %v5693_v25 }
  0x1a   :  { %4411 = vmatmul.mubr.msk.f32.gmra.mxu0 %vm89_vm0, %v5700_v26  ;;  %4442 = vmatprep.mubr.msk.f32.mxu1 %vm89_vm0, %v5705_v27 }
  0x1b   :  { %4413 = vmatprep.mubr.msk.f32.mxu0 %vm89_vm0, %v5710_v28  ;;  %4455 = vmatpush3.msra.mxu1 %v3733_v40 }
  0x1d   :  { %4443 = vmatmul.mubr.msk.f32.gmra.mxu1 %vm89_vm0, %v5721_v29 }
  0x1e   :  { %4414 = vmatmul.mubr.msk.f32.gmra.mxu0 %vm89_vm0, %v5728_v30  ;;  %4445 = vmatprep.mubr.msk.f32.mxu1 %vm89_vm0, %v5733_v31 }
  0x1f   :  { %4416 = vmatprep.mubr.msk.f32.mxu0 %vm89_vm0, %v5738_v32 }
  0x21   :  { %4446 = vmatmul.mubr.msk.f32.gmra.mxu1 %vm89_vm0, %v5749_v33 }
  0x22   :  { %4417 = vmatmul.mubr.msk.f32.gmra.mxu0 %vm89_vm0, %v5756_v34  ;;  %4456 = vmatprep.mubr.msk.f32.mxu1 %vm89_vm0, %v5549_v3 }
  0x23   :  { %4419 = vmatprep.mubr.msk.f32.mxu0 %vm89_vm0, %v5761_v35 }
  0x25   :  { %4457 = vmatmul.mubr.msk.f32.vlgmr.msra.gmra.mxu1 %vm89_vm0, %v5588_v10 }
  0x26   :  { %4420 = vmatmul.mubr.msk.f32.gmra.mxu0 %vm89_vm0, %v5774_v36  ;;  %4459 = vmatprep.mubr.msk.f32.mxu1 %vm89_vm0, %v5598_v12 }
  0x27   :  { %4488 = vmatprep.mubr.msk.f32.mxu0 %vm89_vm0, %v5554_v4 }
  0x29   :  { %4460 = vmatmul.mubr.msk.f32.gmra.mxu1 %vm89_vm0, %v5616_v14 }
  0x2a   :  { %4462 = vmatprep.mubr.msk.f32.mxu1 %vm89_vm0, %v5626_v16 }
  0x2d   :  { %4463 = vmatmul.mubr.msk.f32.gmra.mxu1 %vm89_vm0, %v5644_v18 }
  0x2e   :  { %4465 = vmatprep.mubr.msk.f32.mxu1 %vm89_vm0, %v5654_v20 }
  0x31   :  { %4466 = vmatmul.mubr.msk.f32.gmra.mxu1 %vm89_vm0, %v5672_v22 }
  0x32   :  { %4468 = vmatprep.mubr.msk.f32.mxu1 %vm89_vm0, %v5682_v24 }
  0x35   :  { %4469 = vmatmul.mubr.msk.f32.gmra.mxu1 %vm89_vm0, %v5700_v26 }
  0x36   :  { %4471 = vmatprep.mubr.msk.f32.mxu1 %vm89_vm0, %v5710_v28 }
  0x39   :  { %4472 = vmatmul.mubr.msk.f32.gmra.mxu1 %vm89_vm0, %v5728_v30 }
  0x3a   :  { %4474 = vmatprep.mubr.msk.f32.mxu1 %vm89_vm0, %v5738_v32 }
  0x3d   :  { %4475 = vmatmul.mubr.msk.f32.gmra.mxu1 %vm89_vm0, %v5756_v34 }
  0x3e   :  { %4477 = vmatprep.mubr.msk.f32.mxu1 %vm89_vm0, %v5761_v35 }
  0x41   :  { %4478 = vmatmul.mubr.msk.f32.gmra.mxu1 %vm89_vm0, %v5774_v36 }
  0x42   :  { %4520 = vmatprep.mubr.msk.f32.mxu1 %vm89_vm0, %v5549_v3 }
  0xc5   :  { %v4426_v41 = vpop.f32.mrf.mxu1 }
  0xc7   :  { %v397_v42 = vpop.f32.mrf.mxu1 }
  0xc9   :  { %v4429_v44 = vpop.f32.mrf.mxu1 }
  0xca   :  { %v4400_v45 = vpop.f32.mrf.mxu0 }
  0xcb   :  { %v210_v47 = vadd.f32 %v4400_v45, %v5827_v43  ;;  %v407_v48 = vpop.f32.mrf.mxu1 }
  0xcc   :  { %v204_v49 = vpop.f32.mrf.mxu0 }
  0xcd   :  { %v477_v51 = vadd.f32 %v4426_v41, %v210_v47  ;;  %v205_v52 = vadd.f32 %v204_v49, %v5832_v46  ;;  %v4432_v53 = vpop.f32.mrf.mxu1  ;;  %v5862_v41 = vld [vmem:[%s7505_s3 + $0x38] sm:$0xff] }
  0xce   :  { %v4403_v54 = vpop.f32.mrf.mxu0  ;;  %7614 = vst [vmem:[#allocation4_spill] sm:$0xff] %v5862_v41 }
  0xcf   :  { %v3722_v56 = vmul.f32 -1.442695, %v477_v51  ;;  %v476_v57 = vadd.f32 %v397_v42, %v205_v52  ;;  %v220_v58 = vadd.f32 %v4403_v54, %v5838_v50  ;;  %v417_v59 = vpop.f32.mrf.mxu1 }
  0xd0   :  { %v214_v60 = vpop.f32.mrf.mxu0 }
  0xd1   :  { %4898 = vpow2.f32 %v3722_v56  ;;  %v3721_v62 = vmul.f32 -1.442695, %v476_v57  ;;  %v479_v63 = vadd.f32 %v4429_v44, %v220_v58  ;;  %v215_v0 = vadd.f32 %v214_v60, %v5844_v55  ;;  %v4435_v1 = vpop.f32.mrf.mxu1 }
  0xd2   :  { %v4406_v2 = vpop.f32.mrf.mxu0 }
  0xd3   :  { %4900 = vpow2.f32 %v3721_v62  ;;  %v3724_v8 = vmul.f32 -1.442695, %v479_v63  ;;  %v478_v37 = vadd.f32 %v407_v48, %v215_v0  ;;  %v230_v38 = vadd.f32 %v4406_v2, %v5850_v61  ;;  %v427_v39 = vpop.f32.mrf.mxu1  ;;  %v5868_v48 = vld [vmem:[%s7505_s3 + $0x30] sm:$0xff] }
  0xd4   :  { %v224_v40 = vpop.f32.mrf.mxu0  ;;  %7615 = vst [vmem:[#allocation5_spill] sm:$0xff] %v5868_v48 }
  0xd5   :  { %4902 = vpow2.f32 %v3724_v8  ;;  %v3723_v42 = vmul.f32 -1.442695, %v478_v37  ;;  %v481_v44 = vadd.f32 %v4432_v53, %v230_v38  ;;  %v225_v45 = vadd.f32 %v224_v40, %v5856_v5  ;;  %v4438_v47 = vpop.f32.mrf.mxu1  ;;  %v5874_v53 = vld [vmem:[%s7505_s3 + $0x48] sm:$0xff] }
  0xd6   :  { %v4409_v49 = vpop.f32.mrf.mxu0  ;;  %7616 = vst [vmem:[#allocation6_spill] sm:$0xff] %v5874_v53 }
  0xd7   :  { %4904 = vpow2.f32 %v3723_v42  ;;  %v3726_v51 = vmul.f32 -1.442695, %v481_v44  ;;  %v480_v52 = vadd.f32 %v417_v59, %v225_v45  ;;  %v240_v54 = vadd.f32 %v4409_v49, %v5862_v41  ;;  %v437_v56 = vpop.f32.mrf.mxu1  ;;  %v5880_v59 = vld [vmem:[%s7505_s3 + $0x40] sm:$0xff] }
  0xd8   :  { %v234_v57 = vpop.f32.mrf.mxu0  ;;  %7617 = vst [vmem:[#allocation7_spill] sm:$0xff] %v5880_v59 }
  0xd9   :  { %4906 = vpow2.f32 %v3726_v51  ;;  %v3725_v58 = vmul.f32 -1.442695, %v480_v52  ;;  %v483_v60 = vadd.f32 %v4435_v1, %v240_v54  ;;  %v235_v62 = vadd.f32 %v234_v57, %v5868_v48  ;;  %v4441_v63 = vpop.f32.mrf.mxu1  ;;  %v5886_v1 = vld [vmem:[%s7505_s3 + $0x58] sm:$0xff] }
  0xda   :  { %v4412_v0 = vpop.f32.mrf.mxu0  ;;  %7618 = vst [vmem:[#allocation8_spill] sm:$0xff] %v5886_v1 }
  0xdb   :  { %4908 = vpow2.f32 %v3725_v58  ;;  %v3728_v2 = vmul.f32 -1.442695, %v483_v60  ;;  %v482_v8 = vadd.f32 %v427_v39, %v235_v62  ;;  %v250_v37 = vadd.f32 %v4412_v0, %v5874_v53  ;;  %v447_v38 = vpop.f32.mrf.mxu1  ;;  %v5892_v39 = vld [vmem:[%s7505_s3 + $0x50] sm:$0xff]  ;;  %v5898_v0 = vld [vmem:[%s7505_s3 + $0x68] sm:$0xff] }
  0xdc   :  { %v244_v40 = vpop.f32.mrf.mxu0  ;;  %7619 = vst [vmem:[#allocation9_spill] sm:$0xff] %v5892_v39  ;;  %7620 = vst [vmem:[#allocation10_spill] sm:$0xff] %v5898_v0 }
  0xdd   :  { %4910 = vpow2.f32 %v3728_v2  ;;  %v3727_v42 = vmul.f32 -1.442695, %v482_v8  ;;  %v245_v44 = vadd.f32 %v244_v40, %v5880_v59  ;;  %v485_v45 = vadd.f32 %v4438_v47, %v250_v37  ;;  %v4444_v49 = vpop.f32.mrf.mxu1 }
  0xde   :  { %v4899_v51 = vpop.eup %4898  ;;  %v4415_v52 = vpop.f32.mrf.mxu0 }
  0xdf   :  { %v505_v54 = vadd.f32 1.0, %v4899_v51  ;;  %4912 = vpow2.f32 %v3727_v42  ;;  %v260_v57 = vadd.f32 %v4415_v52, %v5886_v1  ;;  %v484_v58 = vadd.f32 %v437_v56, %v245_v44  ;;  %v457_v47 = vpop.f32.mrf.mxu1  ;;  %v5904_v56 = vld [vmem:[%s7505_s3 + $0x60] sm:$0xff] }
  0xe0   :  { %v4901_v60 = vpop.eup %4900  ;;  %v254_v62 = vpop.f32.mrf.mxu0  ;;  %4914 = vtanh.f32 %v485_v45  ;;  %7621 = vst [vmem:[#allocation11_spill] sm:$0xff] %v5904_v56 }
  0xe1   :  { %v504_v2 = vadd.f32 1.0, %v4901_v60  ;;  %v255_v8 = vadd.f32 %v254_v62, %v5892_v39  ;;  %v487_v37 = vadd.f32 %v4441_v63, %v260_v57  ;;  %4916 = vrcp.f32 %v505_v54  ;;  %v5910_v63 = vld [vmem:[%s7505_s3 + $0x78] sm:$0xff]  ;;  %v4447_v45 = vpop.f32.mrf.mxu1 }
  0xe2   :  { %v4903_v40 = vpop.eup %4902  ;;  %v4418_v51 = vpop.f32.mrf.mxu0  ;;  %4918 = vtanh.f32 %v484_v58  ;;  %7622 = vst [vmem:[#allocation12_spill] sm:$0xff] %v5910_v63 }
  0xe3   :  { %v507_v42 = vadd.f32 1.0, %v4903_v40  ;;  %v270_v44 = vadd.f32 %v4418_v51, %v5898_v0  ;;  %v486_v52 = vadd.f32 %v447_v38, %v255_v8  ;;  %4920 = vrcp.f32 %v504_v2  ;;  %v5916_v38 = vld [vmem:[%s7505_s3 + $0x70] sm:$0xff] }
  0xe4   :  { %v4905_v1 = vpop.eup %4904  ;;  %v264_v60 = vpop.f32.mrf.mxu0  ;;  %4922 = vtanh.f32 %v487_v37  ;;  %7623 = vst [vmem:[#allocation13_spill] sm:$0xff] %v5916_v38 }
  0xe5   :  { %v506_v54 = vadd.f32 1.0, %v4905_v1  ;;  %v265_v57 = vadd.f32 %v264_v60, %v5904_v56  ;;  %v489_v62 = vadd.f32 %v4444_v49, %v270_v44  ;;  %4924 = vrcp.f32 %v507_v42  ;;  %v467_v60 = vpop.f32.mrf.mxu1 }
  0xe6   :  { %v4907_v39 = vpop.eup %4906  ;;  %v4421_v58 = vpop.f32.mrf.mxu0  ;;  %4926 = vtanh.f32 %v486_v52  ;;  %v590_v1 = vlaneseq  ;;  %v5923_v52 = vld [vmem:[%s7506_s4] sm:$0x1] }
  0xe7   :  { %v529_v2 = vadd.f32 1.0, %v4907_v39  ;;  %v3730_v8 = vmul.f32 -1.442695, %v489_v62  ;;  %v280_v40 = vadd.f32 %v4421_v58, %v5910_v63  ;;  %4928 = vrcp.f32 %v506_v54  ;;  %7624 = vst [vmem:[#allocation14_spill] sm:$0xff] %v5923_v52 }
  0xe8   :  { %v4909_v51 = vpop.eup %4908  ;;  %v488_v37 = vadd.f32 %v457_v47, %v265_v57  ;;  %v274_v0 = vpop.f32.mrf.mxu0  ;;  %v591_v57 = vshrl.u32 %v590_v1, 7  ;;  %vm588_vm1 = vcmp.gt.s32.totalorder %v5923_v52, 0 }
  0xe9   :  { %4930 = vrcp.f32 %v529_v2  ;;  %v528_v49 = vadd.f32 1.0, %v4909_v51  ;;  %v275_v42 = vadd.f32 %v274_v0, %v5916_v38  ;;  %v491_v44 = vadd.f32 %v4447_v45, %v280_v40 }
  0xea   :  { %v4911_v56 = vpop.eup %4910  ;;  %4932 = vpow2.f32 %v3730_v8  ;;  %v3729_v59 = vmul.f32 -1.442695, %v488_v37  ;;  %v5926_v8 = vsub.s32 0, %v591_v57  ;;  %v7522_v51 = vmov 0  }
  0xeb   :  { %4934 = vrcp.f32 %v528_v49  ;;  %v531_v39 = vadd.f32 1.0, %v4911_v56  ;;  %v3732_v54 = vmul.f32 -1.442695, %v491_v44  ;;  %v490_v62 = vadd.f32 %v467_v60, %v275_v42 }
  0xec   :  { %v4913_v47 = vpop.eup %4912  ;;  %4936 = vpow2.f32 %v3729_v59  ;;  %7625 = vst [vmem:[#allocation15_spill] sm:$0xff] %v5926_v8  ;;  %v589_v37 = vsel %vm588_vm1, 1, %v7522_v51 }
  0xed   :  { %4938 = vrcp.f32 %v531_v39  ;;  %v530_v58 = vadd.f32 1.0, %v4913_v47  ;;  %v3731_v2 = vmul.f32 -1.442695, %v490_v62  ;;  %v4915_v0 = vpop.eup %4914  ;;  %v593_v49 = vrot.slane %v589_v37, %v5926_v8 }
  0xee   :  { %4940 = vpow2.f32 %v3732_v54  ;;  %v4917_v45 = vpop.eup %4916 }
  0xef   :  { %4942 = vrcp.f32 %v530_v58  ;;  %v4919_v56 = vpop.eup %4918  ;;  %v573_v54 = vmul.f32 %v4917_v45, %v4915_v0  ;;  %vm5930_vm2 = vcmp.eq.s32.totalorder %v593_v49, 1  ;;  %v6160_v58 = vld [vmem:[%s7504_s2 + $0x8] sm:$0xff] }
  0xf0   :  { %4944 = vpow2.f32 %v3731_v2  ;;  %v4921_v40 = vpop.eup %4920 }
  0xf1   :  { %v4923_v60 = vpop.eup %4922  ;;  %v572_v51 = vmul.f32 %v4921_v40, %v4919_v56 }
  0xf2   :  { %v4925_v1 = vpop.eup %4924 }
  0xf3   :  { %v4927_v59 = vpop.eup %4926  ;;  %v575_v53 = vmul.f32 %v4925_v1, %v4923_v60 }
  0xf4   :  { %v4929_v42 = vpop.eup %4928 }
  0xf6   :  { %v4931_v44 = vpop.eup %4930 }
  0xf7   :  { %v4933_v39 = vpop.eup %4932  ;;  %v569_v62 = vmul.f32 0.0, %v4931_v44  ;;  %v574_v44 = vmul.f32 %v4929_v42, %v4927_v59 }
  0xf8   :  { %v4935_v47 = vpop.eup %4934  ;;  %v557_v57 = vadd.f32 1.0, %v4933_v39 }
  0xf9   :  { %v4937_v2 = vpop.eup %4936  ;;  %v568_v52 = vmul.f32 0.0, %v4935_v47  ;;  %v577_v38 = vadd.f32 %v573_v54, %v569_v62 }
  0xfa   :  { %v4939_v63 = vpop.eup %4938  ;;  %4946 = vrcp.f32 %v557_v57  ;;  %v556_v48 = vadd.f32 1.0, %v4937_v2 }
  0xfb   :  { %v4941_v37 = vpop.eup %4940  ;;  %v571_v8 = vmul.f32 0.0, %v4939_v63  ;;  %4948 = vtanh.f32 %v577_v38  ;;  %v5936_v0 = vsel %vm5930_vm2, %v577_v38, 0.0  ;;  %v576_v45 = vadd.f32 %v572_v51, %v568_v52 }
  0xfc   :  { %v4943_v49 = vpop.eup %4942  ;;  %4950 = vrcp.f32 %v556_v48  ;;  %v559_v39 = vadd.f32 1.0, %v4941_v37 }
  0xfd   :  { %v4945_v41 = vpop.eup %4944  ;;  %v570_v47 = vmul.f32 0.0, %v4943_v49  ;;  %4952 = vtanh.f32 %v576_v45  ;;  %v579_v56 = vadd.f32 %v575_v53, %v571_v8  ;;  %v5940_v40 = vsel %vm5930_vm2, %v576_v45, 0.0 }
  0xfe   :  { %4954 = vrcp.f32 %v559_v39  ;;  %v558_v63 = vadd.f32 1.0, %v4945_v41 }
  0xff   :  { %4956 = vtanh.f32 %v579_v56  ;;  %v5944_v38 = vsel %vm5930_vm2, %v579_v56, 0.0  ;;  %v578_v52 = vadd.f32 %v574_v44, %v570_v47 }
 0x100   :  { %4958 = vrcp.f32 %v558_v63 }
 0x101   :  { %4960 = vtanh.f32 %v578_v52  ;;  %v5948_v48 = vsel %vm5930_vm2, %v578_v52, 0.0 }
 0x107   :  { %v4947_v51 = vpop.eup %4946 }
 0x108   :  { %v4949_v53 = vpop.eup %4948 }
 0x109   :  { %v4951_v8 = vpop.eup %4950  ;;  %v5950_v60 = vmul.f32 %v4949_v53, %v4947_v51 }
 0x10a   :  { %v4953_v1 = vpop.eup %4952 }
 0x10b   :  { %v4955_v59 = vpop.eup %4954  ;;  %v5952_v41 = vmul.f32 %v4953_v1, %v4951_v8  ;;  %v596_v42 = vsel %vm5930_vm2, %v5950_v60, 0.0  ;;  %v7628_v1 = vld [vmem:[#allocation4_spill] sm:$0xff] }
 0x10c   :  { %v4957_v62 = vpop.eup %4956 }
 0x10d   :  { %v4959_v54 = vpop.eup %4958  ;;  %v5957_v57 = vmul.f32 %v4957_v62, %v4955_v59  ;;  %v595_v2 = vsel %vm5930_vm2, %v5952_v41, 0.0 }
 0x10e   :  { %v4961_v37 = vpop.eup %4960 }
 0x10f   :  { %4480 = vmatprep.subr.msk.mxu0 %vm5930_vm2, %v5957_v57  ;;  %v5965_v45 = vmul.f32 %v4961_v37, %v4959_v54  ;;  %v598_v49 = vsel %vm5930_vm2, %v5957_v57, 0.0 }
 0x110   :  { %4481 = vmatpush3.msk.msra.mxu0 %vm5930_vm2, %v5957_v57  ;;  %v6167_v57 = vld [vmem:[%s7504_s2 + $0x10] sm:$0xff] }
 0x111   :  { %4482 = vmatprep.subr.msk.mxu0 %vm5930_vm2, %v5965_v45  ;;  %v597_v44 = vsel %vm5930_vm2, %v5965_v45, 0.0 }
 0x112   :  { %4483 = vmatpush3.msk.msra.mxu0 %vm5930_vm2, %v5965_v45  ;;  %v6181_v45 = vld [vmem:[%s7504_s2 + $0x20] sm:$0xff] }
 0x113   :  { %4484 = vmatprep.subr.msk.mxu0 %vm5930_vm2, %v5950_v60 }
 0x114   :  { %4485 = vmatpush3.msk.msra.mxu0 %vm5930_vm2, %v5950_v60 }
 0x115   :  { %4486 = vmatprep.subr.msk.mxu0 %vm5930_vm2, %v5952_v41 }
 0x116   :  { %4487 = vmatpush3.msk.msra.mxu0 %vm5930_vm2, %v5952_v41 }
 0x117   :  { %4489 = vmatmul.mubr.msk.f32.vlgmr.msra.gmra.mxu0 %vm89_vm0, %v5564_v6  ;;  %v3784_v6 = vld [vmem:[%s7502_s0 + $0x58] sm:$0xff] }
 0x118   :  { %4491 = vmatprep.mubr.msk.f32.mxu0 %vm89_vm0, %v5571_v7  ;;  %v3783_v7 = vld [vmem:[%s7502_s0 + $0x50] sm:$0xff]  ;;  %4512 = vmatprep.subr.mxu1 %v3784_v6 }
 0x119   :  { %4513 = vmatpush3.msra.mxu1 %v3784_v6 }
 0x11a   :  { %4514 = vmatprep.subr.mxu1 %v3783_v7 }
 0x11b   :  { %4492 = vmatmul.mubr.msk.f32.gmra.mxu0 %vm89_vm0, %v5583_v9  ;;  %v3782_v9 = vld [vmem:[%s7502_s0 + $0x48] sm:$0xff]  ;;  %4515 = vmatpush3.msra.mxu1 %v3783_v7 }
 0x11c   :  { %4494 = vmatprep.mubr.msk.f32.mxu0 %vm89_vm0, %v5593_v11  ;;  %4516 = vmatprep.subr.mxu1 %v3782_v9 }
 0x11d   :  { %4517 = vmatpush3.msra.mxu1 %v3782_v9  ;;  %v7629_v9 = vld [vmem:[#allocation5_spill] sm:$0xff] }
 0x11f   :  { %4495 = vmatmul.mubr.msk.f32.gmra.mxu0 %vm89_vm0, %v5609_v13 }
 0x120   :  { %4497 = vmatprep.mubr.msk.f32.mxu0 %vm89_vm0, %v5621_v15 }
 0x123   :  { %4498 = vmatmul.mubr.msk.f32.gmra.mxu0 %vm89_vm0, %v5637_v17 }
 0x124   :  { %4500 = vmatprep.mubr.msk.f32.mxu0 %vm89_vm0, %v5649_v19 }
 0x127   :  { %4501 = vmatmul.mubr.msk.f32.gmra.mxu0 %vm89_vm0, %v5665_v21 }
 0x128   :  { %4503 = vmatprep.mubr.msk.f32.mxu0 %vm89_vm0, %v5677_v23 }
 0x12b   :  { %4504 = vmatmul.mubr.msk.f32.gmra.mxu0 %vm89_vm0, %v5693_v25 }
 0x12c   :  { %4506 = vmatprep.mubr.msk.f32.mxu0 %vm89_vm0, %v5705_v27 }
 0x12f   :  { %4507 = vmatmul.mubr.msk.f32.gmra.mxu0 %vm89_vm0, %v5721_v29 }
 0x130   :  { %4509 = vmatprep.mubr.msk.f32.mxu0 %vm89_vm0, %v5733_v31 }
 0x133   :  { %4510 = vmatmul.mubr.msk.f32.gmra.mxu0 %vm89_vm0, %v5749_v33 }
 0x134   :  { %4552 = vmatprep.mubr.msk.f32.mxu0 %vm89_vm0, %v5554_v4  ;;  %v3781_v4 = vld [vmem:[%s7502_s0 + $0x40] sm:$0xff] }
 0x135   :  { %4518 = vmatprep.subr.mxu1 %v3781_v4 }
 0x136   :  { %4519 = vmatpush3.msra.mxu1 %v3781_v4 }
 0x137   :  { %4521 = vmatmul.mubr.msk.f32.vlgmr.msra.gmra.mxu1 %vm89_vm0, %v5588_v10  ;;  %v4458_v10 = vpop.f32.mrf.mxu1 }
 0x138   :  { %4523 = vmatprep.mubr.msk.f32.mxu1 %vm89_vm0, %v5598_v12  ;;  %v696_v19 = vadd.f32 %v4458_v10, %v5827_v43 }
 0x139   :  { %v690_v11 = vpop.f32.mrf.mxu1 }
 0x13b   :  { %4524 = vmatmul.mubr.msk.f32.gmra.mxu1 %vm89_vm0, %v5616_v14  ;;  %v4461_v12 = vpop.f32.mrf.mxu1 }
 0x13c   :  { %4526 = vmatprep.mubr.msk.f32.mxu1 %vm89_vm0, %v5626_v16  ;;  %v706_v23 = vadd.f32 %v4461_v12, %v5838_v50 }
 0x13d   :  { %v700_v13 = vpop.f32.mrf.mxu1 }
 0x13f   :  { %4527 = vmatmul.mubr.msk.f32.gmra.mxu1 %vm89_vm0, %v5644_v18  ;;  %v4464_v14 = vpop.f32.mrf.mxu1 }
 0x140   :  { %4529 = vmatprep.mubr.msk.f32.mxu1 %vm89_vm0, %v5654_v20 }
 0x141   :  { %v710_v15 = vpop.f32.mrf.mxu1 }
 0x142   :  { %v711_v51 = vadd.f32 %v710_v15, %v5856_v5 }
 0x143   :  { %4530 = vmatmul.mubr.msk.f32.gmra.mxu1 %vm89_vm0, %v5672_v22  ;;  %v4467_v16 = vpop.f32.mrf.mxu1  ;;  %v691_v22 = vadd.f32 %v690_v11, %v5832_v46 }
 0x144   :  { %4532 = vmatprep.mubr.msk.f32.mxu1 %vm89_vm0, %v5682_v24  ;;  %v726_v59 = vadd.f32 %v4467_v16, %v7628_v1 }
 0x145   :  { %v720_v17 = vpop.f32.mrf.mxu1 }
 0x146   :  { %v721_v4 = vadd.f32 %v720_v17, %v7629_v9 }
 0x147   :  { %4533 = vmatmul.mubr.msk.f32.gmra.mxu1 %vm89_vm0, %v5700_v26  ;;  %v4470_v18 = vpop.f32.mrf.mxu1 }
 0x148   :  { %4535 = vmatprep.mubr.msk.f32.mxu1 %vm89_vm0, %v5710_v28 }
 0x149   :  { %v730_v20 = vpop.f32.mrf.mxu1 }
 0x14b   :  { %4536 = vmatmul.mubr.msk.f32.gmra.mxu1 %vm89_vm0, %v5728_v30 }
 0x14c   :  { %4538 = vmatprep.mubr.msk.f32.mxu1 %vm89_vm0, %v5738_v32  ;;  %v4473_v32 = vpop.f32.mrf.mxu1 }
 0x14e   :  { %v740_v52 = vpop.f32.mrf.mxu1 }
 0x14f   :  { %4539 = vmatmul.mubr.msk.f32.gmra.mxu1 %vm89_vm0, %v5756_v34 }
 0x150   :  { %4541 = vmatprep.mubr.msk.f32.mxu1 %vm89_vm0, %v5761_v35  ;;  %v4476_v7 = vpop.f32.mrf.mxu1 }
 0x153   :  { %4542 = vmatmul.mubr.msk.f32.gmra.mxu1 %vm89_vm0, %v5774_v36  ;;  %v716_v36 = vadd.f32 %v4464_v14, %v5850_v61 }
 0x154   :  { %4584 = vmatprep.mubr.msk.f32.mxu1 %vm89_vm0, %v5549_v3  ;;  %v701_v3 = vadd.f32 %v700_v13, %v5844_v55  ;;  %v7630_v13 = vld [vmem:[#allocation6_spill] sm:$0xff] }
 0x155   :  { %v736_v14 = vadd.f32 %v4470_v18, %v7630_v13 }
 0x1d7   :  { %v4490_v21 = vpop.f32.mrf.mxu0 }
 0x1d8   :  { %v915_v24 = vadd.f32 %v4490_v21, %v696_v19 }
 0x1d9   :  { %v835_v26 = vpop.f32.mrf.mxu0 }
 0x1da   :  { %v3770_v28 = vmul.f32 -1.442695, %v915_v24  ;;  %v914_v30 = vadd.f32 %v835_v26, %v691_v22  ;;  %v7631_v22 = vld [vmem:[#allocation7_spill] sm:$0xff] }
 0x1db   :  { %v4493_v34 = vpop.f32.mrf.mxu0  ;;  %v731_v16 = vadd.f32 %v730_v20, %v7631_v22 }
 0x1dc   :  { %4962 = vpow2.f32 %v3770_v28  ;;  %v3769_v35 = vmul.f32 -1.442695, %v914_v30  ;;  %v917_v39 = vadd.f32 %v4493_v34, %v706_v23  ;;  %v750_v23 = vpop.f32.mrf.mxu1  ;;  %v7632_v30 = vld [vmem:[#allocation8_spill] sm:$0xff] }
 0x1dd   :  { %v845_v47 = vpop.f32.mrf.mxu0 }
 0x1de   :  { %4964 = vpow2.f32 %v3769_v35  ;;  %v3772_v56 = vmul.f32 -1.442695, %v917_v39  ;;  %v916_v63 = vadd.f32 %v845_v47, %v701_v3  ;;  %v746_v3 = vadd.f32 %v4473_v32, %v7632_v30  ;;  %v7633_v39 = vld [vmem:[#allocation9_spill] sm:$0xff]  ;;  %v4479_v47 = vpop.f32.mrf.mxu1 }
 0x1df   :  { %v4496_v53 = vpop.f32.mrf.mxu0  ;;  %v741_v18 = vadd.f32 %v740_v52, %v7633_v39 }
 0x1e0   :  { %4966 = vpow2.f32 %v3772_v56  ;;  %v3771_v8 = vmul.f32 -1.442695, %v916_v63  ;;  %v919_v62 = vadd.f32 %v4496_v53, %v716_v36  ;;  %v7634_v53 = vld [vmem:[#allocation10_spill] sm:$0xff] }
 0x1e1   :  { %v855_v54 = vpop.f32.mrf.mxu0 }
 0x1e2   :  { %4968 = vpow2.f32 %v3771_v8  ;;  %v3774_v37 = vmul.f32 -1.442695, %v919_v62  ;;  %v918_v6 = vadd.f32 %v855_v54, %v711_v51  ;;  %v756_v8 = vadd.f32 %v4476_v7, %v7634_v53 }
 0x1e3   :  { %v4499_v10 = vpop.f32.mrf.mxu0 }
 0x1e4   :  { %4970 = vpow2.f32 %v3774_v37  ;;  %v3773_v11 = vmul.f32 -1.442695, %v918_v6  ;;  %v921_v12 = vadd.f32 %v4499_v10, %v726_v59  ;;  %v7635_v37 = vld [vmem:[#allocation11_spill] sm:$0xff] }
 0x1e5   :  { %v865_v15 = vpop.f32.mrf.mxu0  ;;  %v751_v6 = vadd.f32 %v750_v23, %v7635_v37 }
 0x1e6   :  { %4972 = vpow2.f32 %v3773_v11  ;;  %v3776_v19 = vmul.f32 -1.442695, %v921_v12  ;;  %v920_v21 = vadd.f32 %v865_v15, %v721_v4  ;;  %v760_v4 = vpop.f32.mrf.mxu1 }
 0x1e7   :  { %v4502_v24 = vpop.f32.mrf.mxu0 }
 0x1e8   :  { %4974 = vpow2.f32 %v3776_v19  ;;  %v3775_v26 = vmul.f32 -1.442695, %v920_v21  ;;  %v923_v28 = vadd.f32 %v4502_v24, %v736_v14  ;;  %v7636_v14 = vld [vmem:[#allocation12_spill] sm:$0xff]  ;;  %v7637_v21 = vld [vmem:[#allocation13_spill] sm:$0xff] }
 0x1e9   :  { %v4963_v17 = vpop.eup %4962  ;;  %v875_v34 = vpop.f32.mrf.mxu0  ;;  %v766_v15 = vadd.f32 %v4479_v47, %v7636_v14 }
 0x1ea   :  { %v943_v35 = vadd.f32 1.0, %v4963_v17  ;;  %4976 = vpow2.f32 %v3775_v26  ;;  %v922_v36 = vadd.f32 %v875_v34, %v731_v16  ;;  %v761_v16 = vadd.f32 %v760_v4, %v7637_v21 }
 0x1eb   :  { %v4965_v56 = vpop.eup %4964  ;;  %v4505_v63 = vpop.f32.mrf.mxu0  ;;  %4978 = vtanh.f32 %v923_v28  ;;  %v7639_v4 = vmov 0  }
 0x1ec   :  { %v942_v51 = vadd.f32 1.0, %v4965_v56  ;;  %v925_v20 = vadd.f32 %v4505_v63, %v746_v3  ;;  %4980 = vrcp.f32 %v943_v35 }
 0x1ed   :  { %v4967_v59 = vpop.eup %4966  ;;  %v885_v62 = vpop.f32.mrf.mxu0  ;;  %4982 = vtanh.f32 %v922_v36 }
 0x1ee   :  { %v945_v54 = vadd.f32 1.0, %v4967_v59  ;;  %v924_v32 = vadd.f32 %v885_v62, %v741_v18  ;;  %4984 = vrcp.f32 %v942_v51  ;;  %v7638_v62 = vld [vmem:[#allocation14_spill] sm:$0xff] }
 0x1ef   :  { %v4969_v10 = vpop.eup %4968  ;;  %v4508_v52 = vpop.f32.mrf.mxu0  ;;  %4986 = vtanh.f32 %v925_v20  ;;  %vm1026_vm3 = vcmp.gt.s32.totalorder %v7638_v62, 1  ;;  %vm1464_vm5 = vcmp.gt.s32.totalorder %v7638_v62, 2 }
 0x1f0   :  { %v944_v11 = vadd.f32 1.0, %v4969_v10  ;;  %v927_v12 = vadd.f32 %v4508_v52, %v756_v8  ;;  %4988 = vrcp.f32 %v945_v54  ;;  %v1027_v10 = vsel %vm1026_vm3, 1, %v7639_v4 }
 0x1f1   :  { %v4971_v19 = vpop.eup %4970  ;;  %v895_v7 = vpop.f32.mrf.mxu0  ;;  %4990 = vtanh.f32 %v924_v32 }
 0x1f2   :  { %v967_v24 = vadd.f32 1.0, %v4971_v19  ;;  %v3778_v26 = vmul.f32 -1.442695, %v927_v12  ;;  %v926_v28 = vadd.f32 %v895_v7, %v751_v6  ;;  %4992 = vrcp.f32 %v944_v11 }
 0x1f3   :  { %v4973_v3 = vpop.eup %4972  ;;  %v4511_v23 = vpop.f32.mrf.mxu0 }
 0x1f4   :  { %4994 = vrcp.f32 %v967_v24  ;;  %v966_v17 = vadd.f32 1.0, %v4973_v3  ;;  %v3777_v34 = vmul.f32 -1.442695, %v926_v28  ;;  %v929_v35 = vadd.f32 %v4511_v23, %v766_v15  ;;  %v7640_v15 = vld [vmem:[#allocation15_spill] sm:$0xff] }
 0x1f5   :  { %v4975_v36 = vpop.eup %4974  ;;  %4996 = vpow2.f32 %v3778_v26  ;;  %v905_v18 = vpop.f32.mrf.mxu0  ;;  %v1031_v19 = vrot.slane %v1027_v10, %v7640_v15 }
 0x1f6   :  { %4998 = vrcp.f32 %v966_v17  ;;  %v969_v47 = vadd.f32 1.0, %v4975_v36  ;;  %v3780_v56 = vmul.f32 -1.442695, %v929_v35  ;;  %v928_v63 = vadd.f32 %v905_v18, %v761_v16  ;;  %v6202_v17 = vld [vmem:[%s7504_s2 + $0x38] sm:$0xff] }
 0x1f7   :  { %v4977_v51 = vpop.eup %4976  ;;  %5000 = vpow2.f32 %v3777_v34  ;;  %vm6090_vm4 = vcmp.eq.s32.totalorder %v1031_v19, 1 }
 0x1f8   :  { %5002 = vrcp.f32 %v969_v47  ;;  %v968_v20 = vadd.f32 1.0, %v4977_v51  ;;  %v3779_v8 = vmul.f32 -1.442695, %v928_v63  ;;  %v4979_v59 = vpop.eup %4978 }
 0x1f9   :  { %5004 = vpow2.f32 %v3780_v56  ;;  %v4981_v54 = vpop.eup %4980 }
 0x1fa   :  { %5006 = vrcp.f32 %v968_v20  ;;  %v4983_v32 = vpop.eup %4982  ;;  %v1011_v28 = vmul.f32 %v4981_v54, %v4979_v59 }
 0x1fb   :  { %5008 = vpow2.f32 %v3779_v8  ;;  %v4985_v6 = vpop.eup %4984 }
 0x1fc   :  { %v4987_v52 = vpop.eup %4986  ;;  %v1010_v18 = vmul.f32 %v4985_v6, %v4983_v32 }
 0x1fd   :  { %v4989_v11 = vpop.eup %4988 }
 0x1fe   :  { %v4991_v12 = vpop.eup %4990  ;;  %v1013_v56 = vmul.f32 %v4989_v11, %v4987_v52 }
 0x1ff   :  { %v4993_v7 = vpop.eup %4992 }
 0x200   :  { %v1012_v10 = vmul.f32 %v4993_v7, %v4991_v12 }
 0x201   :  { %v4995_v16 = vpop.eup %4994 }
 0x202   :  { %v4997_v24 = vpop.eup %4996  ;;  %v1007_v26 = vmul.f32 %v4995_v16, %v5936_v0 }
 0x203   :  { %v4999_v3 = vpop.eup %4998  ;;  %v995_v23 = vadd.f32 1.0, %v4997_v24 }
 0x204   :  { %v5001_v34 = vpop.eup %5000  ;;  %v1015_v35 = vadd.f32 %v1011_v28, %v1007_v26  ;;  %v1006_v36 = vmul.f32 %v4999_v3, %v5940_v40 }
 0x205   :  { %v5003_v47 = vpop.eup %5002  ;;  %5010 = vrcp.f32 %v995_v23  ;;  %v994_v63 = vadd.f32 1.0, %v5001_v34 }
 0x206   :  { %v5005_v51 = vpop.eup %5004  ;;  %5012 = vtanh.f32 %v1015_v35  ;;  %v1014_v20 = vadd.f32 %v1010_v18, %v1006_v36  ;;  %v1009_v8 = vmul.f32 %v5003_v47, %v5944_v38  ;;  %v6099_v59 = vsel %vm6090_vm4, %v1015_v35, %v5936_v0 }
 0x207   :  { %v5007_v54 = vpop.eup %5006  ;;  %5014 = vrcp.f32 %v994_v63  ;;  %v997_v19 = vadd.f32 1.0, %v5005_v51  ;;  %v6216_v63 = vld [vmem:[%s7504_s2 + $0x48] sm:$0xff]  ;;  %v6223_v51 = vld [vmem:[%s7504_s2 + $0x50] sm:$0xff] }
 0x208   :  { %v5009_v16 = vpop.eup %5008  ;;  %5016 = vtanh.f32 %v1014_v20  ;;  %v1017_v32 = vadd.f32 %v1013_v56, %v1009_v8  ;;  %v1008_v6 = vmul.f32 %v5007_v54, %v5948_v48  ;;  %v6105_v52 = vsel %vm6090_vm4, %v1014_v20, %v5940_v40  ;;  %v6209_v56 = vld [vmem:[%s7504_s2 + $0x40] sm:$0xff]  ;;  %v6266_v8 = vld [vmem:[%s7503_s1 + $0x10] sm:$0xff]  ;;  %v6273_v54 = vld [vmem:[%s7503_s1 + $0x18] sm:$0xff] }
 0x209   :  { %5018 = vrcp.f32 %v997_v19  ;;  %v996_v11 = vadd.f32 1.0, %v5009_v16  ;;  %v6240_v20 = vld [vmem:[%s7504_s2] sm:$0xff]  ;;  %7643 = vst [vmem:[#allocation4_spill] sm:$0xff] %v6266_v8  ;;  %7644 = vst [vmem:[#allocation5_spill] sm:$0xff] %v6273_v54  ;;  %v6287_v19 = vld [vmem:[%s7503_s1 + $0x28] sm:$0xff] }
 0x20a   :  { %5020 = vtanh.f32 %v1017_v32  ;;  %v1016_v24 = vadd.f32 %v1012_v10, %v1008_v6  ;;  %v6110_v0 = vsel %vm6090_vm4, %v1017_v32, %v5944_v38  ;;  %v6280_v10 = vld [vmem:[%s7503_s1 + $0x20] sm:$0xff]  ;;  %7646 = vst [vmem:[#allocation7_spill] sm:$0xff] %v6287_v19  ;;  %v6294_v16 = vld [vmem:[%s7503_s1 + $0x30] sm:$0xff]  ;;  %v6301_v32 = vld [vmem:[%s7503_s1 + $0x38] sm:$0xff] }
 0x20b   :  { %5022 = vrcp.f32 %v996_v11  ;;  %7645 = vst [vmem:[#allocation6_spill] sm:$0xff] %v6280_v10  ;;  %7647 = vst [vmem:[#allocation8_spill] sm:$0xff] %v6294_v16  ;;  %v6308_v6 = vld [vmem:[%s7503_s1 + $0x40] sm:$0xff]  ;;  %v6315_v11 = vld [vmem:[%s7503_s1 + $0x48] sm:$0xff] }
 0x20c   :  { %5024 = vtanh.f32 %v1016_v24  ;;  %v6115_v12 = vsel %vm6090_vm4, %v1016_v24, %v5948_v48  ;;  %7648 = vst [vmem:[#allocation9_spill] sm:$0xff] %v6301_v32  ;;  %7649 = vst [vmem:[#allocation10_spill] sm:$0xff] %v6308_v6  ;;  %v6322_v24 = vld [vmem:[%s7503_s1 + $0x50] sm:$0xff] }
 0x20d   :  { %7650 = vst [vmem:[#allocation11_spill] sm:$0xff] %v6315_v11  ;;  %7651 = vst [vmem:[#allocation12_spill] sm:$0xff] %v6322_v24 }
 0x212   :  { %v5011_v7 = vpop.eup %5010 }
 0x213   :  { %v5013_v26 = vpop.eup %5012 }
 0x214   :  { %v5015_v40 = vpop.eup %5014  ;;  %v1023_v28 = vmul.f32 %v5013_v26, %v5011_v7  ;;  %v6329_v7 = vld [vmem:[%s7503_s1 + $0x58] sm:$0xff]  ;;  %v4522_v26 = vpop.f32.mrf.mxu1 }
 0x215   :  { %v5017_v3 = vpop.eup %5016  ;;  %7652 = vst [vmem:[#allocation13_spill] sm:$0xff] %v6329_v7 }
 0x216   :  { %v5019_v23 = vpop.eup %5018  ;;  %v6123_v38 = vsel %vm6090_vm4, %v1023_v28, %v596_v42  ;;  %v1022_v34 = vmul.f32 %v5017_v3, %v5015_v40  ;;  %v6336_v40 = vld [vmem:[%s7503_s1 + $0x60] sm:$0xff]  ;;  %v6343_v28 = vld [vmem:[%s7503_s1 + $0x68] sm:$0xff]  ;;  %v1128_v3 = vpop.f32.mrf.mxu1 }
 0x217   :  { %v5021_v35 = vpop.eup %5020  ;;  %7653 = vst [vmem:[#allocation14_spill] sm:$0xff] %v6336_v40  ;;  %7654 = vst [vmem:[#allocation16_spill] sm:$0xff] %v6343_v28 }
 0x218   :  { %v5023_v36 = vpop.eup %5022  ;;  %v1025_v18 = vmul.f32 %v5021_v35, %v5019_v23  ;;  %v6131_v48 = vsel %vm6090_vm4, %v1022_v34, %v595_v2  ;;  %v6174_v2 = vld [vmem:[%s7504_s2 + $0x18] sm:$0xff]  ;;  %v6350_v23 = vld [vmem:[%s7503_s1 + $0x70] sm:$0xff]  ;;  %v4525_v35 = vpop.f32.mrf.mxu1 }
 0x219   :  { %v5025_v47 = vpop.eup %5024  ;;  %7655 = vst [vmem:[#allocation17_spill] sm:$0xff] %v6350_v23  ;;  %v6357_v34 = vld [vmem:[%s7503_s1 + $0x78] sm:$0xff] }
 0x21a   :  { %v6139_v60 = vsel %vm6090_vm4, %v1025_v18, %v598_v49  ;;  %v1024_v42 = vmul.f32 %v5025_v47, %v5023_v36  ;;  %v6188_v49 = vld [vmem:[%s7504_s2 + $0x28] sm:$0xff]  ;;  %7656 = vst [vmem:[#allocation18_spill] sm:$0xff] %v6357_v34  ;;  %v6364_v36 = vld [vmem:[%s7503_s1] sm:$0xff]  ;;  %v1138_v18 = vpop.f32.mrf.mxu1 }
 0x21b   :  { %4544 = vmatprep.subr.mxu0 %v6139_v60  ;;  %7657 = vst [vmem:[#allocation19_spill] sm:$0xff] %v6364_v36 }
 0x21c   :  { %4545 = vmatpush3.msra.mxu0 %v6139_v60  ;;  %v6149_v41 = vsel %vm6090_vm4, %v1024_v42, %v597_v44  ;;  %v6195_v44 = vld [vmem:[%s7504_s2 + $0x30] sm:$0xff]  ;;  %v4528_v47 = vpop.f32.mrf.mxu1 }
 0x21d   :  { %4546 = vmatprep.subr.mxu0 %v6149_v41 }
 0x21e   :  { %4547 = vmatpush3.msra.mxu0 %v6149_v41  ;;  %v1148_v42 = vpop.f32.mrf.mxu1 }
 0x21f   :  { %4548 = vmatprep.subr.mxu0 %v6123_v38 }
 0x220   :  { %4549 = vmatpush3.msra.mxu0 %v6123_v38 }
 0x221   :  { %4550 = vmatprep.subr.mxu0 %v6131_v48 }
 0x222   :  { %4551 = vmatpush3.msra.mxu0 %v6131_v48 }
 0x223   :  { %4553 = vmatmul.mubr.msk.f32.vlgmr.msra.gmra.mxu0 %vm89_vm0, %v6160_v58 }
 0x224   :  { %4555 = vmatprep.mubr.msk.f32.mxu0 %vm89_vm0, %v6167_v57 }
 0x227   :  { %4556 = vmatmul.mubr.msk.f32.gmra.mxu0 %vm89_vm0, %v6174_v2 }
 0x228   :  { %4558 = vmatprep.mubr.msk.f32.mxu0 %vm89_vm0, %v6181_v45 }
 0x22b   :  { %4559 = vmatmul.mubr.msk.f32.gmra.mxu0 %vm89_vm0, %v6188_v49 }
 0x22c   :  { %4561 = vmatprep.mubr.msk.f32.mxu0 %vm89_vm0, %v6195_v44 }
 0x22f   :  { %4562 = vmatmul.mubr.msk.f32.gmra.mxu0 %vm89_vm0, %v6202_v17 }
 0x230   :  { %4564 = vmatprep.mubr.msk.f32.mxu0 %vm89_vm0, %v6209_v56 }
 0x233   :  { %4565 = vmatmul.mubr.msk.f32.gmra.mxu0 %vm89_vm0, %v6216_v63 }
 0x234   :  { %4567 = vmatprep.mubr.msk.f32.mxu0 %vm89_vm0, %v6223_v51 }
 0x237   :  { %4568 = vmatmul.mubr.msk.f32.gmra.mxu0 %vm89_vm0, %v5693_v25  ;;  %v3832_v25 = vld [vmem:[%s7502_s0 + $0x78] sm:$0xff] }
 0x238   :  { %4570 = vmatprep.mubr.msk.f32.mxu0 %vm89_vm0, %v5705_v27  ;;  %v3831_v27 = vld [vmem:[%s7502_s0 + $0x70] sm:$0xff]  ;;  %4576 = vmatprep.subr.mxu1 %v3832_v25 }
 0x239   :  { %4577 = vmatpush3.msra.mxu1 %v3832_v25  ;;  %v4531_v25 = vpop.f32.mrf.mxu1 }
 0x23a   :  { %4578 = vmatprep.subr.mxu1 %v3831_v27 }
 0x23b   :  { %4571 = vmatmul.mubr.msk.f32.gmra.mxu0 %vm89_vm0, %v5721_v29  ;;  %v3830_v29 = vld [vmem:[%s7502_s0 + $0x68] sm:$0xff]  ;;  %4579 = vmatpush3.msra.mxu1 %v3831_v27  ;;  %v1158_v27 = vpop.f32.mrf.mxu1 }
 0x23c   :  { %4573 = vmatprep.mubr.msk.f32.mxu0 %vm89_vm0, %v5733_v31  ;;  %4580 = vmatprep.subr.mxu1 %v3830_v29  ;;  %v3829_v31 = vld [vmem:[%s7502_s0 + $0x60] sm:$0xff] }
 0x23d   :  { %4581 = vmatpush3.msra.mxu1 %v3830_v29  ;;  %v4534_v29 = vpop.f32.mrf.mxu1 }
 0x23e   :  { %4582 = vmatprep.subr.mxu1 %v3829_v31 }
 0x23f   :  { %4574 = vmatmul.mubr.msk.f32.gmra.mxu0 %vm89_vm0, %v5749_v33  ;;  %4583 = vmatpush3.msra.mxu1 %v3829_v31  ;;  %v6259_v33 = vld [vmem:[%s7503_s1 + $0x8] sm:$0xff]  ;;  %v1134_v31 = vadd.f32 %v4522_v26, %v5827_v43 }
 0x240   :  { %4616 = vmatprep.mubr.msk.f32.mxu0 %vm89_vm0, %v6240_v20  ;;  %4585 = vmatmul.mubr.msk.f32.vlgmr.msra.gmra.mxu1 %vm89_vm0, %v6259_v33 }
 0x241   :  { %4587 = vmatprep.mubr.msk.f32.mxu1 %vm89_vm0, %v6266_v8 }
 0x244   :  { %4588 = vmatmul.mubr.msk.f32.gmra.mxu1 %vm89_vm0, %v6273_v54 }
 0x245   :  { %4590 = vmatprep.mubr.msk.f32.mxu1 %vm89_vm0, %v6280_v10  ;;  %v1154_v10 = vadd.f32 %v4528_v47, %v5850_v61  ;;  %v1159_v61 = vadd.f32 %v1158_v27, %v7629_v9 }
 0x248   :  { %4591 = vmatmul.mubr.msk.f32.gmra.mxu1 %vm89_vm0, %v6287_v19 }
 0x249   :  { %4593 = vmatprep.mubr.msk.f32.mxu1 %vm89_vm0, %v6294_v16 }
 0x24c   :  { %4594 = vmatmul.mubr.msk.f32.gmra.mxu1 %vm89_vm0, %v6301_v32 }
 0x24d   :  { %4596 = vmatprep.mubr.msk.f32.mxu1 %vm89_vm0, %v6308_v6 }
 0x250   :  { %4597 = vmatmul.mubr.msk.f32.gmra.mxu1 %vm89_vm0, %v6315_v11 }
 0x251   :  { %4599 = vmatprep.mubr.msk.f32.mxu1 %vm89_vm0, %v6322_v24 }
 0x254   :  { %4600 = vmatmul.mubr.msk.f32.gmra.mxu1 %vm89_vm0, %v6329_v7 }
 0x255   :  { %4602 = vmatprep.mubr.msk.f32.mxu1 %vm89_vm0, %v6336_v40  ;;  %v1144_v40 = vadd.f32 %v4525_v35, %v5838_v50  ;;  %v1149_v50 = vadd.f32 %v1148_v42, %v5856_v5 }
 0x258   :  { %4603 = vmatmul.mubr.msk.f32.gmra.mxu1 %vm89_vm0, %v6343_v28 }
 0x259   :  { %4605 = vmatprep.mubr.msk.f32.mxu1 %vm89_vm0, %v6350_v23  ;;  %v1168_v23 = vpop.f32.mrf.mxu1 }
 0x25b   :  { %v4537_v32 = vpop.f32.mrf.mxu1 }
 0x25c   :  { %4606 = vmatmul.mubr.msk.f32.gmra.mxu1 %vm89_vm0, %v6357_v34  ;;  %v1129_v34 = vadd.f32 %v1128_v3, %v5832_v46  ;;  %v1184_v42 = vadd.f32 %v4537_v32, %v7632_v30 }
 0x25d   :  { %4648 = vmatprep.mubr.msk.f32.mxu1 %vm89_vm0, %v6364_v36  ;;  %v1139_v36 = vadd.f32 %v1138_v18, %v5844_v55  ;;  %v1178_v46 = vpop.f32.mrf.mxu1 }
 0x2e3   :  { %v4554_v28 = vpop.f32.mrf.mxu0 }
 0x2e4   :  { %v1353_v7 = vadd.f32 %v4554_v28, %v1134_v31 }
 0x2e5   :  { %v1273_v24 = vpop.f32.mrf.mxu0 }
 0x2e6   :  { %v3818_v11 = vmul.f32 -1.442695, %v1353_v7  ;;  %v1352_v6 = vadd.f32 %v1273_v24, %v1129_v34  ;;  %v1164_v24 = vadd.f32 %v4531_v25, %v7628_v1  ;;  %v4540_v34 = vpop.f32.mrf.mxu1  ;;  %v1169_v1 = vadd.f32 %v1168_v23, %v7631_v22 }
 0x2e7   :  { %v4557_v16 = vpop.f32.mrf.mxu0  ;;  %v1194_v23 = vadd.f32 %v4540_v34, %v7634_v53 }
 0x2e8   :  { %5026 = vpow2.f32 %v3818_v11  ;;  %v3817_v19 = vmul.f32 -1.442695, %v1352_v6  ;;  %v1355_v54 = vadd.f32 %v4557_v16, %v1144_v40  ;;  %v1174_v40 = vadd.f32 %v4534_v29, %v7630_v13 }
 0x2e9   :  { %v1283_v43 = vpop.f32.mrf.mxu0  ;;  %v1179_v13 = vadd.f32 %v1178_v46, %v7633_v39 }
 0x2ea   :  { %5028 = vpow2.f32 %v3817_v19  ;;  %v3820_v26 = vmul.f32 -1.442695, %v1355_v54  ;;  %v1354_v8 = vadd.f32 %v1283_v43, %v1139_v36 }
 0x2eb   :  { %v4560_v28 = vpop.f32.mrf.mxu0 }
 0x2ec   :  { %5030 = vpow2.f32 %v3820_v26  ;;  %v3819_v7 = vmul.f32 -1.442695, %v1354_v8  ;;  %v1357_v3 = vadd.f32 %v4560_v28, %v1154_v10  ;;  %v1188_v10 = vpop.f32.mrf.mxu1 }
 0x2ed   :  { %v1293_v55 = vpop.f32.mrf.mxu0  ;;  %v1189_v32 = vadd.f32 %v1188_v10, %v7635_v37 }
 0x2ee   :  { %5032 = vpow2.f32 %v3819_v7  ;;  %v3822_v11 = vmul.f32 -1.442695, %v1357_v3  ;;  %v1356_v6 = vadd.f32 %v1293_v55, %v1149_v50  ;;  %v4543_v29 = vpop.f32.mrf.mxu1 }
 0x2ef   :  { %v4563_v16 = vpop.f32.mrf.mxu0 }
 0x2f0   :  { %5034 = vpow2.f32 %v3822_v11  ;;  %v3821_v54 = vmul.f32 -1.442695, %v1356_v6  ;;  %v1359_v19 = vadd.f32 %v4563_v16, %v1164_v24  ;;  %v1198_v3 = vpop.f32.mrf.mxu1  ;;  %v1204_v6 = vadd.f32 %v4543_v29, %v7636_v14 }
 0x2f1   :  { %v1303_v5 = vpop.f32.mrf.mxu0  ;;  %v1199_v34 = vadd.f32 %v1198_v3, %v7637_v21 }
 0x2f2   :  { %5036 = vpow2.f32 %v3821_v54  ;;  %v3824_v35 = vmul.f32 -1.442695, %v1359_v19  ;;  %v1358_v8 = vadd.f32 %v1303_v5, %v1159_v61 }
 0x2f3   :  { %v4566_v36 = vpop.f32.mrf.mxu0 }
 0x2f4   :  { %5038 = vpow2.f32 %v3824_v35  ;;  %v3823_v18 = vmul.f32 -1.442695, %v1358_v8  ;;  %v1361_v47 = vadd.f32 %v4566_v36, %v1174_v40 }
 0x2f5   :  { %v5027_v9 = vpop.eup %5026  ;;  %v1313_v25 = vpop.f32.mrf.mxu0 }
 0x2f6   :  { %v1381_v27 = vadd.f32 1.0, %v5027_v9  ;;  %5040 = vpow2.f32 %v3823_v18  ;;  %v1360_v31 = vadd.f32 %v1313_v25, %v1169_v1 }
 0x2f7   :  { %v5029_v43 = vpop.eup %5028  ;;  %v4569_v26 = vpop.f32.mrf.mxu0  ;;  %5042 = vtanh.f32 %v1361_v47 }
 0x2f8   :  { %v1380_v50 = vadd.f32 1.0, %v5029_v43  ;;  %v1363_v22 = vadd.f32 %v4569_v26, %v1184_v42  ;;  %5044 = vrcp.f32 %v1381_v27 }
 0x2f9   :  { %v5031_v28 = vpop.eup %5030  ;;  %v1323_v7 = vpop.f32.mrf.mxu0  ;;  %5046 = vtanh.f32 %v1360_v31 }
 0x2fa   :  { %v1383_v24 = vadd.f32 1.0, %v5031_v28  ;;  %v1362_v30 = vadd.f32 %v1323_v7, %v1179_v13  ;;  %5048 = vrcp.f32 %v1380_v50  ;;  %v1465_v13 = vsel %vm1464_vm5, 1, %v7639_v4 }
 0x2fb   :  { %v5033_v55 = vpop.eup %5032  ;;  %v4572_v39 = vpop.f32.mrf.mxu0  ;;  %5050 = vtanh.f32 %v1363_v22  ;;  %v1469_v50 = vrot.slane %v1465_v13, %v7640_v15 }
 0x2fc   :  { %v1382_v46 = vadd.f32 1.0, %v5033_v55  ;;  %v1365_v11 = vadd.f32 %v4572_v39, %v1194_v23  ;;  %5052 = vrcp.f32 %v1383_v24 }
 0x2fd   :  { %v5035_v61 = vpop.eup %5034  ;;  %v1333_v53 = vpop.f32.mrf.mxu0  ;;  %5054 = vtanh.f32 %v1362_v30  ;;  %vm6388_vm6 = vcmp.eq.s32.totalorder %v1469_v50, 1  ;;  %v6487_v50 = vld [vmem:[%s7504_s2 + $0x70] sm:$0xff] }
 0x2fe   :  { %v1405_v16 = vadd.f32 1.0, %v5035_v61  ;;  %v3826_v54 = vmul.f32 -1.442695, %v1365_v11  ;;  %v1364_v19 = vadd.f32 %v1333_v53, %v1189_v32  ;;  %5056 = vrcp.f32 %v1382_v46  ;;  %v7662_v32 = vld [vmem:[#allocation6_spill] sm:$0xff] }
 0x2ff   :  { %v5037_v40 = vpop.eup %5036  ;;  %v4575_v37 = vpop.f32.mrf.mxu0 }
 0x300   :  { %5058 = vrcp.f32 %v1405_v16  ;;  %v1404_v5 = vadd.f32 1.0, %v5037_v40  ;;  %v3825_v35 = vmul.f32 -1.442695, %v1364_v19  ;;  %v1367_v8 = vadd.f32 %v4575_v37, %v1204_v6 }
 0x301   :  { %v5039_v1 = vpop.eup %5038  ;;  %5060 = vpow2.f32 %v3826_v54  ;;  %v1343_v10 = vpop.f32.mrf.mxu0 }
 0x302   :  { %5062 = vrcp.f32 %v1404_v5  ;;  %v1407_v14 = vadd.f32 1.0, %v5039_v1  ;;  %v3828_v36 = vmul.f32 -1.442695, %v1367_v8  ;;  %v1366_v18 = vadd.f32 %v1343_v10, %v1199_v34 }
 0x303   :  { %v5041_v47 = vpop.eup %5040  ;;  %5064 = vpow2.f32 %v3825_v35 }
 0x304   :  { %5066 = vrcp.f32 %v1407_v14  ;;  %v1406_v21 = vadd.f32 1.0, %v5041_v47  ;;  %v3827_v42 = vmul.f32 -1.442695, %v1366_v18  ;;  %v5043_v9 = vpop.eup %5042 }
 0x305   :  { %5068 = vpow2.f32 %v3828_v36  ;;  %v5045_v25 = vpop.eup %5044 }
 0x306   :  { %5070 = vrcp.f32 %v1406_v21  ;;  %v5047_v27 = vpop.eup %5046  ;;  %v1449_v24 = vmul.f32 %v5045_v25, %v5043_v9 }
 0x307   :  { %5072 = vpow2.f32 %v3827_v42  ;;  %v5049_v31 = vpop.eup %5048 }
 0x308   :  { %v5051_v29 = vpop.eup %5050  ;;  %v1448_v46 = vmul.f32 %v5049_v31, %v5047_v27 }
 0x309   :  { %v5053_v43 = vpop.eup %5052 }
 0x30a   :  { %v5055_v26 = vpop.eup %5054  ;;  %v1451_v6 = vmul.f32 %v5053_v43, %v5051_v29 }
 0x30b   :  { %v5057_v22 = vpop.eup %5056 }
 0x30c   :  { %v1450_v19 = vmul.f32 %v5057_v22, %v5055_v26  ;;  %v6494_v22 = vld [vmem:[%s7504_s2 + $0x78] sm:$0xff] }
 0x30d   :  { %v5059_v23 = vpop.eup %5058 }
 0x30e   :  { %v5061_v28 = vpop.eup %5060  ;;  %v1445_v7 = vmul.f32 %v5059_v23, %v6099_v59  ;;  %v3880_v23 = vld [vmem:[%s7502_s0 + $0x98] sm:$0xff] }
 0x30f   :  { %v5063_v30 = vpop.eup %5062  ;;  %v1433_v62 = vadd.f32 1.0, %v5061_v28  ;;  %v3879_v28 = vld [vmem:[%s7502_s0 + $0x90] sm:$0xff]  ;;  %4640 = vmatprep.subr.mxu1 %v3880_v23 }
 0x310   :  { %v5065_v3 = vpop.eup %5064  ;;  %v1453_v55 = vadd.f32 %v1449_v24, %v1445_v7  ;;  %v1444_v39 = vmul.f32 %v5063_v30, %v6105_v52  ;;  %4641 = vmatpush3.msra.mxu1 %v3880_v23  ;;  %v3878_v7 = vld [vmem:[%s7502_s0 + $0x88] sm:$0xff]  ;;  %v3877_v24 = vld [vmem:[%s7502_s0 + $0x80] sm:$0xff] }
 0x311   :  { %v5067_v11 = vpop.eup %5066  ;;  %5074 = vrcp.f32 %v1433_v62  ;;  %4642 = vmatprep.subr.mxu1 %v3879_v28  ;;  %v7660_v30 = vld [vmem:[#allocation4_spill] sm:$0xff]  ;;  %v7661_v62 = vld [vmem:[#allocation5_spill] sm:$0xff] }
 0x312   :  { %v5069_v61 = vpop.eup %5068  ;;  %v1452_v53 = vadd.f32 %v1448_v46, %v1444_v39  ;;  %v1447_v34 = vmul.f32 %v5067_v11, %v6110_v0  ;;  %v6397_v16 = vsel %vm6388_vm6, %v1453_v55, %v6099_v59  ;;  %5076 = vtanh.f32 %v1453_v55  ;;  %4643 = vmatpush3.msra.mxu1 %v3879_v28  ;;  %v7664_v55 = vld [vmem:[#allocation8_spill] sm:$0xff]  ;;  %v7665_v39 = vld [vmem:[#allocation9_spill] sm:$0xff]  ;;  %v7666_v46 = vld [vmem:[#allocation10_spill] sm:$0xff] }
 0x313   :  { %v5071_v54 = vpop.eup %5070  ;;  %v1435_v40 = vadd.f32 1.0, %v5069_v61  ;;  %v1432_v59 = vadd.f32 1.0, %v5065_v3  ;;  %4644 = vmatprep.subr.mxu1 %v3878_v7  ;;  %v7663_v3 = vld [vmem:[#allocation7_spill] sm:$0xff]  ;;  %v7669_v61 = vld [vmem:[#allocation13_spill] sm:$0xff] }
 0x314   :  { %v5073_v37 = vpop.eup %5072  ;;  %5078 = vtanh.f32 %v1452_v53  ;;  %v1455_v5 = vadd.f32 %v1451_v6, %v1447_v34  ;;  %v1446_v35 = vmul.f32 %v5071_v54, %v6115_v12  ;;  %v6403_v8 = vsel %vm6388_vm6, %v1452_v53, %v6105_v52  ;;  %4645 = vmatpush3.msra.mxu1 %v3878_v7  ;;  %v7667_v11 = vld [vmem:[#allocation11_spill] sm:$0xff]  ;;  %v7668_v6 = vld [vmem:[#allocation12_spill] sm:$0xff]  ;;  %v4586_v53 = vpop.f32.mrf.mxu1  ;;  %v7670_v34 = vld [vmem:[#allocation14_spill] sm:$0xff] }
 0x315   :  { %5080 = vrcp.f32 %v1435_v40  ;;  %v1434_v1 = vadd.f32 1.0, %v5073_v37  ;;  %4646 = vmatprep.subr.mxu1 %v3877_v24  ;;  %v7671_v54 = vld [vmem:[#allocation16_spill] sm:$0xff]  ;;  %v7672_v40 = vld [vmem:[#allocation17_spill] sm:$0xff]  ;;  %v7673_v37 = vld [vmem:[#allocation18_spill] sm:$0xff] }
 0x316   :  { %5082 = vtanh.f32 %v1455_v5  ;;  %v1454_v10 = vadd.f32 %v1450_v19, %v1446_v35  ;;  %v6408_v14 = vsel %vm6388_vm6, %v1455_v5, %v6110_v0  ;;  %4647 = vmatpush3.msra.mxu1 %v3877_v24  ;;  %v1566_v19 = vpop.f32.mrf.mxu1  ;;  %v7674_v35 = vld [vmem:[#allocation19_spill] sm:$0xff] }
 0x317   :  { %5084 = vrcp.f32 %v1434_v1  ;;  %4649 = vmatmul.mubr.msk.f32.vlgmr.msra.gmra.mxu1 %vm89_vm0, %v6259_v33 }
 0x318   :  { %5086 = vtanh.f32 %v1454_v10  ;;  %v6413_v36 = vsel %vm6388_vm6, %v1454_v10, %v6115_v12  ;;  %4651 = vmatprep.mubr.msk.f32.mxu1 %vm89_vm0, %v7660_v30  ;;  %v4589_v5 = vpop.f32.mrf.mxu1 }
 0x319   :  { %5088 = vrcp.f32 %v1432_v59 }
 0x31a   :  { %v1576_v1 = vpop.f32.mrf.mxu1 }
 0x31b   :  { %4652 = vmatmul.mubr.msk.f32.gmra.mxu1 %vm89_vm0, %v7661_v62 }
 0x31c   :  { %4654 = vmatprep.mubr.msk.f32.mxu1 %vm89_vm0, %v7662_v32  ;;  %v4592_v10 = vpop.f32.mrf.mxu1 }
 0x31e   :  { %v5075_v52 = vpop.eup %5074  ;;  %v1586_v59 = vpop.f32.mrf.mxu1 }
 0x31f   :  { %v5077_v18 = vpop.eup %5076  ;;  %4655 = vmatmul.mubr.msk.f32.gmra.mxu1 %vm89_vm0, %v7663_v3 }
 0x320   :  { %v1461_v13 = vmul.f32 %v5077_v18, %v5075_v52  ;;  %4657 = vmatprep.mubr.msk.f32.mxu1 %vm89_vm0, %v7664_v55  ;;  %v4595_v52 = vpop.f32.mrf.mxu1 }
 0x321   :  { %v5079_v47 = vpop.eup %5078 }
 0x322   :  { %v5081_v21 = vpop.eup %5080  ;;  %v1596_v18 = vpop.f32.mrf.mxu1 }
 0x323   :  { %v5083_v42 = vpop.eup %5082  ;;  %4658 = vmatmul.mubr.msk.f32.gmra.mxu1 %vm89_vm0, %v7665_v39 }
 0x324   :  { %v5085_v9 = vpop.eup %5084  ;;  %v1463_v25 = vmul.f32 %v5083_v42, %v5081_v21  ;;  %4660 = vmatprep.mubr.msk.f32.mxu1 %vm89_vm0, %v7666_v46  ;;  %v6547_v21 = vld [vmem:[%s7505_s3 + $0x8] sm:$0xff] }
 0x325   :  { %v5087_v27 = vpop.eup %5086  ;;  %7675 = vst [vmem:[#allocation4_spill] sm:$0xff] %v6547_v21  ;;  %v1572_v42 = vadd.f32 %v6547_v21, %v4586_v53  ;;  %v6565_v53 = vld [vmem:[%s7505_s3 + $0x10] sm:$0xff] }
 0x326   :  { %v6418_v0 = vsel %vm6388_vm6, %v1463_v25, %v6139_v60  ;;  %v1462_v31 = vmul.f32 %v5087_v27, %v5085_v9  ;;  %v5089_v29 = vpop.eup %5088  ;;  %v6432_v60 = vsel %vm6388_vm6, %v1461_v13, %v6123_v38  ;;  %v6466_v38 = vld [vmem:[%s7504_s2 + $0x58] sm:$0xff]  ;;  %v6553_v27 = vld [vmem:[%s7505_s3] sm:$0xff]  ;;  %7678 = vst [vmem:[#allocation7_spill] sm:$0xff] %v6565_v53  ;;  %v1577_v21 = vadd.f32 %v6565_v53, %v1576_v1 }
 0x327   :  { %4608 = vmatprep.subr.mxu0 %v6418_v0  ;;  %v1460_v43 = vmul.f32 %v5089_v29, %v5079_v47  ;;  %4661 = vmatmul.mubr.msk.f32.gmra.mxu1 %vm89_vm0, %v7667_v11  ;;  %v4598_v47 = vpop.f32.mrf.mxu1  ;;  %7676 = vst [vmem:[#allocation5_spill] sm:$0xff] %v6553_v27  ;;  %v6559_v13 = vld [vmem:[%s7505_s3 + $0x18] sm:$0xff]  ;;  %v6577_v1 = vld [vmem:[%s7505_s3 + $0x20] sm:$0xff] }
 0x328   :  { %4609 = vmatpush3.msra.mxu0 %v6418_v0  ;;  %v6425_v12 = vsel %vm6388_vm6, %v1462_v31, %v6149_v41  ;;  %v6480_v41 = vld [vmem:[%s7504_s2 + $0x68] sm:$0xff]  ;;  %4663 = vmatprep.mubr.msk.f32.mxu1 %vm89_vm0, %v7668_v6  ;;  %v1567_v31 = vadd.f32 %v6553_v27, %v1566_v19  ;;  %7677 = vst [vmem:[#allocation6_spill] sm:$0xff] %v6559_v13  ;;  %7680 = vst [vmem:[#allocation9_spill] sm:$0xff] %v6577_v1 }
 0x329   :  { %4610 = vmatprep.subr.mxu0 %v6425_v12  ;;  %v6439_v26 = vsel %vm6388_vm6, %v1460_v43, %v6131_v48  ;;  %v6473_v48 = vld [vmem:[%s7504_s2 + $0x60] sm:$0xff]  ;;  %v1606_v9 = vpop.f32.mrf.mxu1  ;;  %v1582_v29 = vadd.f32 %v6559_v13, %v4589_v5 }
 0x32a   :  { %4611 = vmatpush3.msra.mxu0 %v6425_v12 }
 0x32b   :  { %4612 = vmatprep.subr.mxu0 %v6432_v60  ;;  %4664 = vmatmul.mubr.msk.f32.gmra.mxu1 %vm89_vm0, %v7669_v61  ;;  %v4601_v24 = vpop.f32.mrf.mxu1 }
 0x32c   :  { %4613 = vmatpush3.msra.mxu0 %v6432_v60  ;;  %4666 = vmatprep.mubr.msk.f32.mxu1 %vm89_vm0, %v7670_v34 }
 0x32d   :  { %4614 = vmatprep.subr.mxu0 %v6439_v26 }
 0x32e   :  { %4615 = vmatpush3.msra.mxu0 %v6439_v26 }
 0x32f   :  { %4617 = vmatmul.mubr.msk.f32.vlgmr.msra.gmra.mxu0 %vm89_vm0, %v6160_v58  ;;  %4667 = vmatmul.mubr.msk.f32.gmra.mxu1 %vm89_vm0, %v7671_v54 }
 0x330   :  { %4619 = vmatprep.mubr.msk.f32.mxu0 %vm89_vm0, %v6167_v57  ;;  %4669 = vmatprep.mubr.msk.f32.mxu1 %vm89_vm0, %v7672_v40 }
 0x333   :  { %4620 = vmatmul.mubr.msk.f32.gmra.mxu0 %vm89_vm0, %v6174_v2  ;;  %4670 = vmatmul.mubr.msk.f32.gmra.mxu1 %vm89_vm0, %v7673_v37 }
 0x334   :  { %4622 = vmatprep.mubr.msk.f32.mxu0 %vm89_vm0, %v6181_v45  ;;  %4712 = vmatprep.mubr.msk.f32.mxu1 %vm89_vm0, %v7674_v35  ;;  %v6571_v35 = vld [vmem:[%s7505_s3 + $0x28] sm:$0xff] }
 0x335   :  { %7679 = vst [vmem:[#allocation8_spill] sm:$0xff] %v6571_v35  ;;  %v1592_v5 = vadd.f32 %v6571_v35, %v4592_v10  ;;  %v6583_v10 = vld [vmem:[%s7505_s3 + $0x38] sm:$0xff] }
 0x336   :  { %7681 = vst [vmem:[#allocation10_spill] sm:$0xff] %v6583_v10 }
 0x337   :  { %4623 = vmatmul.mubr.msk.f32.gmra.mxu0 %vm89_vm0, %v6188_v49 }
 0x338   :  { %4625 = vmatprep.mubr.msk.f32.mxu0 %vm89_vm0, %v6195_v44 }
 0x33b   :  { %4626 = vmatmul.mubr.msk.f32.gmra.mxu0 %vm89_vm0, %v6202_v17 }
 0x33c   :  { %4628 = vmatprep.mubr.msk.f32.mxu0 %vm89_vm0, %v6209_v56 }
 0x33f   :  { %4629 = vmatmul.mubr.msk.f32.gmra.mxu0 %vm89_vm0, %v6216_v63 }
 0x340   :  { %4631 = vmatprep.mubr.msk.f32.mxu0 %vm89_vm0, %v6223_v51 }
 0x343   :  { %4632 = vmatmul.mubr.msk.f32.gmra.mxu0 %vm89_vm0, %v6466_v38 }
 0x344   :  { %4634 = vmatprep.mubr.msk.f32.mxu0 %vm89_vm0, %v6473_v48 }
 0x347   :  { %4635 = vmatmul.mubr.msk.f32.gmra.mxu0 %vm89_vm0, %v6480_v41 }
 0x348   :  { %4637 = vmatprep.mubr.msk.f32.mxu0 %vm89_vm0, %v6487_v50 }
 0x34b   :  { %4638 = vmatmul.mubr.msk.f32.gmra.mxu0 %vm89_vm0, %v6494_v22 }
 0x34c   :  { %4680 = vmatprep.mubr.msk.f32.mxu0 %vm89_vm0, %v6240_v20 }
 0x3ef   :  { %v4618_v25 = vpop.f32.mrf.mxu0 }
 0x3f0   :  { %v1791_v43 = vadd.f32 %v4618_v25, %v1572_v42 }
 0x3f1   :  { %v1711_v23 = vpop.f32.mrf.mxu0 }
 0x3f2   :  { %v3866_v28 = vmul.f32 -1.442695, %v1791_v43  ;;  %v1790_v7 = vadd.f32 %v1711_v23, %v1567_v31  ;;  %v1616_v23 = vpop.f32.mrf.mxu1 }
 0x3f3   :  { %v4621_v19 = vpop.f32.mrf.mxu0 }
 0x3f4   :  { %5090 = vpow2.f32 %v3866_v28  ;;  %v3865_v27 = vmul.f32 -1.442695, %v1790_v7  ;;  %v1793_v42 = vadd.f32 %v4621_v19, %v1582_v29  ;;  %v1587_v28 = vadd.f32 %v6577_v1, %v1586_v59  ;;  %v6589_v59 = vld [vmem:[%s7505_s3 + $0x30] sm:$0xff] }
 0x3f5   :  { %v1721_v25 = vpop.f32.mrf.mxu0  ;;  %7682 = vst [vmem:[#allocation11_spill] sm:$0xff] %v6589_v59 }
 0x3f6   :  { %5092 = vpow2.f32 %v3865_v27  ;;  %v3868_v31 = vmul.f32 -1.442695, %v1793_v42  ;;  %v1792_v43 = vadd.f32 %v1721_v25, %v1577_v21  ;;  %v1602_v27 = vadd.f32 %v6583_v10, %v4595_v52  ;;  %v4604_v25 = vpop.f32.mrf.mxu1  ;;  %v6595_v52 = vld [vmem:[%s7505_s3 + $0x48] sm:$0xff] }
 0x3f7   :  { %v4624_v7 = vpop.f32.mrf.mxu0  ;;  %7683 = vst [vmem:[#allocation12_spill] sm:$0xff] %v6595_v52 }
 0x3f8   :  { %5094 = vpow2.f32 %v3868_v31  ;;  %v3867_v53 = vmul.f32 -1.442695, %v1792_v43  ;;  %v1795_v29 = vadd.f32 %v4624_v7, %v1592_v5  ;;  %v1597_v31 = vadd.f32 %v6589_v59, %v1596_v18 }
 0x3f9   :  { %v1731_v21 = vpop.f32.mrf.mxu0 }
 0x3fa   :  { %5096 = vpow2.f32 %v3867_v53  ;;  %v3870_v19 = vmul.f32 -1.442695, %v1795_v29  ;;  %v1794_v42 = vadd.f32 %v1731_v21, %v1587_v28  ;;  %v1612_v53 = vadd.f32 %v6595_v52, %v4598_v47  ;;  %v6601_v29 = vld [vmem:[%s7505_s3 + $0x40] sm:$0xff]  ;;  %v1626_v21 = vpop.f32.mrf.mxu1  ;;  %v6607_v47 = vld [vmem:[%s7505_s3 + $0x58] sm:$0xff] }
 0x3fb   :  { %v4627_v43 = vpop.f32.mrf.mxu0  ;;  %7684 = vst [vmem:[#allocation13_spill] sm:$0xff] %v6601_v29  ;;  %v1607_v18 = vadd.f32 %v6601_v29, %v1606_v9  ;;  %7685 = vst [vmem:[#allocation14_spill] sm:$0xff] %v6607_v47  ;;  %v6613_v9 = vld [vmem:[%s7505_s3 + $0x50] sm:$0xff] }
 0x3fc   :  { %5098 = vpow2.f32 %v3870_v19  ;;  %v3869_v1 = vmul.f32 -1.442695, %v1794_v42  ;;  %v1797_v35 = vadd.f32 %v4627_v43, %v1602_v27  ;;  %7686 = vst [vmem:[#allocation16_spill] sm:$0xff] %v6613_v9 }
 0x3fd   :  { %v1741_v5 = vpop.f32.mrf.mxu0 }
 0x3fe   :  { %5100 = vpow2.f32 %v3869_v1  ;;  %v3872_v28 = vmul.f32 -1.442695, %v1797_v35  ;;  %v1796_v7 = vadd.f32 %v1741_v5, %v1597_v31  ;;  %v1622_v35 = vadd.f32 %v6607_v47, %v4601_v24  ;;  %v6619_v24 = vld [vmem:[%s7505_s3 + $0x68] sm:$0xff] }
 0x3ff   :  { %v4630_v27 = vpop.f32.mrf.mxu0  ;;  %7687 = vst [vmem:[#allocation17_spill] sm:$0xff] %v6619_v24 }
 0x400   :  { %5102 = vpow2.f32 %v3872_v28  ;;  %v3871_v19 = vmul.f32 -1.442695, %v1796_v7  ;;  %v1799_v42 = vadd.f32 %v4630_v27, %v1612_v53  ;;  %v1617_v28 = vadd.f32 %v6613_v9, %v1616_v23  ;;  %v4607_v53 = vpop.f32.mrf.mxu1  ;;  %v6625_v23 = vld [vmem:[%s7505_s3 + $0x60] sm:$0xff] }
 0x401   :  { %v5091_v1 = vpop.eup %5090  ;;  %v1751_v31 = vpop.f32.mrf.mxu0  ;;  %7688 = vst [vmem:[#allocation20_spill] sm:$0xff] %v6625_v23 }
 0x402   :  { %v1819_v43 = vadd.f32 1.0, %v5091_v1  ;;  %5104 = vpow2.f32 %v3871_v19  ;;  %v1798_v5 = vadd.f32 %v1751_v31, %v1607_v18  ;;  %v1632_v18 = vadd.f32 %v6619_v24, %v4604_v25 }
 0x403   :  { %v5093_v7 = vpop.eup %5092  ;;  %v4633_v27 = vpop.f32.mrf.mxu0  ;;  %5106 = vtanh.f32 %v1799_v42  ;;  %v1627_v42 = vadd.f32 %v6625_v23, %v1626_v21  ;;  %v6637_v21 = vld [vmem:[%s7505_s3 + $0x70] sm:$0xff] }
 0x404   :  { %v1818_v29 = vadd.f32 1.0, %v5093_v7  ;;  %v1801_v52 = vadd.f32 %v4633_v27, %v1622_v35  ;;  %5108 = vrcp.f32 %v1819_v43  ;;  %v1636_v35 = vpop.f32.mrf.mxu1  ;;  %v6631_v43 = vld [vmem:[%s7505_s3 + $0x78] sm:$0xff] }
 0x405   :  { %v5095_v19 = vpop.eup %5094  ;;  %v1761_v1 = vpop.f32.mrf.mxu0  ;;  %5110 = vtanh.f32 %v1798_v5  ;;  %7689 = vst [vmem:[#allocation21_spill] sm:$0xff] %v6631_v43  ;;  %v1642_v5 = vadd.f32 %v6631_v43, %v4607_v53 }
 0x406   :  { %v1821_v31 = vadd.f32 1.0, %v5095_v19  ;;  %v1800_v47 = vadd.f32 %v1761_v1, %v1617_v28  ;;  %5112 = vrcp.f32 %v1818_v29  ;;  %v1637_v29 = vadd.f32 %v6637_v21, %v1636_v35 }
 0x407   :  { %v5097_v7 = vpop.eup %5096  ;;  %v4636_v27 = vpop.f32.mrf.mxu0  ;;  %5114 = vtanh.f32 %v1801_v52 }
 0x408   :  { %v1820_v9 = vadd.f32 1.0, %v5097_v7  ;;  %v1803_v25 = vadd.f32 %v4636_v27, %v1632_v18  ;;  %5116 = vrcp.f32 %v1821_v31 }
 0x409   :  { %v5099_v28 = vpop.eup %5098  ;;  %v1771_v19 = vpop.f32.mrf.mxu0  ;;  %5118 = vtanh.f32 %v1800_v47 }
 0x40a   :  { %v1843_v1 = vadd.f32 1.0, %v5099_v28  ;;  %v3874_v52 = vmul.f32 -1.442695, %v1803_v25  ;;  %v1802_v18 = vadd.f32 %v1771_v19, %v1627_v42  ;;  %5120 = vrcp.f32 %v1820_v9  ;;  %v6643_v9 = vld [vmem:[%s7506_s4] sm:$0x1] }
 0x40b   :  { %v5101_v7 = vpop.eup %5100  ;;  %v4639_v27 = vpop.f32.mrf.mxu0  ;;  %7690 = vst [vmem:[#allocation22_spill] sm:$0xff] %v6643_v9  ;;  %vm1902_vm7 = vcmp.gt.s32.totalorder %v6643_v9, 3 }
 0x40c   :  { %5122 = vrcp.f32 %v1843_v1  ;;  %v1842_v23 = vadd.f32 1.0, %v5101_v7  ;;  %v3873_v53 = vmul.f32 -1.442695, %v1802_v18  ;;  %v1805_v43 = vadd.f32 %v4639_v27, %v1642_v5  ;;  %v7698_v7 = vld [vmem:[#allocation7_spill] sm:$0xff] }
 0x40d   :  { %v5103_v31 = vpop.eup %5102  ;;  %5124 = vpow2.f32 %v3874_v52  ;;  %v1781_v24 = vpop.f32.mrf.mxu0 }
 0x40e   :  { %5126 = vrcp.f32 %v1842_v23  ;;  %v1845_v59 = vadd.f32 1.0, %v5103_v31  ;;  %v3876_v10 = vmul.f32 -1.442695, %v1805_v43  ;;  %v1804_v13 = vadd.f32 %v1781_v24, %v1637_v29 }
 0x40f   :  { %v5105_v37 = vpop.eup %5104  ;;  %5128 = vpow2.f32 %v3873_v53  ;;  %v1903_v24 = vsel %vm1902_vm7, 1, %v7639_v4 }
 0x410   :  { %5130 = vrcp.f32 %v1845_v59  ;;  %v1844_v47 = vadd.f32 1.0, %v5105_v37  ;;  %v3875_v35 = vmul.f32 -1.442695, %v1804_v13  ;;  %v5107_v42 = vpop.eup %5106  ;;  %v1907_v13 = vrot.slane %v1903_v24, %v7640_v15 }
 0x411   :  { %5132 = vpow2.f32 %v3876_v10  ;;  %v5109_v25 = vpop.eup %5108 }
 0x412   :  { %5134 = vrcp.f32 %v1844_v47  ;;  %v5111_v23 = vpop.eup %5110  ;;  %v1887_v1 = vmul.f32 %v5109_v25, %v5107_v42  ;;  %vm6649_vm8 = vcmp.eq.s32.totalorder %v1907_v13, 1 }
 0x413   :  { %5136 = vpow2.f32 %v3875_v35  ;;  %v5113_v43 = vpop.eup %5112 }
 0x414   :  { %v5115_v5 = vpop.eup %5114  ;;  %v1886_v47 = vmul.f32 %v5113_v43, %v5111_v23 }
 0x415   :  { %v5117_v59 = vpop.eup %5116 }
 0x416   :  { %v5119_v37 = vpop.eup %5118  ;;  %v1889_v4 = vmul.f32 %v5117_v59, %v5115_v5 }
 0x417   :  { %v5121_v10 = vpop.eup %5120 }
 0x418   :  { %v1888_v13 = vmul.f32 %v5121_v10, %v5119_v37 }
 0x419   :  { %v5123_v28 = vpop.eup %5122 }
 0x41a   :  { %v5125_v19 = vpop.eup %5124  ;;  %v1883_v29 = vmul.f32 %v5123_v28, %v6397_v16 }
 0x41b   :  { %v5127_v52 = vpop.eup %5126  ;;  %v1871_v18 = vadd.f32 1.0, %v5125_v19 }
 0x41c   :  { %v5129_v27 = vpop.eup %5128  ;;  %v1891_v53 = vadd.f32 %v1887_v1, %v1883_v29  ;;  %v1882_v31 = vmul.f32 %v5127_v52, %v6403_v8 }
 0x41d   :  { %v5131_v35 = vpop.eup %5130  ;;  %5138 = vrcp.f32 %v1871_v18 }
 0x41e   :  { %v5133_v24 = vpop.eup %5132  ;;  %v1890_v15 = vadd.f32 %v1886_v47, %v1882_v31  ;;  %v1885_v9 = vmul.f32 %v5131_v35, %v6408_v14  ;;  %v6658_v42 = vsel %vm6649_vm8, %v1891_v53, %v6397_v16  ;;  %5140 = vtanh.f32 %v1891_v53 }
 0x41f   :  { %v5135_v25 = vpop.eup %5134  ;;  %v1873_v28 = vadd.f32 1.0, %v5133_v24  ;;  %v1870_v16 = vadd.f32 1.0, %v5129_v27 }
 0x420   :  { %v5137_v19 = vpop.eup %5136  ;;  %5142 = vtanh.f32 %v1890_v15  ;;  %v1893_v29 = vadd.f32 %v1889_v4, %v1885_v9  ;;  %v1884_v23 = vmul.f32 %v5135_v25, %v6413_v36  ;;  %v6664_v43 = vsel %vm6649_vm8, %v1890_v15, %v6403_v8 }
 0x421   :  { %5144 = vrcp.f32 %v1873_v28  ;;  %v1872_v5 = vadd.f32 1.0, %v5137_v19  ;;  %v7699_v19 = vld [vmem:[#allocation8_spill] sm:$0xff] }
 0x422   :  { %5146 = vtanh.f32 %v1893_v29  ;;  %v1892_v59 = vadd.f32 %v1888_v13, %v1884_v23  ;;  %v6669_v37 = vsel %vm6649_vm8, %v1893_v29, %v6408_v14 }
 0x423   :  { %5148 = vrcp.f32 %v1872_v5 }
 0x424   :  { %5150 = vtanh.f32 %v1892_v59  ;;  %v6674_v4 = vsel %vm6649_vm8, %v1892_v59, %v6413_v36 }
 0x425   :  { %5152 = vrcp.f32 %v1870_v16 }
 0x42a   :  { %v5139_v15 = vpop.eup %5138 }
 0x42b   :  { %v5141_v8 = vpop.eup %5140 }
 0x42c   :  { %v1899_v31 = vmul.f32 %v5141_v8, %v5139_v15  ;;  %v7700_v8 = vld [vmem:[#allocation9_spill] sm:$0xff] }
 0x42d   :  { %v5143_v9 = vpop.eup %5142 }
 0x42e   :  { %v5145_v10 = vpop.eup %5144 }
 0x42f   :  { %v5147_v1 = vpop.eup %5146 }
 0x430   :  { %v5149_v52 = vpop.eup %5148  ;;  %v1901_v18 = vmul.f32 %v5147_v1, %v5145_v10 }
 0x431   :  { %v5151_v27 = vpop.eup %5150 }
 0x432   :  { %v6679_v14 = vsel %vm6649_vm8, %v1901_v18, %v6418_v0  ;;  %v1900_v53 = vmul.f32 %v5151_v27, %v5149_v52  ;;  %v5153_v47 = vpop.eup %5152  ;;  %v6693_v0 = vsel %vm6649_vm8, %v1899_v31, %v6432_v60  ;;  %v7701_v52 = vld [vmem:[#allocation10_spill] sm:$0xff] }
 0x433   :  { %4672 = vmatprep.subr.mxu0 %v6679_v14  ;;  %v1898_v35 = vmul.f32 %v5153_v47, %v5143_v9 }
 0x434   :  { %4673 = vmatpush3.msra.mxu0 %v6679_v14  ;;  %v6686_v36 = vsel %vm6649_vm8, %v1900_v53, %v6425_v12 }
 0x435   :  { %4674 = vmatprep.subr.mxu0 %v6686_v36  ;;  %v6700_v24 = vsel %vm6649_vm8, %v1898_v35, %v6439_v26 }
 0x436   :  { %4675 = vmatpush3.msra.mxu0 %v6686_v36 }
 0x437   :  { %4676 = vmatprep.subr.mxu0 %v6693_v0 }
 0x438   :  { %4677 = vmatpush3.msra.mxu0 %v6693_v0 }
 0x439   :  { %4678 = vmatprep.subr.mxu0 %v6700_v24 }
 0x43a   :  { %4679 = vmatpush3.msra.mxu0 %v6700_v24 }
 0x43b   :  { %4681 = vmatmul.mubr.msk.f32.vlgmr.msra.gmra.mxu0 %vm89_vm0, %v6160_v58  ;;  %v3928_v58 = vld [vmem:[%s7502_s0 + $0xb8] sm:$0xff] }
 0x43c   :  { %4683 = vmatprep.mubr.msk.f32.mxu0 %vm89_vm0, %v6167_v57  ;;  %v3927_v57 = vld [vmem:[%s7502_s0 + $0xb0] sm:$0xff]  ;;  %4704 = vmatprep.subr.mxu1 %v3928_v58 }
 0x43d   :  { %4705 = vmatpush3.msra.mxu1 %v3928_v58  ;;  %v7702_v58 = vld [vmem:[#allocation11_spill] sm:$0xff] }
 0x43e   :  { %4706 = vmatprep.subr.mxu1 %v3927_v57 }
 0x43f   :  { %4684 = vmatmul.mubr.msk.f32.gmra.mxu0 %vm89_vm0, %v6174_v2  ;;  %v3926_v2 = vld [vmem:[%s7502_s0 + $0xa8] sm:$0xff]  ;;  %4707 = vmatpush3.msra.mxu1 %v3927_v57 }
 0x440   :  { %4686 = vmatprep.mubr.msk.f32.mxu0 %vm89_vm0, %v6181_v45  ;;  %4708 = vmatprep.subr.mxu1 %v3926_v2  ;;  %v3925_v45 = vld [vmem:[%s7502_s0 + $0xa0] sm:$0xff] }
 0x441   :  { %4709 = vmatpush3.msra.mxu1 %v3926_v2 }
 0x442   :  { %4710 = vmatprep.subr.mxu1 %v3925_v45 }
 0x443   :  { %4687 = vmatmul.mubr.msk.f32.gmra.mxu0 %vm89_vm0, %v6188_v49  ;;  %4711 = vmatpush3.msra.mxu1 %v3925_v45  ;;  %v4650_v49 = vpop.f32.mrf.mxu1 }
 0x444   :  { %4689 = vmatprep.mubr.msk.f32.mxu0 %vm89_vm0, %v6195_v44  ;;  %4713 = vmatmul.mubr.msk.f32.vlgmr.msra.gmra.mxu1 %vm89_vm0, %v6259_v33 }
 0x445   :  { %4715 = vmatprep.mubr.msk.f32.mxu1 %vm89_vm0, %v7660_v30  ;;  %v2004_v44 = vpop.f32.mrf.mxu1  ;;  %v7695_v30 = vld [vmem:[#allocation4_spill] sm:$0xff] }
 0x447   :  { %4690 = vmatmul.mubr.msk.f32.gmra.mxu0 %vm89_vm0, %v6202_v17  ;;  %v7693_v17 = vld [vmem:[#allocation18_spill] sm:$0xff] }
 0x448   :  { %4692 = vmatprep.mubr.msk.f32.mxu0 %vm89_vm0, %v6209_v56  ;;  %4716 = vmatmul.mubr.msk.f32.gmra.mxu1 %vm89_vm0, %v7661_v62  ;;  %v4653_v56 = vpop.f32.mrf.mxu1  ;;  %v2010_v62 = vadd.f32 %v7695_v30, %v4650_v49 }
 0x449   :  { %4718 = vmatprep.mubr.msk.f32.mxu1 %vm89_vm0, %v7662_v32 }
 0x44b   :  { %4693 = vmatmul.mubr.msk.f32.gmra.mxu0 %vm89_vm0, %v6216_v63  ;;  %v7694_v63 = vld [vmem:[#allocation19_spill] sm:$0xff] }
 0x44c   :  { %4695 = vmatprep.mubr.msk.f32.mxu0 %vm89_vm0, %v6223_v51  ;;  %4719 = vmatmul.mubr.msk.f32.gmra.mxu1 %vm89_vm0, %v7663_v3  ;;  %v2014_v51 = vpop.f32.mrf.mxu1 }
 0x44d   :  { %4721 = vmatprep.mubr.msk.f32.mxu1 %vm89_vm0, %v7664_v55  ;;  %v7696_v55 = vld [vmem:[#allocation5_spill] sm:$0xff]  ;;  %v2015_v25 = vadd.f32 %v7698_v7, %v2014_v51 }
 0x44f   :  { %4696 = vmatmul.mubr.msk.f32.gmra.mxu0 %vm89_vm0, %v6466_v38 }
 0x450   :  { %4698 = vmatprep.mubr.msk.f32.mxu0 %vm89_vm0, %v6473_v48  ;;  %4722 = vmatmul.mubr.msk.f32.gmra.mxu1 %vm89_vm0, %v7665_v39  ;;  %v2005_v39 = vadd.f32 %v7696_v55, %v2004_v44  ;;  %v7703_v44 = vld [vmem:[#allocation12_spill] sm:$0xff] }
 0x451   :  { %4724 = vmatprep.mubr.msk.f32.mxu1 %vm89_vm0, %v7666_v46  ;;  %v7697_v46 = vld [vmem:[#allocation6_spill] sm:$0xff] }
 0x453   :  { %4699 = vmatmul.mubr.msk.f32.gmra.mxu0 %vm89_vm0, %v6480_v41 }
 0x454   :  { %4701 = vmatprep.mubr.msk.f32.mxu0 %vm89_vm0, %v6487_v50  ;;  %4725 = vmatmul.mubr.msk.f32.gmra.mxu1 %vm89_vm0, %v7667_v11  ;;  %v2020_v11 = vadd.f32 %v7697_v46, %v4653_v56 }
 0x455   :  { %4727 = vmatprep.mubr.msk.f32.mxu1 %vm89_vm0, %v7668_v6 }
 0x457   :  { %4702 = vmatmul.mubr.msk.f32.gmra.mxu0 %vm89_vm0, %v6494_v22 }
 0x458   :  { %4744 = vmatprep.mubr.msk.f32.mxu0 %vm89_vm0, %v6240_v20  ;;  %4728 = vmatmul.mubr.msk.f32.gmra.mxu1 %vm89_vm0, %v7669_v61  ;;  %v4656_v20 = vpop.f32.mrf.mxu1 }
 0x459   :  { %4730 = vmatprep.mubr.msk.f32.mxu1 %vm89_vm0, %v7670_v34  ;;  %v2030_v29 = vadd.f32 %v7699_v19, %v4656_v20  ;;  %v7704_v20 = vld [vmem:[#allocation13_spill] sm:$0xff] }
 0x45a   :  { %v2024_v33 = vpop.f32.mrf.mxu1 }
 0x45b   :  { %v2025_v9 = vadd.f32 %v7700_v8, %v2024_v33 }
 0x45c   :  { %4731 = vmatmul.mubr.msk.f32.gmra.mxu1 %vm89_vm0, %v7671_v54  ;;  %v4659_v12 = vpop.f32.mrf.mxu1 }
 0x45d   :  { %4733 = vmatprep.mubr.msk.f32.mxu1 %vm89_vm0, %v7672_v40  ;;  %v2040_v18 = vadd.f32 %v7701_v52, %v4659_v12 }
 0x45e   :  { %v2034_v60 = vpop.f32.mrf.mxu1 }
 0x45f   :  { %v2035_v57 = vadd.f32 %v7702_v58, %v2034_v60 }
 0x460   :  { %4734 = vmatmul.mubr.msk.f32.gmra.mxu1 %vm89_vm0, %v7693_v17  ;;  %v4662_v26 = vpop.f32.mrf.mxu1 }
 0x461   :  { %4776 = vmatprep.mubr.msk.f32.mxu1 %vm89_vm0, %v7694_v63  ;;  %v2050_v17 = vadd.f32 %v7703_v44, %v4662_v26 }
 0x462   :  { %v2044_v32 = vpop.f32.mrf.mxu1 }
 0x463   :  { %v2045_v33 = vadd.f32 %v7704_v20, %v2044_v32 }
 0x464   :  { %v4665_v40 = vpop.f32.mrf.mxu1 }
 0x466   :  { %v2054_v15 = vpop.f32.mrf.mxu1 }
 0x468   :  { %v4668_v35 = vpop.f32.mrf.mxu1 }
 0x46a   :  { %v2064_v12 = vpop.f32.mrf.mxu1 }
 0x4fb   :  { %v4682_v3 = vpop.f32.mrf.mxu0 }
 0x4fc   :  { %v2229_v6 = vadd.f32 %v4682_v3, %v2010_v62 }
 0x4fd   :  { %v2149_v61 = vpop.f32.mrf.mxu0 }
 0x4fe   :  { %v3914_v34 = vmul.f32 -1.442695, %v2229_v6  ;;  %v2228_v54 = vadd.f32 %v2149_v61, %v2005_v39 }
 0x4ff   :  { %v4685_v13 = vpop.f32.mrf.mxu0 }
 0x500   :  { %5154 = vpow2.f32 %v3914_v34  ;;  %v3913_v28 = vmul.f32 -1.442695, %v2228_v54  ;;  %v2231_v23 = vadd.f32 %v4685_v13, %v2020_v11  ;;  %v7705_v11 = vld [vmem:[#allocation14_spill] sm:$0xff]  ;;  %v4671_v13 = vpop.f32.mrf.mxu1 }
 0x501   :  { %v2159_v5 = vpop.f32.mrf.mxu0  ;;  %v2060_v6 = vadd.f32 %v7705_v11, %v4665_v40 }
 0x502   :  { %5156 = vpow2.f32 %v3913_v28  ;;  %v3916_v59 = vmul.f32 -1.442695, %v2231_v23  ;;  %v2230_v16 = vadd.f32 %v2159_v5, %v2015_v25  ;;  %v7706_v25 = vld [vmem:[#allocation16_spill] sm:$0xff]  ;;  %v7707_v5 = vld [vmem:[#allocation17_spill] sm:$0xff] }
 0x503   :  { %v4688_v10 = vpop.f32.mrf.mxu0  ;;  %v2055_v26 = vadd.f32 %v7706_v25, %v2054_v15 }
 0x504   :  { %5158 = vpow2.f32 %v3916_v59  ;;  %v3915_v1 = vmul.f32 -1.442695, %v2230_v16  ;;  %v2233_v27 = vadd.f32 %v4688_v10, %v2030_v29  ;;  %v2070_v59 = vadd.f32 %v7707_v5, %v4668_v35 }
 0x505   :  { %v2169_v53 = vpop.f32.mrf.mxu0 }
 0x506   :  { %5160 = vpow2.f32 %v3915_v1  ;;  %v3918_v31 = vmul.f32 -1.442695, %v2233_v27  ;;  %v2232_v47 = vadd.f32 %v2169_v53, %v2025_v9  ;;  %v7708_v1 = vld [vmem:[#allocation20_spill] sm:$0xff]  ;;  %v2074_v27 = vpop.f32.mrf.mxu1 }
 0x507   :  { %v4691_v2 = vpop.f32.mrf.mxu0 }
 0x508   :  { %5162 = vpow2.f32 %v3918_v31  ;;  %v3917_v45 = vmul.f32 -1.442695, %v2232_v47  ;;  %v2235_v49 = vadd.f32 %v4691_v2, %v2040_v18  ;;  %v2065_v18 = vadd.f32 %v7708_v1, %v2064_v12 }
 0x509   :  { %v2179_v56 = vpop.f32.mrf.mxu0 }
 0x50a   :  { %5164 = vpow2.f32 %v3917_v45  ;;  %v3920_v63 = vmul.f32 -1.442695, %v2235_v49  ;;  %v2234_v51 = vadd.f32 %v2179_v56, %v2035_v57  ;;  %v7709_v57 = vld [vmem:[#allocation21_spill] sm:$0xff]  ;;  %v2075_v49 = vadd.f32 %v6637_v21, %v2074_v27  ;;  %v7712_v27 = vld [vmem:[#allocation15_spill] sm:$0xff] }
 0x50b   :  { %v4694_v62 = vpop.f32.mrf.mxu0  ;;  %v2080_v2 = vadd.f32 %v7709_v57, %v4671_v13 }
 0x50c   :  { %5166 = vpow2.f32 %v3920_v63  ;;  %v3919_v3 = vmul.f32 -1.442695, %v2234_v51  ;;  %v2237_v39 = vadd.f32 %v4694_v62, %v2050_v17 }
 0x50d   :  { %v5155_v60 = vpop.eup %5154  ;;  %v2189_v61 = vpop.f32.mrf.mxu0 }
 0x50e   :  { %v2257_v34 = vadd.f32 1.0, %v5155_v60  ;;  %5168 = vpow2.f32 %v3919_v3  ;;  %v2236_v54 = vadd.f32 %v2189_v61, %v2045_v33 }
 0x50f   :  { %v5157_v28 = vpop.eup %5156  ;;  %v4697_v29 = vpop.f32.mrf.mxu0  ;;  %5170 = vtanh.f32 %v2237_v39 }
 0x510   :  { %v2256_v23 = vadd.f32 1.0, %v5157_v28  ;;  %v2239_v32 = vadd.f32 %v4697_v29, %v2060_v6  ;;  %5172 = vrcp.f32 %v2257_v34  ;;  %v7710_v29 = vld [vmem:[#allocation22_spill] sm:$0xff] }
 0x511   :  { %v5159_v16 = vpop.eup %5158  ;;  %v2199_v9 = vpop.f32.mrf.mxu0  ;;  %5174 = vtanh.f32 %v2236_v54  ;;  %vm2340_vm9 = vcmp.gt.s32.totalorder %v7710_v29, 4  ;;  %vm2778_vm11 = vcmp.gt.s32.totalorder %v7710_v29, 5 }
 0x512   :  { %v2259_v10 = vadd.f32 1.0, %v5159_v16  ;;  %v2238_v40 = vadd.f32 %v2199_v9, %v2055_v26  ;;  %5176 = vrcp.f32 %v2256_v23  ;;  %v7711_v16 = vmov 0  }
 0x513   :  { %v5161_v53 = vpop.eup %5160  ;;  %v4700_v15 = vpop.f32.mrf.mxu0  ;;  %5178 = vtanh.f32 %v2239_v32  ;;  %v2341_v9 = vsel %vm2340_vm9, 1, %v7711_v16 }
 0x514   :  { %v2258_v31 = vadd.f32 1.0, %v5161_v53  ;;  %v2241_v47 = vadd.f32 %v4700_v15, %v2070_v59  ;;  %5180 = vrcp.f32 %v2259_v10  ;;  %v2345_v53 = vrot.slane %v2341_v9, %v7712_v27 }
 0x515   :  { %v5163_v45 = vpop.eup %5162  ;;  %v2209_v35 = vpop.f32.mrf.mxu0  ;;  %5182 = vtanh.f32 %v2238_v40 }
 0x516   :  { %v2281_v17 = vadd.f32 1.0, %v5163_v45  ;;  %v3922_v56 = vmul.f32 -1.442695, %v2241_v47  ;;  %v2240_v63 = vadd.f32 %v2209_v35, %v2065_v18  ;;  %5184 = vrcp.f32 %v2258_v31 }
 0x517   :  { %v5165_v51 = vpop.eup %5164  ;;  %v4703_v33 = vpop.f32.mrf.mxu0  ;;  %vm6800_vm10 = vcmp.eq.s32.totalorder %v2345_v53, 1 }
 0x518   :  { %5186 = vrcp.f32 %v2281_v17  ;;  %v2280_v12 = vadd.f32 1.0, %v5165_v51  ;;  %v3921_v62 = vmul.f32 -1.442695, %v2240_v63  ;;  %v2243_v3 = vadd.f32 %v4703_v33, %v2080_v2  ;;  %v6879_v17 = vld [vmem:[%s7504_s2 + $0x20] sm:$0xff] }
 0x519   :  { %v5167_v39 = vpop.eup %5166  ;;  %5188 = vpow2.f32 %v3922_v56  ;;  %v2219_v6 = vpop.f32.mrf.mxu0 }
 0x51a   :  { %5190 = vrcp.f32 %v2280_v12  ;;  %v2283_v60 = vadd.f32 1.0, %v5167_v39  ;;  %v3924_v61 = vmul.f32 -1.442695, %v2243_v3  ;;  %v2242_v34 = vadd.f32 %v2219_v6, %v2075_v49 }
 0x51b   :  { %v5169_v54 = vpop.eup %5168  ;;  %5192 = vpow2.f32 %v3921_v62 }
 0x51c   :  { %5194 = vrcp.f32 %v2283_v60  ;;  %v2282_v26 = vadd.f32 1.0, %v5169_v54  ;;  %v3923_v13 = vmul.f32 -1.442695, %v2242_v34  ;;  %v5171_v28 = vpop.eup %5170 }
 0x51d   :  { %5196 = vpow2.f32 %v3924_v61  ;;  %v5173_v23 = vpop.eup %5172 }
 0x51e   :  { %5198 = vrcp.f32 %v2282_v26  ;;  %v5175_v32 = vpop.eup %5174  ;;  %v2325_v45 = vmul.f32 %v5173_v23, %v5171_v28 }
 0x51f   :  { %5200 = vpow2.f32 %v3923_v13  ;;  %v5177_v59 = vpop.eup %5176 }
 0x520   :  { %v5179_v10 = vpop.eup %5178  ;;  %v2324_v33 = vmul.f32 %v5177_v59, %v5175_v32 }
 0x521   :  { %v5181_v40 = vpop.eup %5180 }
 0x522   :  { %v5183_v18 = vpop.eup %5182  ;;  %v2327_v62 = vmul.f32 %v5181_v40, %v5179_v10 }
 0x523   :  { %v5185_v15 = vpop.eup %5184 }
 0x524   :  { %v2326_v34 = vmul.f32 %v5185_v15, %v5183_v18 }
 0x525   :  { %v5187_v31 = vpop.eup %5186 }
 0x526   :  { %v5189_v47 = vpop.eup %5188  ;;  %v2321_v2 = vmul.f32 %v5187_v31, %v6658_v42 }
 0x527   :  { %v5191_v35 = vpop.eup %5190  ;;  %v2309_v49 = vadd.f32 1.0, %v5189_v47 }
 0x528   :  { %v5193_v56 = vpop.eup %5192  ;;  %v2329_v63 = vadd.f32 %v2325_v45, %v2321_v2  ;;  %v2320_v51 = vmul.f32 %v5191_v35, %v6664_v43 }
 0x529   :  { %v5195_v12 = vpop.eup %5194  ;;  %5202 = vrcp.f32 %v2309_v49 }
 0x52a   :  { %v5197_v3 = vpop.eup %5196  ;;  %v2328_v39 = vadd.f32 %v2324_v33, %v2320_v51  ;;  %v2323_v6 = vmul.f32 %v5195_v12, %v6669_v37  ;;  %v6809_v60 = vsel %vm6800_vm10, %v2329_v63, %v6658_v42  ;;  %5204 = vtanh.f32 %v2329_v63  ;;  %v6886_v51 = vld [vmem:[%s7504_s2 + $0x28] sm:$0xff]  ;;  %v6893_v33 = vld [vmem:[%s7504_s2 + $0x30] sm:$0xff]  ;;  %v6900_v12 = vld [vmem:[%s7504_s2 + $0x38] sm:$0xff] }
 0x52b   :  { %v5199_v61 = vpop.eup %5198  ;;  %v2311_v54 = vadd.f32 1.0, %v5197_v3  ;;  %v2308_v42 = vadd.f32 1.0, %v5193_v56  ;;  %v6914_v3 = vld [vmem:[%s7504_s2 + $0x48] sm:$0xff] }
 0x52c   :  { %v5201_v26 = vpop.eup %5200  ;;  %5206 = vtanh.f32 %v2328_v39  ;;  %v2331_v13 = vadd.f32 %v2327_v62, %v2323_v6  ;;  %v2322_v28 = vmul.f32 %v5199_v61, %v6674_v4  ;;  %v6815_v23 = vsel %vm6800_vm10, %v2328_v39, %v6664_v43  ;;  %v6907_v62 = vld [vmem:[%s7504_s2 + $0x40] sm:$0xff]  ;;  %v6921_v39 = vld [vmem:[%s7504_s2 + $0x50] sm:$0xff] }
 0x52d   :  { %5208 = vrcp.f32 %v2311_v54  ;;  %v2310_v32 = vadd.f32 1.0, %v5201_v26  ;;  %v6938_v6 = vld [vmem:[%s7504_s2] sm:$0xff]  ;;  %v6964_v61 = vld [vmem:[%s7503_s1 + $0x10] sm:$0xff]  ;;  %v6985_v26 = vld [vmem:[%s7503_s1 + $0x28] sm:$0xff] }
 0x52e   :  { %5210 = vtanh.f32 %v2331_v13  ;;  %v2330_v59 = vadd.f32 %v2326_v34, %v2322_v28  ;;  %v6820_v9 = vsel %vm6800_vm10, %v2331_v13, %v6669_v37  ;;  %7715 = vst [vmem:[#allocation18_spill] sm:$0xff] %v6964_v61  ;;  %v6971_v34 = vld [vmem:[%s7503_s1 + $0x18] sm:$0xff]  ;;  %v6978_v54 = vld [vmem:[%s7503_s1 + $0x20] sm:$0xff]  ;;  %7718 = vst [vmem:[#allocation5_spill] sm:$0xff] %v6985_v26 }
 0x52f   :  { %5212 = vrcp.f32 %v2310_v32  ;;  %7716 = vst [vmem:[#allocation19_spill] sm:$0xff] %v6971_v34  ;;  %7717 = vst [vmem:[#allocation4_spill] sm:$0xff] %v6978_v54  ;;  %v6992_v13 = vld [vmem:[%s7503_s1 + $0x30] sm:$0xff]  ;;  %v6999_v28 = vld [vmem:[%s7503_s1 + $0x38] sm:$0xff] }
 0x530   :  { %5214 = vtanh.f32 %v2330_v59  ;;  %v6825_v10 = vsel %vm6800_vm10, %v2330_v59, %v6674_v4  ;;  %7719 = vst [vmem:[#allocation6_spill] sm:$0xff] %v6992_v13  ;;  %7720 = vst [vmem:[#allocation7_spill] sm:$0xff] %v6999_v28  ;;  %v7006_v32 = vld [vmem:[%s7503_s1 + $0x40] sm:$0xff]  ;;  %v7013_v59 = vld [vmem:[%s7503_s1 + $0x48] sm:$0xff] }
 0x531   :  { %5216 = vrcp.f32 %v2308_v42  ;;  %7721 = vst [vmem:[#allocation8_spill] sm:$0xff] %v7006_v32  ;;  %7722 = vst [vmem:[#allocation9_spill] sm:$0xff] %v7013_v59  ;;  %v7020_v42 = vld [vmem:[%s7503_s1 + $0x50] sm:$0xff] }
 0x532   :  { %7723 = vst [vmem:[#allocation10_spill] sm:$0xff] %v7020_v42 }
 0x536   :  { %v5203_v43 = vpop.eup %5202 }
 0x537   :  { %v5205_v40 = vpop.eup %5204 }
 0x538   :  { %v2337_v35 = vmul.f32 %v5205_v40, %v5203_v43  ;;  %v7027_v43 = vld [vmem:[%s7503_s1 + $0x58] sm:$0xff]  ;;  %v4714_v40 = vpop.f32.mrf.mxu1 }
 0x539   :  { %v5207_v18 = vpop.eup %5206  ;;  %7724 = vst [vmem:[#allocation11_spill] sm:$0xff] %v7027_v43 }
 0x53a   :  { %v5209_v53 = vpop.eup %5208 }
 0x53b   :  { %v5211_v15 = vpop.eup %5210 }
 0x53c   :  { %v5213_v31 = vpop.eup %5212  ;;  %v2339_v47 = vmul.f32 %v5211_v15, %v5209_v53  ;;  %v7041_v53 = vld [vmem:[%s7503_s1 + $0x68] sm:$0xff]  ;;  %v2442_v15 = vpop.f32.mrf.mxu1 }
 0x53d   :  { %v5215_v2 = vpop.eup %5214  ;;  %7726 = vst [vmem:[#allocation13_spill] sm:$0xff] %v7041_v53 }
 0x53e   :  { %v6830_v37 = vsel %vm6800_vm10, %v2339_v47, %v6679_v14  ;;  %v2338_v45 = vmul.f32 %v5215_v2, %v5213_v31  ;;  %v5217_v49 = vpop.eup %5216  ;;  %v6844_v14 = vsel %vm6800_vm10, %v2337_v35, %v6693_v0  ;;  %v6865_v0 = vld [vmem:[%s7504_s2 + $0x10] sm:$0xff]  ;;  %v7055_v47 = vld [vmem:[%s7503_s1 + $0x78] sm:$0xff]  ;;  %v4717_v2 = vpop.f32.mrf.mxu1 }
 0x53f   :  { %4736 = vmatprep.subr.mxu0 %v6830_v37  ;;  %v2336_v56 = vmul.f32 %v5217_v49, %v5207_v18  ;;  %v7034_v18 = vld [vmem:[%s7503_s1 + $0x60] sm:$0xff]  ;;  %v7048_v31 = vld [vmem:[%s7503_s1 + $0x70] sm:$0xff]  ;;  %7728 = vst [vmem:[#allocation16_spill] sm:$0xff] %v7055_v47 }
 0x540   :  { %4737 = vmatpush3.msra.mxu0 %v6830_v37  ;;  %v6837_v4 = vsel %vm6800_vm10, %v2338_v45, %v6686_v36  ;;  %v6858_v36 = vld [vmem:[%s7504_s2 + $0x8] sm:$0xff]  ;;  %7725 = vst [vmem:[#allocation12_spill] sm:$0xff] %v7034_v18  ;;  %7727 = vst [vmem:[#allocation14_spill] sm:$0xff] %v7048_v31  ;;  %v5485_v45 = vld [vmem:[%s7503_s1] sm:$0xff]  ;;  %v2452_v35 = vpop.f32.mrf.mxu1 }
 0x541   :  { %4738 = vmatprep.subr.mxu0 %v6837_v4  ;;  %v6851_v63 = vsel %vm6800_vm10, %v2336_v56, %v6700_v24  ;;  %v6872_v24 = vld [vmem:[%s7504_s2 + $0x18] sm:$0xff] }
 0x542   :  { %4739 = vmatpush3.msra.mxu0 %v6837_v4  ;;  %v4720_v49 = vpop.f32.mrf.mxu1 }
 0x543   :  { %4740 = vmatprep.subr.mxu0 %v6844_v14 }
 0x544   :  { %4741 = vmatpush3.msra.mxu0 %v6844_v14  ;;  %v2462_v56 = vpop.f32.mrf.mxu1 }
 0x545   :  { %4742 = vmatprep.subr.mxu0 %v6851_v63 }
 0x546   :  { %4743 = vmatpush3.msra.mxu0 %v6851_v63 }
 0x547   :  { %4745 = vmatmul.mubr.msk.f32.vlgmr.msra.gmra.mxu0 %vm89_vm0, %v6858_v36 }
 0x548   :  { %4747 = vmatprep.mubr.msk.f32.mxu0 %vm89_vm0, %v6865_v0 }
 0x54b   :  { %4748 = vmatmul.mubr.msk.f32.gmra.mxu0 %vm89_vm0, %v6872_v24 }
 0x54c   :  { %4750 = vmatprep.mubr.msk.f32.mxu0 %vm89_vm0, %v6879_v17 }
 0x54f   :  { %4751 = vmatmul.mubr.msk.f32.gmra.mxu0 %vm89_vm0, %v6886_v51 }
 0x550   :  { %4753 = vmatprep.mubr.msk.f32.mxu0 %vm89_vm0, %v6893_v33 }
 0x553   :  { %4754 = vmatmul.mubr.msk.f32.gmra.mxu0 %vm89_vm0, %v6900_v12 }
 0x554   :  { %4756 = vmatprep.mubr.msk.f32.mxu0 %vm89_vm0, %v6907_v62 }
 0x557   :  { %4757 = vmatmul.mubr.msk.f32.gmra.mxu0 %vm89_vm0, %v6914_v3 }
 0x558   :  { %4759 = vmatprep.mubr.msk.f32.mxu0 %vm89_vm0, %v6921_v39 }
 0x55b   :  { %4760 = vmatmul.mubr.msk.f32.gmra.mxu0 %vm89_vm0, %v6466_v38  ;;  %v3976_v38 = vld [vmem:[%s7502_s0 + $0xd8] sm:$0xff] }
 0x55c   :  { %4762 = vmatprep.mubr.msk.f32.mxu0 %vm89_vm0, %v6473_v48  ;;  %v3975_v48 = vld [vmem:[%s7502_s0 + $0xd0] sm:$0xff]  ;;  %4768 = vmatprep.subr.mxu1 %v3976_v38 }
 0x55d   :  { %4769 = vmatpush3.msra.mxu1 %v3976_v38  ;;  %v4723_v38 = vpop.f32.mrf.mxu1 }
 0x55e   :  { %4770 = vmatprep.subr.mxu1 %v3975_v48 }
 0x55f   :  { %4763 = vmatmul.mubr.msk.f32.gmra.mxu0 %vm89_vm0, %v6480_v41  ;;  %v3974_v41 = vld [vmem:[%s7502_s0 + $0xc8] sm:$0xff]  ;;  %4771 = vmatpush3.msra.mxu1 %v3975_v48  ;;  %v2472_v48 = vpop.f32.mrf.mxu1 }
 0x560   :  { %4765 = vmatprep.mubr.msk.f32.mxu0 %vm89_vm0, %v6487_v50  ;;  %4772 = vmatprep.subr.mxu1 %v3974_v41  ;;  %v3973_v50 = vld [vmem:[%s7502_s0 + $0xc0] sm:$0xff] }
 0x561   :  { %4773 = vmatpush3.msra.mxu1 %v3974_v41  ;;  %v4726_v41 = vpop.f32.mrf.mxu1 }
 0x562   :  { %4774 = vmatprep.subr.mxu1 %v3973_v50 }
 0x563   :  { %4766 = vmatmul.mubr.msk.f32.gmra.mxu0 %vm89_vm0, %v6494_v22  ;;  %4775 = vmatpush3.msra.mxu1 %v3973_v50  ;;  %v6957_v22 = vld [vmem:[%s7503_s1 + $0x8] sm:$0xff]  ;;  %v2448_v50 = vadd.f32 %v7695_v30, %v4714_v40 }
 0x564   :  { %4808 = vmatprep.mubr.msk.f32.mxu0 %vm89_vm0, %v6938_v6  ;;  %4777 = vmatmul.mubr.msk.f32.vlgmr.msra.gmra.mxu1 %vm89_vm0, %v6957_v22 }
 0x565   :  { %4779 = vmatprep.mubr.msk.f32.mxu1 %vm89_vm0, %v6964_v61 }
 0x568   :  { %4780 = vmatmul.mubr.msk.f32.gmra.mxu1 %vm89_vm0, %v6971_v34 }
 0x569   :  { %4782 = vmatprep.mubr.msk.f32.mxu1 %vm89_vm0, %v6978_v54  ;;  %v2468_v54 = vadd.f32 %v7699_v19, %v4720_v49  ;;  %v2473_v19 = vadd.f32 %v7702_v58, %v2472_v48 }
 0x56c   :  { %4783 = vmatmul.mubr.msk.f32.gmra.mxu1 %vm89_vm0, %v6985_v26 }
 0x56d   :  { %4785 = vmatprep.mubr.msk.f32.mxu1 %vm89_vm0, %v6992_v13 }
 0x570   :  { %4786 = vmatmul.mubr.msk.f32.gmra.mxu1 %vm89_vm0, %v6999_v28 }
 0x571   :  { %4788 = vmatprep.mubr.msk.f32.mxu1 %vm89_vm0, %v7006_v32 }
 0x574   :  { %4789 = vmatmul.mubr.msk.f32.gmra.mxu1 %vm89_vm0, %v7013_v59 }
 0x575   :  { %4791 = vmatprep.mubr.msk.f32.mxu1 %vm89_vm0, %v7020_v42 }
 0x578   :  { %4792 = vmatmul.mubr.msk.f32.gmra.mxu1 %vm89_vm0, %v7027_v43 }
 0x579   :  { %4794 = vmatprep.mubr.msk.f32.mxu1 %vm89_vm0, %v7034_v18  ;;  %v2443_v18 = vadd.f32 %v7696_v55, %v2442_v15 }
 0x57c   :  { %4795 = vmatmul.mubr.msk.f32.gmra.mxu1 %vm89_vm0, %v7041_v53 }
 0x57d   :  { %4797 = vmatprep.mubr.msk.f32.mxu1 %vm89_vm0, %v7048_v31  ;;  %v2482_v31 = vpop.f32.mrf.mxu1 }
 0x57f   :  { %v4729_v28 = vpop.f32.mrf.mxu1 }
 0x580   :  { %4798 = vmatmul.mubr.msk.f32.gmra.mxu1 %vm89_vm0, %v7055_v47  ;;  %v2458_v47 = vadd.f32 %v7697_v46, %v4717_v2  ;;  %v2463_v46 = vadd.f32 %v7700_v8, %v2462_v56 }
 0x581   :  { %4840 = vmatprep.mubr.msk.f32.mxu1 %vm89_vm0, %v5485_v45  ;;  %v2453_v45 = vadd.f32 %v7698_v7, %v2452_v35  ;;  %v2492_v55 = vpop.f32.mrf.mxu1 }
 0x583   :  { %v4732_v15 = vpop.f32.mrf.mxu1 }
 0x607   :  { %v4746_v53 = vpop.f32.mrf.mxu0 }
 0x608   :  { %v2667_v43 = vadd.f32 %v4746_v53, %v2448_v50 }
 0x609   :  { %v2587_v42 = vpop.f32.mrf.mxu0 }
 0x60a   :  { %v3962_v59 = vmul.f32 -1.442695, %v2667_v43  ;;  %v2666_v32 = vadd.f32 %v2587_v42, %v2443_v18  ;;  %v2478_v42 = vadd.f32 %v7701_v52, %v4723_v38  ;;  %v2483_v52 = vadd.f32 %v7704_v20, %v2482_v31 }
 0x60b   :  { %v4749_v13 = vpop.f32.mrf.mxu0  ;;  %v2498_v38 = vadd.f32 %v7705_v11, %v4729_v28  ;;  %v2508_v31 = vadd.f32 %v7707_v5, %v4732_v15 }
 0x60c   :  { %5218 = vpow2.f32 %v3962_v59  ;;  %v3961_v26 = vmul.f32 -1.442695, %v2666_v32  ;;  %v2669_v34 = vadd.f32 %v4749_v13, %v2458_v47  ;;  %v2488_v47 = vadd.f32 %v7703_v44, %v4726_v41 }
 0x60d   :  { %v2597_v30 = vpop.f32.mrf.mxu0  ;;  %v2493_v44 = vadd.f32 %v7706_v25, %v2492_v55 }
 0x60e   :  { %5220 = vpow2.f32 %v3961_v26  ;;  %v3964_v40 = vmul.f32 -1.442695, %v2669_v34  ;;  %v2668_v61 = vadd.f32 %v2597_v30, %v2453_v45 }
 0x60f   :  { %v4752_v53 = vpop.f32.mrf.mxu0 }
 0x610   :  { %5222 = vpow2.f32 %v3964_v40  ;;  %v3963_v43 = vmul.f32 -1.442695, %v2668_v61  ;;  %v2671_v18 = vadd.f32 %v4752_v53, %v2468_v54  ;;  %v2502_v54 = vpop.f32.mrf.mxu1 }
 0x611   :  { %v2607_v7 = vpop.f32.mrf.mxu0  ;;  %v2503_v28 = vadd.f32 %v7708_v1, %v2502_v54 }
 0x612   :  { %5224 = vpow2.f32 %v3963_v43  ;;  %v3966_v59 = vmul.f32 -1.442695, %v2671_v18  ;;  %v2670_v32 = vadd.f32 %v2607_v7, %v2463_v46  ;;  %v4735_v41 = vpop.f32.mrf.mxu1 }
 0x613   :  { %v4755_v13 = vpop.f32.mrf.mxu0 }
 0x614   :  { %5226 = vpow2.f32 %v3966_v59  ;;  %v3965_v34 = vmul.f32 -1.442695, %v2670_v32  ;;  %v2673_v26 = vadd.f32 %v4755_v13, %v2478_v42  ;;  %v2512_v18 = vpop.f32.mrf.mxu1  ;;  %v2518_v32 = vadd.f32 %v7709_v57, %v4735_v41 }
 0x615   :  { %v2617_v8 = vpop.f32.mrf.mxu0  ;;  %v2513_v15 = vadd.f32 %v6637_v21, %v2512_v18 }
 0x616   :  { %5228 = vpow2.f32 %v3965_v34  ;;  %v3968_v2 = vmul.f32 -1.442695, %v2673_v26  ;;  %v2672_v61 = vadd.f32 %v2617_v8, %v2473_v19 }
 0x617   :  { %v4758_v35 = vpop.f32.mrf.mxu0 }
 0x618   :  { %5230 = vpow2.f32 %v3968_v2  ;;  %v3967_v49 = vmul.f32 -1.442695, %v2672_v61  ;;  %v2675_v56 = vadd.f32 %v4758_v35, %v2488_v47 }
 0x619   :  { %v5219_v58 = vpop.eup %5218  ;;  %v2627_v48 = vpop.f32.mrf.mxu0 }
 0x61a   :  { %v2695_v50 = vadd.f32 1.0, %v5219_v58  ;;  %5232 = vpow2.f32 %v3967_v49  ;;  %v2674_v45 = vadd.f32 %v2627_v48, %v2483_v52 }
 0x61b   :  { %v5221_v30 = vpop.eup %5220  ;;  %v4761_v40 = vpop.f32.mrf.mxu0  ;;  %5234 = vtanh.f32 %v2675_v56 }
 0x61c   :  { %v2694_v46 = vadd.f32 1.0, %v5221_v30  ;;  %v2677_v20 = vadd.f32 %v4761_v40, %v2498_v38  ;;  %5236 = vrcp.f32 %v2695_v50 }
 0x61d   :  { %v5223_v53 = vpop.eup %5222  ;;  %v2637_v43 = vpop.f32.mrf.mxu0  ;;  %5238 = vtanh.f32 %v2674_v45 }
 0x61e   :  { %v2697_v42 = vadd.f32 1.0, %v5223_v53  ;;  %v2676_v11 = vadd.f32 %v2637_v43, %v2493_v44  ;;  %5240 = vrcp.f32 %v2694_v46  ;;  %v2779_v44 = vsel %vm2778_vm11, 1, %v7711_v16 }
 0x61f   :  { %v5225_v7 = vpop.eup %5224  ;;  %v4764_v25 = vpop.f32.mrf.mxu0  ;;  %5242 = vtanh.f32 %v2677_v20  ;;  %v2783_v46 = vrot.slane %v2779_v44, %v7712_v27 }
 0x620   :  { %v2696_v55 = vadd.f32 1.0, %v5225_v7  ;;  %v2679_v59 = vadd.f32 %v4764_v25, %v2508_v31  ;;  %5244 = vrcp.f32 %v2697_v42 }
 0x621   :  { %v5227_v19 = vpop.eup %5226  ;;  %v2647_v5 = vpop.f32.mrf.mxu0  ;;  %5246 = vtanh.f32 %v2676_v11  ;;  %vm7083_vm12 = vcmp.eq.s32.totalorder %v2783_v46, 1  ;;  %v7182_v46 = vld [vmem:[%s7504_s2 + $0x70] sm:$0xff] }
 0x622   :  { %v2719_v13 = vadd.f32 1.0, %v5227_v19  ;;  %v3970_v34 = vmul.f32 -1.442695, %v2679_v59  ;;  %v2678_v26 = vadd.f32 %v2647_v5, %v2503_v28  ;;  %5248 = vrcp.f32 %v2696_v55  ;;  %v7734_v28 = vld [vmem:[#allocation5_spill] sm:$0xff] }
 0x623   :  { %v5229_v47 = vpop.eup %5228  ;;  %v4767_v1 = vpop.f32.mrf.mxu0 }
 0x624   :  { %5250 = vrcp.f32 %v2719_v13  ;;  %v2718_v8 = vadd.f32 1.0, %v5229_v47  ;;  %v3969_v2 = vmul.f32 -1.442695, %v2678_v26  ;;  %v2681_v61 = vadd.f32 %v4767_v1, %v2518_v32 }
 0x625   :  { %v5231_v52 = vpop.eup %5230  ;;  %5252 = vpow2.f32 %v3970_v34  ;;  %v2657_v54 = vpop.f32.mrf.mxu0 }
 0x626   :  { %5254 = vrcp.f32 %v2718_v8  ;;  %v2721_v57 = vadd.f32 1.0, %v5231_v52  ;;  %v3972_v35 = vmul.f32 -1.442695, %v2681_v61  ;;  %v2680_v49 = vadd.f32 %v2657_v54, %v2513_v15 }
 0x627   :  { %v5233_v56 = vpop.eup %5232  ;;  %5256 = vpow2.f32 %v3969_v2 }
 0x628   :  { %5258 = vrcp.f32 %v2721_v57  ;;  %v2720_v21 = vadd.f32 1.0, %v5233_v56  ;;  %v3971_v38 = vmul.f32 -1.442695, %v2680_v49  ;;  %v5235_v58 = vpop.eup %5234 }
 0x629   :  { %5260 = vpow2.f32 %v3972_v35  ;;  %v5237_v48 = vpop.eup %5236 }
 0x62a   :  { %5262 = vrcp.f32 %v2720_v21  ;;  %v5239_v50 = vpop.eup %5238  ;;  %v2763_v42 = vmul.f32 %v5237_v48, %v5235_v58 }
 0x62b   :  { %5264 = vpow2.f32 %v3971_v38  ;;  %v5241_v45 = vpop.eup %5240 }
 0x62c   :  { %v5243_v41 = vpop.eup %5242  ;;  %v2762_v55 = vmul.f32 %v5241_v45, %v5239_v50 }
 0x62d   :  { %v5245_v30 = vpop.eup %5244 }
 0x62e   :  { %v5247_v40 = vpop.eup %5246  ;;  %v2765_v32 = vmul.f32 %v5245_v30, %v5243_v41 }
 0x62f   :  { %v5249_v20 = vpop.eup %5248 }
 0x630   :  { %v2764_v26 = vmul.f32 %v5249_v20, %v5247_v40  ;;  %v7189_v20 = vld [vmem:[%s7504_s2 + $0x78] sm:$0xff] }
 0x631   :  { %v5251_v31 = vpop.eup %5250 }
 0x632   :  { %v5253_v53 = vpop.eup %5252  ;;  %v2759_v43 = vmul.f32 %v5251_v31, %v6809_v60  ;;  %v4024_v31 = vld [vmem:[%s7502_s0 + $0xf8] sm:$0xff] }
 0x633   :  { %v5255_v11 = vpop.eup %5254  ;;  %v2747_v29 = vadd.f32 1.0, %v5253_v53  ;;  %v4023_v53 = vld [vmem:[%s7502_s0 + $0xf0] sm:$0xff]  ;;  %4832 = vmatprep.subr.mxu1 %v4024_v31 }
 0x634   :  { %v5257_v18 = vpop.eup %5256  ;;  %v2767_v7 = vadd.f32 %v2763_v42, %v2759_v43  ;;  %v2758_v25 = vmul.f32 %v5255_v11, %v6815_v23  ;;  %4833 = vmatpush3.msra.mxu1 %v4024_v31  ;;  %v4022_v43 = vld [vmem:[%s7502_s0 + $0xe8] sm:$0xff]  ;;  %v7731_v42 = vld [vmem:[#allocation18_spill] sm:$0xff]  ;;  %v7732_v11 = vld [vmem:[#allocation19_spill] sm:$0xff] }
 0x635   :  { %v5259_v59 = vpop.eup %5258  ;;  %5266 = vrcp.f32 %v2747_v29  ;;  %4834 = vmatprep.subr.mxu1 %v4023_v53  ;;  %v7733_v29 = vld [vmem:[#allocation4_spill] sm:$0xff] }
 0x636   :  { %v5261_v19 = vpop.eup %5260  ;;  %v2766_v5 = vadd.f32 %v2762_v55, %v2758_v25  ;;  %v2761_v15 = vmul.f32 %v5259_v59, %v6820_v9  ;;  %v7092_v13 = vsel %vm7083_vm12, %v2767_v7, %v6809_v60  ;;  %5268 = vtanh.f32 %v2767_v7  ;;  %4835 = vmatpush3.msra.mxu1 %v4023_v53  ;;  %v7736_v7 = vld [vmem:[#allocation7_spill] sm:$0xff]  ;;  %v7737_v25 = vld [vmem:[#allocation8_spill] sm:$0xff]  ;;  %v7739_v55 = vld [vmem:[#allocation10_spill] sm:$0xff]  ;;  %v4778_v59 = vpop.f32.mrf.mxu1 }
 0x637   :  { %v5263_v34 = vpop.eup %5262  ;;  %v2749_v47 = vadd.f32 1.0, %v5261_v19  ;;  %v2746_v60 = vadd.f32 1.0, %v5257_v18  ;;  %4836 = vmatprep.subr.mxu1 %v4022_v43  ;;  %v7735_v18 = vld [vmem:[#allocation6_spill] sm:$0xff]  ;;  %v7741_v19 = vld [vmem:[#allocation12_spill] sm:$0xff] }
 0x638   :  { %v5265_v1 = vpop.eup %5264  ;;  %5270 = vtanh.f32 %v2766_v5  ;;  %v2769_v8 = vadd.f32 %v2765_v32, %v2761_v15  ;;  %v2760_v2 = vmul.f32 %v5263_v34, %v6825_v10  ;;  %v7098_v61 = vsel %vm7083_vm12, %v2766_v5, %v6815_v23  ;;  %4837 = vmatpush3.msra.mxu1 %v4022_v43  ;;  %v7740_v32 = vld [vmem:[#allocation11_spill] sm:$0xff]  ;;  %v2880_v5 = vpop.f32.mrf.mxu1  ;;  %v7742_v15 = vld [vmem:[#allocation13_spill] sm:$0xff]  ;;  %v7743_v34 = vld [vmem:[#allocation14_spill] sm:$0xff] }
 0x639   :  { %5272 = vrcp.f32 %v2749_v47  ;;  %v2748_v52 = vadd.f32 1.0, %v5265_v1  ;;  %v7744_v47 = vld [vmem:[#allocation16_spill] sm:$0xff]  ;;  %v7258_v53 = vld [vmem:[%s7505_s3 + $0x10] sm:$0xff] }
 0x63a   :  { %5274 = vtanh.f32 %v2769_v8  ;;  %v2768_v54 = vadd.f32 %v2764_v26, %v2760_v2  ;;  %v7103_v57 = vsel %vm7083_vm12, %v2769_v8, %v6820_v9  ;;  %v4781_v26 = vpop.f32.mrf.mxu1 }
 0x63b   :  { %5276 = vrcp.f32 %v2748_v52 }
 0x63c   :  { %5278 = vtanh.f32 %v2768_v54  ;;  %v7108_v35 = vsel %vm7083_vm12, %v2768_v54, %v6825_v10  ;;  %v2890_v1 = vpop.f32.mrf.mxu1 }
 0x63d   :  { %5280 = vrcp.f32 %v2746_v60  ;;  %v2891_v43 = vadd.f32 %v7258_v53, %v2890_v1 }
 0x63e   :  { %v4784_v8 = vpop.f32.mrf.mxu1 }
 0x640   :  { %v2900_v2 = vpop.f32.mrf.mxu1 }
 0x642   :  { %v5267_v23 = vpop.eup %5266  ;;  %v4787_v52 = vpop.f32.mrf.mxu1 }
 0x643   :  { %v5269_v49 = vpop.eup %5268 }
 0x644   :  { %v2775_v44 = vmul.f32 %v5269_v49, %v5267_v23  ;;  %v2910_v54 = vpop.f32.mrf.mxu1  ;;  %v7240_v23 = vld [vmem:[%s7505_s3 + $0x8] sm:$0xff] }
 0x645   :  { %v5271_v56 = vpop.eup %5270  ;;  %v2886_v49 = vadd.f32 %v7240_v23, %v4778_v59 }
 0x646   :  { %v5273_v21 = vpop.eup %5272  ;;  %v4790_v60 = vpop.f32.mrf.mxu1 }
 0x647   :  { %v5275_v38 = vpop.eup %5274 }
 0x648   :  { %v5277_v58 = vpop.eup %5276  ;;  %v2777_v48 = vmul.f32 %v5275_v38, %v5273_v21  ;;  %v7246_v38 = vld [vmem:[%s7505_s3] sm:$0xff] }
 0x649   :  { %v5279_v50 = vpop.eup %5278 }
 0x64a   :  { %v7113_v9 = vsel %vm7083_vm12, %v2777_v48, %v6830_v37  ;;  %v2776_v45 = vmul.f32 %v5279_v50, %v5277_v58  ;;  %v5281_v41 = vpop.eup %5280  ;;  %v7127_v37 = vsel %vm7083_vm12, %v2775_v44, %v6844_v14  ;;  %v7168_v14 = vld [vmem:[%s7504_s2 + $0x60] sm:$0xff]  ;;  %v2881_v58 = vadd.f32 %v7246_v38, %v2880_v5  ;;  %v7252_v48 = vld [vmem:[%s7505_s3 + $0x18] sm:$0xff] }
 0x64b   :  { %4800 = vmatprep.subr.mxu0 %v7113_v9  ;;  %v2774_v30 = vmul.f32 %v5281_v41, %v5271_v56  ;;  %v2920_v56 = vpop.f32.mrf.mxu1  ;;  %v2896_v50 = vadd.f32 %v7252_v48, %v4781_v26  ;;  %v7276_v5 = vld [vmem:[%s7505_s3 + $0x38] sm:$0xff] }
 0x64c   :  { %4801 = vmatpush3.msra.mxu0 %v7113_v9  ;;  %v7120_v10 = vsel %vm7083_vm12, %v2776_v45, %v6837_v4  ;;  %v7161_v4 = vld [vmem:[%s7504_s2 + $0x58] sm:$0xff] }
 0x64d   :  { %4802 = vmatprep.subr.mxu0 %v7120_v10  ;;  %v7134_v40 = vsel %vm7083_vm12, %v2774_v30, %v6851_v63  ;;  %v7175_v63 = vld [vmem:[%s7504_s2 + $0x68] sm:$0xff]  ;;  %v4793_v31 = vpop.f32.mrf.mxu1 }
 0x64e   :  { %4803 = vmatpush3.msra.mxu0 %v7120_v10 }
 0x64f   :  { %4804 = vmatprep.subr.mxu0 %v7127_v37 }
 0x650   :  { %4805 = vmatpush3.msra.mxu0 %v7127_v37 }
 0x651   :  { %4806 = vmatprep.subr.mxu0 %v7134_v40 }
 0x652   :  { %4807 = vmatpush3.msra.mxu0 %v7134_v40 }
 0x653   :  { %4809 = vmatmul.mubr.msk.f32.vlgmr.msra.gmra.mxu0 %vm89_vm0, %v6858_v36 }
 0x654   :  { %4811 = vmatprep.mubr.msk.f32.mxu0 %vm89_vm0, %v6865_v0 }
 0x657   :  { %4812 = vmatmul.mubr.msk.f32.gmra.mxu0 %vm89_vm0, %v6872_v24 }
 0x658   :  { %4814 = vmatprep.mubr.msk.f32.mxu0 %vm89_vm0, %v6879_v17 }
 0x65b   :  { %4815 = vmatmul.mubr.msk.f32.gmra.mxu0 %vm89_vm0, %v6886_v51 }
 0x65c   :  { %4817 = vmatprep.mubr.msk.f32.mxu0 %vm89_vm0, %v6893_v33 }
 0x65f   :  { %4818 = vmatmul.mubr.msk.f32.gmra.mxu0 %vm89_vm0, %v6900_v12 }
 0x660   :  { %4820 = vmatprep.mubr.msk.f32.mxu0 %vm89_vm0, %v6907_v62 }
 0x663   :  { %4821 = vmatmul.mubr.msk.f32.gmra.mxu0 %vm89_vm0, %v6914_v3 }
 0x664   :  { %4823 = vmatprep.mubr.msk.f32.mxu0 %vm89_vm0, %v6921_v39 }
 0x667   :  { %4824 = vmatmul.mubr.msk.f32.gmra.mxu0 %vm89_vm0, %v7161_v4 }
 0x668   :  { %4826 = vmatprep.mubr.msk.f32.mxu0 %vm89_vm0, %v7168_v14 }
 0x66b   :  { %4827 = vmatmul.mubr.msk.f32.gmra.mxu0 %vm89_vm0, %v7175_v63 }
 0x66c   :  { %4829 = vmatprep.mubr.msk.f32.mxu0 %vm89_vm0, %v7182_v46 }
 0x66f   :  { %4830 = vmatmul.mubr.msk.f32.gmra.mxu0 %vm89_vm0, %v7189_v20 }
 0x670   :  { %4872 = vmatprep.mubr.msk.f32.mxu0 %vm89_vm0, %v6938_v6  ;;  %v4021_v6 = vld [vmem:[%s7502_s0 + $0xe0] sm:$0xff] }
 0x671   :  { %4838 = vmatprep.subr.mxu1 %v4021_v6 }
 0x672   :  { %4839 = vmatpush3.msra.mxu1 %v4021_v6 }
 0x673   :  { %4841 = vmatmul.mubr.msk.f32.vlgmr.msra.gmra.mxu1 %vm89_vm0, %v6957_v22  ;;  %v7738_v22 = vld [vmem:[#allocation9_spill] sm:$0xff] }
 0x674   :  { %4843 = vmatprep.mubr.msk.f32.mxu1 %vm89_vm0, %v7731_v42 }
 0x677   :  { %4844 = vmatmul.mubr.msk.f32.gmra.mxu1 %vm89_vm0, %v7732_v11  ;;  %v7264_v11 = vld [vmem:[%s7505_s3 + $0x28] sm:$0xff] }
 0x678   :  { %4846 = vmatprep.mubr.msk.f32.mxu1 %vm89_vm0, %v7733_v29  ;;  %v2906_v29 = vadd.f32 %v7264_v11, %v4784_v8 }
 0x67b   :  { %4847 = vmatmul.mubr.msk.f32.gmra.mxu1 %vm89_vm0, %v7734_v28 }
 0x67c   :  { %4849 = vmatprep.mubr.msk.f32.mxu1 %vm89_vm0, %v7735_v18 }
 0x67f   :  { %4850 = vmatmul.mubr.msk.f32.gmra.mxu1 %vm89_vm0, %v7736_v7 }
 0x680   :  { %4852 = vmatprep.mubr.msk.f32.mxu1 %vm89_vm0, %v7737_v25 }
 0x683   :  { %4853 = vmatmul.mubr.msk.f32.gmra.mxu1 %vm89_vm0, %v7738_v22  ;;  %v2930_v22 = vpop.f32.mrf.mxu1 }
 0x684   :  { %4855 = vmatprep.mubr.msk.f32.mxu1 %vm89_vm0, %v7739_v55  ;;  %v7270_v55 = vld [vmem:[%s7505_s3 + $0x20] sm:$0xff] }
 0x685   :  { %v2901_v59 = vadd.f32 %v7270_v55, %v2900_v2  ;;  %v4796_v8 = vpop.f32.mrf.mxu1  ;;  %v7282_v2 = vld [vmem:[%s7505_s3 + $0x30] sm:$0xff] }
 0x687   :  { %4856 = vmatmul.mubr.msk.f32.gmra.mxu1 %vm89_vm0, %v7740_v32 }
 0x688   :  { %4858 = vmatprep.mubr.msk.f32.mxu1 %vm89_vm0, %v7741_v19 }
 0x68b   :  { %4859 = vmatmul.mubr.msk.f32.gmra.mxu1 %vm89_vm0, %v7742_v15  ;;  %v2916_v15 = vadd.f32 %v7276_v5, %v4787_v52  ;;  %v7288_v52 = vld [vmem:[%s7505_s3 + $0x48] sm:$0xff] }
 0x68c   :  { %4861 = vmatprep.mubr.msk.f32.mxu1 %vm89_vm0, %v7743_v34 }
 0x68f   :  { %4862 = vmatmul.mubr.msk.f32.gmra.mxu1 %vm89_vm0, %v7744_v47 }
 0x713   :  { %v4810_v21 = vpop.f32.mrf.mxu0 }
 0x714   :  { %v3105_v45 = vadd.f32 %v4810_v21, %v2886_v49  ;;  %v2911_v49 = vadd.f32 %v7282_v2, %v2910_v54 }
 0x715   :  { %v3025_v44 = vpop.f32.mrf.mxu0 }
 0x716   :  { %v4010_v41 = vmul.f32 -1.442695, %v3105_v45  ;;  %v3104_v30 = vadd.f32 %v3025_v44, %v2881_v58  ;;  %v2926_v45 = vadd.f32 %v7288_v52, %v4790_v60  ;;  %v7300_v60 = vld [vmem:[%s7505_s3 + $0x58] sm:$0xff] }
 0x717   :  { %v4813_v6 = vpop.f32.mrf.mxu0 }
 0x718   :  { %5282 = vpow2.f32 %v4010_v41  ;;  %v4009_v42 = vmul.f32 -1.442695, %v3104_v30  ;;  %v3107_v28 = vadd.f32 %v4813_v6, %v2896_v50  ;;  %v2940_v6 = vpop.f32.mrf.mxu1 }
 0x719   :  { %v3035_v18 = vpop.f32.mrf.mxu0 }
 0x71a   :  { %5284 = vpow2.f32 %v4009_v42  ;;  %v4012_v7 = vmul.f32 -1.442695, %v3107_v28  ;;  %v3106_v25 = vadd.f32 %v3035_v18, %v2891_v43  ;;  %v7294_v43 = vld [vmem:[%s7505_s3 + $0x40] sm:$0xff]  ;;  %v2936_v18 = vadd.f32 %v7300_v60, %v4793_v31  ;;  %v7312_v31 = vld [vmem:[%s7505_s3 + $0x68] sm:$0xff] }
 0x71b   :  { %v4816_v32 = vpop.f32.mrf.mxu0  ;;  %v2921_v54 = vadd.f32 %v7294_v43, %v2920_v56  ;;  %v7306_v56 = vld [vmem:[%s7505_s3 + $0x50] sm:$0xff] }
 0x71c   :  { %5286 = vpow2.f32 %v4012_v7  ;;  %v4011_v19 = vmul.f32 -1.442695, %v3106_v25  ;;  %v3109_v34 = vadd.f32 %v4816_v32, %v2906_v29 }
 0x71d   :  { %v3045_v26 = vpop.f32.mrf.mxu0 }
 0x71e   :  { %5288 = vpow2.f32 %v4011_v19  ;;  %v4014_v47 = vmul.f32 -1.442695, %v3109_v34  ;;  %v3108_v1 = vadd.f32 %v3045_v26, %v2901_v59  ;;  %v2931_v19 = vadd.f32 %v7306_v56, %v2930_v22  ;;  %v7318_v22 = vld [vmem:[%s7505_s3 + $0x60] sm:$0xff] }
 0x71f   :  { %v4819_v21 = vpop.f32.mrf.mxu0 }
 0x720   :  { %5290 = vpow2.f32 %v4014_v47  ;;  %v4013_v58 = vmul.f32 -1.442695, %v3108_v1  ;;  %v3111_v50 = vadd.f32 %v4819_v21, %v2916_v15  ;;  %v4799_v15 = vpop.f32.mrf.mxu1 }
 0x721   :  { %v3055_v44 = vpop.f32.mrf.mxu0 }
 0x722   :  { %5292 = vpow2.f32 %v4013_v58  ;;  %v4016_v41 = vmul.f32 -1.442695, %v3111_v50  ;;  %v3110_v30 = vadd.f32 %v3055_v44, %v2911_v49  ;;  %v2946_v49 = vadd.f32 %v7312_v31, %v4796_v8 }
 0x723   :  { %v4822_v42 = vpop.f32.mrf.mxu0  ;;  %v2941_v44 = vadd.f32 %v7318_v22, %v2940_v6  ;;  %v7330_v6 = vld [vmem:[%s7505_s3 + $0x70] sm:$0xff] }
 0x724   :  { %5294 = vpow2.f32 %v4016_v41  ;;  %v4015_v29 = vmul.f32 -1.442695, %v3110_v30  ;;  %v3113_v28 = vadd.f32 %v4822_v42, %v2926_v45  ;;  %v2950_v41 = vpop.f32.mrf.mxu1 }
 0x725   :  { %v5283_v7 = vpop.eup %5282  ;;  %v3065_v25 = vpop.f32.mrf.mxu0 }
 0x726   :  { %v3133_v59 = vadd.f32 1.0, %v5283_v7  ;;  %5296 = vpow2.f32 %v4015_v29  ;;  %v3112_v32 = vadd.f32 %v3065_v25, %v2921_v54  ;;  %v7324_v29 = vld [vmem:[%s7505_s3 + $0x78] sm:$0xff]  ;;  %v2951_v25 = vadd.f32 %v7330_v6, %v2950_v41 }
 0x727   :  { %v5285_v34 = vpop.eup %5284  ;;  %v4825_v26 = vpop.f32.mrf.mxu0  ;;  %5298 = vtanh.f32 %v3113_v28  ;;  %v2956_v28 = vadd.f32 %v7324_v29, %v4799_v15 }
 0x728   :  { %v3132_v47 = vadd.f32 1.0, %v5285_v34  ;;  %v3115_v1 = vadd.f32 %v4825_v26, %v2936_v18  ;;  %5300 = vrcp.f32 %v3133_v59 }
 0x729   :  { %v5287_v21 = vpop.eup %5286  ;;  %v3075_v58 = vpop.f32.mrf.mxu0  ;;  %5302 = vtanh.f32 %v3112_v32 }
 0x72a   :  { %v3135_v50 = vadd.f32 1.0, %v5287_v21  ;;  %v3114_v45 = vadd.f32 %v3075_v58, %v2931_v19  ;;  %5304 = vrcp.f32 %v3132_v47 }
 0x72b   :  { %v5289_v30 = vpop.eup %5288  ;;  %v4828_v54 = vpop.f32.mrf.mxu0  ;;  %5306 = vtanh.f32 %v3115_v1 }
 0x72c   :  { %v3134_v42 = vadd.f32 1.0, %v5289_v30  ;;  %v3117_v8 = vadd.f32 %v4828_v54, %v2946_v49  ;;  %5308 = vrcp.f32 %v3135_v50 }
 0x72d   :  { %v5291_v18 = vpop.eup %5290  ;;  %v3085_v7 = vpop.f32.mrf.mxu0  ;;  %5310 = vtanh.f32 %v3114_v45 }
 0x72e   :  { %v3157_v59 = vadd.f32 1.0, %v5291_v18  ;;  %v4018_v32 = vmul.f32 -1.442695, %v3117_v8  ;;  %v3116_v19 = vadd.f32 %v3085_v7, %v2941_v44  ;;  %5312 = vrcp.f32 %v3134_v42  ;;  %v7336_v42 = vld [vmem:[%s7506_s4] sm:$0x1] }
 0x72f   :  { %v5293_v34 = vpop.eup %5292  ;;  %v4831_v26 = vpop.f32.mrf.mxu0  ;;  %vm3216_vm13 = vcmp.gt.s32.totalorder %v7336_v42, 6  ;;  %vm3654_vm15 = vcmp.gt.s32.totalorder %v7336_v42, 7 }
 0x730   :  { %5314 = vrcp.f32 %v3157_v59  ;;  %v3156_v47 = vadd.f32 1.0, %v5293_v34  ;;  %v4017_v15 = vmul.f32 -1.442695, %v3116_v19  ;;  %v3119_v1 = vadd.f32 %v4831_v26, %v2956_v28 }
 0x731   :  { %v5295_v49 = vpop.eup %5294  ;;  %5316 = vpow2.f32 %v4018_v32  ;;  %v3095_v21 = vpop.f32.mrf.mxu0  ;;  %v3217_v7 = vsel %vm3216_vm13, 1, %v7711_v16 }
 0x732   :  { %5318 = vrcp.f32 %v3156_v47  ;;  %v3159_v58 = vadd.f32 1.0, %v5295_v49  ;;  %v4020_v50 = vmul.f32 -1.442695, %v3119_v1  ;;  %v3118_v30 = vadd.f32 %v3095_v21, %v2951_v25 }
 0x733   :  { %v5297_v54 = vpop.eup %5296  ;;  %5320 = vpow2.f32 %v4017_v15  ;;  %v3221_v19 = vrot.slane %v3217_v7, %v7712_v27 }
 0x734   :  { %5322 = vrcp.f32 %v3159_v58  ;;  %v3158_v45 = vadd.f32 1.0, %v5297_v54  ;;  %v4019_v41 = vmul.f32 -1.442695, %v3118_v30  ;;  %v5299_v44 = vpop.eup %5298 }
 0x735   :  { %5324 = vpow2.f32 %v4020_v50  ;;  %v5301_v8 = vpop.eup %5300  ;;  %vm7342_vm14 = vcmp.eq.s32.totalorder %v3221_v19, 1 }
 0x736   :  { %5326 = vrcp.f32 %v3158_v45  ;;  %v5303_v28 = vpop.eup %5302  ;;  %v3201_v1 = vmul.f32 %v5301_v8, %v5299_v44 }
 0x737   :  { %5328 = vpow2.f32 %v4019_v41  ;;  %v5305_v18 = vpop.eup %5304 }
 0x738   :  { %v5307_v25 = vpop.eup %5306  ;;  %v3200_v45 = vmul.f32 %v5305_v18, %v5303_v28 }
 0x739   :  { %v5309_v59 = vpop.eup %5308 }
 0x73a   :  { %v5311_v32 = vpop.eup %5310  ;;  %v3203_v7 = vmul.f32 %v5309_v59, %v5307_v25 }
 0x73b   :  { %v5313_v34 = vpop.eup %5312 }
 0x73c   :  { %v3202_v19 = vmul.f32 %v5313_v34, %v5311_v32 }
 0x73d   :  { %v5315_v26 = vpop.eup %5314 }
 0x73e   :  { %v5317_v47 = vpop.eup %5316  ;;  %v3197_v15 = vmul.f32 %v5315_v26, %v7092_v13 }
 0x73f   :  { %v5319_v49 = vpop.eup %5318  ;;  %v3185_v21 = vadd.f32 1.0, %v5317_v47 }
 0x740   :  { %v5321_v50 = vpop.eup %5320  ;;  %v7346_v30 = vadd.f32 %v3201_v1, %v3197_v15  ;;  %v3196_v54 = vmul.f32 %v5319_v49, %v7098_v61 }
 0x741   :  { %v5323_v41 = vpop.eup %5322  ;;  %5330 = vrcp.f32 %v3185_v21  ;;  %v3184_v32 = vadd.f32 1.0, %v5321_v50 }
 0x742   :  { %v5325_v27 = vpop.eup %5324  ;;  %v7349_v16 = vadd.f32 %v3200_v45, %v3196_v54  ;;  %v3199_v26 = vmul.f32 %v5323_v41, %v7103_v57  ;;  %v3232_v44 = vsel %vm7342_vm14, %v7346_v30, %v7092_v13  ;;  %5332 = vtanh.f32 %v7346_v30 }
 0x743   :  { %v5327_v8 = vpop.eup %5326  ;;  %v3187_v47 = vadd.f32 1.0, %v5325_v27 }
 0x744   :  { %v5329_v15 = vpop.eup %5328  ;;  %5334 = vtanh.f32 %v7349_v16  ;;  %v7358_v28 = vadd.f32 %v3203_v7, %v3199_v26  ;;  %v3198_v18 = vmul.f32 %v5327_v8, %v7108_v35  ;;  %v3231_v25 = vsel %vm7342_vm14, %v7349_v16, %v7098_v61 }
 0x745   :  { %5336 = vrcp.f32 %v3187_v47  ;;  %v3186_v59 = vadd.f32 1.0, %v5329_v15 }
 0x746   :  { %5338 = vtanh.f32 %v7358_v28  ;;  %v7366_v1 = vadd.f32 %v3202_v19, %v3198_v18  ;;  %v3234_v27 = vsel %vm7342_vm14, %v7358_v28, %v7103_v57  ;;  %v7747_v28 = vmov 0  }
 0x747   :  { %5340 = vrcp.f32 %v3186_v59 }
 0x748   :  { %5342 = vtanh.f32 %v7366_v1  ;;  %v3233_v34 = vsel %vm7342_vm14, %v7366_v1, %v7108_v35 }
 0x749   :  { %5344 = vrcp.f32 %v3184_v32 }
 0x74e   :  { %v5331_v49 = vpop.eup %5330 }
 0x74f   :  { %v5333_v21 = vpop.eup %5332 }
 0x750   :  { %v3213_v47 = vmul.f32 %v5333_v21, %v5331_v49 }
 0x751   :  { %v5335_v54 = vpop.eup %5334 }
 0x752   :  { %v5337_v45 = vpop.eup %5336 }
 0x753   :  { %v5339_v41 = vpop.eup %5338 }
 0x754   :  { %v5341_v50 = vpop.eup %5340  ;;  %v3215_v7 = vmul.f32 %v5339_v41, %v5337_v45 }
 0x755   :  { %v5343_v26 = vpop.eup %5342 }
 0x756   :  { %v7380_v8 = vsel %vm7342_vm14, %v3215_v7, %v7113_v9  ;;  %v3214_v19 = vmul.f32 %v5343_v26, %v5341_v50  ;;  %v5345_v15 = vpop.eup %5344  ;;  %v7394_v9 = vsel %vm7342_vm14, %v3213_v47, %v7127_v37 }
 0x757   :  { %4864 = vmatprep.subr.mxu0 %v7380_v8  ;;  %v3212_v59 = vmul.f32 %v5345_v15, %v5335_v54 }
 0x758   :  { %4865 = vmatpush3.msra.mxu0 %v7380_v8  ;;  %v7387_v18 = vsel %vm7342_vm14, %v3214_v19, %v7120_v10 }
 0x759   :  { %4866 = vmatprep.subr.mxu0 %v7387_v18  ;;  %v7401_v32 = vsel %vm7342_vm14, %v3212_v59, %v7134_v40 }
 0x75a   :  { %4867 = vmatpush3.msra.mxu0 %v7387_v18 }
 0x75b   :  { %4868 = vmatprep.subr.mxu0 %v7394_v9 }
 0x75c   :  { %4869 = vmatpush3.msra.mxu0 %v7394_v9 }
 0x75d   :  { %4870 = vmatprep.subr.mxu0 %v7401_v32 }
 0x75e   :  { %4871 = vmatpush3.msra.mxu0 %v7401_v32 }
 0x75f   :  { %4873 = vmatmul.mubr.msk.f32.vlgmr.msra.gmra.mxu0 %vm89_vm0, %v6858_v36  ;;  %v4842_v36 = vpop.f32.mrf.mxu1 }
 0x760   :  { %4875 = vmatprep.mubr.msk.f32.mxu0 %vm89_vm0, %v6865_v0 }
 0x761   :  { %v3318_v0 = vpop.f32.mrf.mxu1 }
 0x762   :  { %v3319_v40 = vadd.f32 %v7246_v38, %v3318_v0 }
 0x763   :  { %4876 = vmatmul.mubr.msk.f32.gmra.mxu0 %vm89_vm0, %v6872_v24  ;;  %v4845_v24 = vpop.f32.mrf.mxu1 }
 0x764   :  { %4878 = vmatprep.mubr.msk.f32.mxu0 %vm89_vm0, %v6879_v17 }
 0x765   :  { %v3328_v17 = vpop.f32.mrf.mxu1 }
 0x766   :  { %v3329_v21 = vadd.f32 %v7258_v53, %v3328_v17 }
 0x767   :  { %4879 = vmatmul.mubr.msk.f32.gmra.mxu0 %vm89_vm0, %v6886_v51  ;;  %v4848_v51 = vpop.f32.mrf.mxu1 }
 0x768   :  { %4881 = vmatprep.mubr.msk.f32.mxu0 %vm89_vm0, %v6893_v33  ;;  %v3344_v50 = vadd.f32 %v7264_v11, %v4848_v51 }
 0x769   :  { %v3338_v33 = vpop.f32.mrf.mxu1 }
 0x76a   :  { %v3339_v19 = vadd.f32 %v7270_v55, %v3338_v33 }
 0x76b   :  { %4882 = vmatmul.mubr.msk.f32.gmra.mxu0 %vm89_vm0, %v6900_v12  ;;  %v4851_v12 = vpop.f32.mrf.mxu1 }
 0x76c   :  { %4884 = vmatprep.mubr.msk.f32.mxu0 %vm89_vm0, %v6907_v62  ;;  %v3354_v59 = vadd.f32 %v7276_v5, %v4851_v12 }
 0x76d   :  { %v3348_v62 = vpop.f32.mrf.mxu1 }
 0x76e   :  { %v3349_v11 = vadd.f32 %v7282_v2, %v3348_v62 }
 0x76f   :  { %4885 = vmatmul.mubr.msk.f32.gmra.mxu0 %vm89_vm0, %v6914_v3  ;;  %v4854_v3 = vpop.f32.mrf.mxu1 }
 0x770   :  { %4887 = vmatprep.mubr.msk.f32.mxu0 %vm89_vm0, %v6921_v39  ;;  %v3324_v39 = vadd.f32 %v7240_v23, %v4842_v36 }
 0x771   :  { %v3358_v10 = vpop.f32.mrf.mxu1 }
 0x773   :  { %4888 = vmatmul.mubr.msk.f32.gmra.mxu0 %vm89_vm0, %v7161_v4  ;;  %v4857_v49 = vpop.f32.mrf.mxu1 }
 0x774   :  { %4890 = vmatprep.mubr.msk.f32.mxu0 %vm89_vm0, %v7168_v14  ;;  %v3334_v14 = vadd.f32 %v7252_v48, %v4845_v24 }
 0x775   :  { %v3368_v38 = vpop.f32.mrf.mxu1 }
 0x777   :  { %4891 = vmatmul.mubr.msk.f32.gmra.mxu0 %vm89_vm0, %v7175_v63  ;;  %v4860_v24 = vpop.f32.mrf.mxu1 }
 0x778   :  { %4893 = vmatprep.mubr.msk.f32.mxu0 %vm89_vm0, %v7182_v46 }
 0x779   :  { %v3378_v5 = vpop.f32.mrf.mxu1 }
 0x77b   :  { %4894 = vmatmul.mubr.msk.f32.gmra.mxu0 %vm89_vm0, %v7189_v20 }
 0x81f   :  { %v4874_v37 = vpop.f32.mrf.mxu0 }
 0x820   :  { %v3543_v4 = vadd.f32 %v4874_v37, %v3324_v39  ;;  %v3364_v37 = vadd.f32 %v7288_v52, %v4854_v3  ;;  %v3369_v52 = vadd.f32 %v7306_v56, %v3368_v38  ;;  %v4863_v3 = vpop.f32.mrf.mxu1 }
 0x821   :  { %v3463_v63 = vpop.f32.mrf.mxu0 }
 0x822   :  { %v4058_v46 = vmul.f32 -1.442695, %v3543_v4  ;;  %v3542_v20 = vadd.f32 %v3463_v63, %v3319_v40  ;;  %v3359_v4 = vadd.f32 %v7294_v43, %v3358_v10  ;;  %v3384_v10 = vadd.f32 %v7312_v31, %v4860_v24 }
 0x823   :  { %v4877_v54 = vpop.f32.mrf.mxu0 }
 0x824   :  { %5346 = vpow2.f32 %v4058_v46  ;;  %v4057_v45 = vmul.f32 -1.442695, %v3542_v20  ;;  %v3545_v41 = vadd.f32 %v4877_v54, %v3334_v14  ;;  %v3374_v46 = vadd.f32 %v7300_v60, %v4857_v49 }
 0x825   :  { %v3473_v23 = vpop.f32.mrf.mxu0  ;;  %v3379_v49 = vadd.f32 %v7318_v22, %v3378_v5 }
 0x826   :  { %5348 = vpow2.f32 %v4057_v45  ;;  %v4060_v7 = vmul.f32 -1.442695, %v3545_v41  ;;  %v3544_v26 = vadd.f32 %v3473_v23, %v3329_v21 }
 0x827   :  { %v4880_v48 = vpop.f32.mrf.mxu0 }
 0x828   :  { %5350 = vpow2.f32 %v4060_v7  ;;  %v4059_v47 = vmul.f32 -1.442695, %v3544_v26  ;;  %v3547_v15 = vadd.f32 %v4880_v48, %v3344_v50  ;;  %v3388_v26 = vpop.f32.mrf.mxu1 }
 0x829   :  { %v3483_v53 = vpop.f32.mrf.mxu0 }
 0x82a   :  { %5352 = vpow2.f32 %v4059_v47  ;;  %v4062_v36 = vmul.f32 -1.442695, %v3547_v15  ;;  %v3546_v0 = vadd.f32 %v3483_v53, %v3339_v19  ;;  %v3394_v47 = vadd.f32 %v7324_v29, %v4863_v3 }
 0x82b   :  { %v4883_v17 = vpop.f32.mrf.mxu0 }
 0x82c   :  { %5354 = vpow2.f32 %v4062_v36  ;;  %v4061_v51 = vmul.f32 -1.442695, %v3546_v0  ;;  %v3549_v39 = vadd.f32 %v4883_v17, %v3354_v59  ;;  %v3389_v59 = vadd.f32 %v7330_v6, %v3388_v26 }
 0x82d   :  { %v3493_v55 = vpop.f32.mrf.mxu0 }
 0x82e   :  { %5356 = vpow2.f32 %v4061_v51  ;;  %v4064_v33 = vmul.f32 -1.442695, %v3549_v39  ;;  %v3548_v40 = vadd.f32 %v3493_v55, %v3349_v11 }
 0x82f   :  { %v4886_v12 = vpop.f32.mrf.mxu0 }
 0x830   :  { %5358 = vpow2.f32 %v4064_v33  ;;  %v4063_v14 = vmul.f32 -1.442695, %v3548_v40  ;;  %v3551_v63 = vadd.f32 %v4886_v12, %v3364_v37 }
 0x831   :  { %v5347_v2 = vpop.eup %5346  ;;  %v3503_v62 = vpop.f32.mrf.mxu0 }
 0x832   :  { %v3571_v20 = vadd.f32 1.0, %v5347_v2  ;;  %5360 = vpow2.f32 %v4063_v14  ;;  %v3550_v21 = vadd.f32 %v3503_v62, %v3359_v4 }
 0x833   :  { %v5349_v54 = vpop.eup %5348  ;;  %v4889_v45 = vpop.f32.mrf.mxu0  ;;  %5362 = vtanh.f32 %v3551_v63 }
 0x834   :  { %v3570_v41 = vadd.f32 1.0, %v5349_v54  ;;  %v3553_v43 = vadd.f32 %v4889_v45, %v3374_v46  ;;  %5364 = vrcp.f32 %v3571_v20 }
 0x835   :  { %v5351_v50 = vpop.eup %5350  ;;  %v3513_v23 = vpop.f32.mrf.mxu0  ;;  %5366 = vtanh.f32 %v3550_v21 }
 0x836   :  { %v3573_v7 = vadd.f32 1.0, %v5351_v50  ;;  %v3552_v60 = vadd.f32 %v3513_v23, %v3369_v52  ;;  %5368 = vrcp.f32 %v3570_v41 }
 0x837   :  { %v5353_v19 = vpop.eup %5352  ;;  %v4892_v56 = vpop.f32.mrf.mxu0  ;;  %5370 = vtanh.f32 %v3553_v43 }
 0x838   :  { %v3572_v38 = vadd.f32 1.0, %v5353_v19  ;;  %v3555_v48 = vadd.f32 %v4892_v56, %v3384_v10  ;;  %5372 = vrcp.f32 %v3573_v7 }
 0x839   :  { %v5355_v15 = vpop.eup %5354  ;;  %v3523_v31 = vpop.f32.mrf.mxu0  ;;  %5374 = vtanh.f32 %v3552_v60 }
 0x83a   :  { %v3595_v53 = vadd.f32 1.0, %v5355_v15  ;;  %v4066_v36 = vmul.f32 -1.442695, %v3555_v48  ;;  %v3554_v0 = vadd.f32 %v3523_v31, %v3379_v49  ;;  %5376 = vrcp.f32 %v3572_v38  ;;  %v7748_v48 = vld [vmem:[#allocation15_spill] sm:$0xff] }
 0x83b   :  { %v5357_v24 = vpop.eup %5356  ;;  %v4895_v22 = vpop.f32.mrf.mxu0 }
 0x83c   :  { %5378 = vrcp.f32 %v3595_v53  ;;  %v3594_v11 = vadd.f32 1.0, %v5357_v24  ;;  %v4065_v17 = vmul.f32 -1.442695, %v3554_v0  ;;  %v3557_v51 = vadd.f32 %v4895_v22, %v3394_v47 }
 0x83d   :  { %v5359_v39 = vpop.eup %5358  ;;  %5380 = vpow2.f32 %v4066_v36  ;;  %v3533_v37 = vpop.f32.mrf.mxu0 }
 0x83e   :  { %5382 = vrcp.f32 %v3594_v11  ;;  %v3597_v29 = vadd.f32 1.0, %v5359_v39  ;;  %v4068_v55 = vmul.f32 -1.442695, %v3557_v51  ;;  %v3556_v33 = vadd.f32 %v3533_v37, %v3389_v59 }
 0x83f   :  { %v5361_v40 = vpop.eup %5360  ;;  %5384 = vpow2.f32 %v4065_v17 }
 0x840   :  { %5386 = vrcp.f32 %v3597_v29  ;;  %v3596_v6 = vadd.f32 1.0, %v5361_v40  ;;  %v4067_v4 = vmul.f32 -1.442695, %v3556_v33  ;;  %v5363_v5 = vpop.eup %5362 }
 0x841   :  { %5388 = vpow2.f32 %v4068_v55  ;;  %v5365_v12 = vpop.eup %5364 }
 0x842   :  { %5390 = vrcp.f32 %v3596_v6  ;;  %v5367_v14 = vpop.eup %5366  ;;  %v3639_v54 = vmul.f32 %v5365_v12, %v5363_v5 }
 0x843   :  { %5392 = vpow2.f32 %v4067_v4  ;;  %v5369_v63 = vpop.eup %5368 }
 0x844   :  { %v5371_v46 = vpop.eup %5370  ;;  %v3638_v23 = vmul.f32 %v5369_v63, %v5367_v14 }
 0x845   :  { %v5373_v2 = vpop.eup %5372 }
 0x846   :  { %v5375_v62 = vpop.eup %5374  ;;  %v3641_v30 = vmul.f32 %v5373_v2, %v5371_v46 }
 0x847   :  { %v5377_v20 = vpop.eup %5376 }
 0x849   :  { %v5379_v21 = vpop.eup %5378 }
 0x84a   :  { %v5381_v52 = vpop.eup %5380  ;;  %v3635_v3 = vmul.f32 %v5379_v21, %v3232_v44 }
 0x84b   :  { %v5383_v45 = vpop.eup %5382  ;;  %v3623_v41 = vadd.f32 1.0, %v5381_v52 }
 0x84c   :  { %v5385_v43 = vpop.eup %5384  ;;  %v3643_v10 = vadd.f32 %v3639_v54, %v3635_v3  ;;  %v3634_v50 = vmul.f32 %v5383_v45, %v3231_v25  ;;  %v3640_v25 = vmul.f32 %v5377_v20, %v5375_v62 }
 0x84d   :  { %v5387_v7 = vpop.eup %5386  ;;  %5394 = vrcp.f32 %v3623_v41  ;;  %v3622_v60 = vadd.f32 1.0, %v5385_v43 }
 0x84e   :  { %v5389_v49 = vpop.eup %5388  ;;  %5396 = vtanh.f32 %v3643_v10  ;;  %v3642_v26 = vadd.f32 %v3638_v23, %v3634_v50  ;;  %v3637_v13 = vmul.f32 %v5387_v7, %v3234_v27  ;;  %v3655_v27 = vsel %vm3654_vm15, 1, %v7747_v28 }
 0x84f   :  { %v5391_v44 = vpop.eup %5390  ;;  %5398 = vrcp.f32 %v3622_v60  ;;  %v3625_v19 = vadd.f32 1.0, %v5389_v49  ;;  %v3659_v47 = vrot.slane %v3655_v27, %v7748_v48 }
 0x850   :  { %v5393_v56 = vpop.eup %5392  ;;  %5400 = vtanh.f32 %v3642_v26  ;;  %v3645_v16 = vadd.f32 %v3641_v30, %v3637_v13  ;;  %v3636_v61 = vmul.f32 %v5391_v44, %v3233_v34 }
 0x851   :  { %5402 = vrcp.f32 %v3625_v19  ;;  %v3624_v38 = vadd.f32 1.0, %v5393_v56  ;;  %vm7474_vm0 = vcmp.eq.s32.totalorder %v3659_v47, 1 }
 0x852   :  { %5404 = vtanh.f32 %v3645_v16  ;;  %v3644_v57 = vadd.f32 %v3640_v25, %v3636_v61 }
 0x853   :  { %5406 = vrcp.f32 %v3624_v38 }
 0x854   :  { %5408 = vtanh.f32 %v3644_v57 }
 0x85a   :  { %v5395_v15 = vpop.eup %5394 }
 0x85b   :  { %v5397_v31 = vpop.eup %5396 }
 0x85c   :  { %v5399_v35 = vpop.eup %5398  ;;  %v3651_v1 = vmul.f32 %v5397_v31, %v5395_v15 }
 0x85d   :  { %v5401_v34 = vpop.eup %5400 }
 0x85e   :  { %v5403_v42 = vpop.eup %5402  ;;  %v3662_v59 = vsel %vm7474_vm0, %v3651_v1, %v7394_v9  ;;  %v3650_v53 = vmul.f32 %v5401_v34, %v5399_v35 }
 0x85f   :  { %v5405_v36 = vpop.eup %5404  ;;  %3682 = vst [vmem:[%s7507_s5 + $0x8] sm:$0xff] %v3662_v59 }
 0x860   :  { %v5407_v0 = vpop.eup %5406  ;;  %v3661_v24 = vsel %vm7474_vm0, %v3650_v53, %v7401_v32  ;;  %v3653_v22 = vmul.f32 %v5405_v36, %v5403_v42 }
 0x861   :  { %v5409_v11 = vpop.eup %5408  ;;  %3681 = vst [vmem:[%s7507_s5] sm:$0xff] %v3661_v24 }
 0x862   :  { %v3664_v9 = vsel %vm7474_vm0, %v3653_v22, %v7380_v8  ;;  %v3652_v17 = vmul.f32 %v5409_v11, %v5407_v0 }
 0x863   :  { %3684 = vst [vmem:[%s7507_s5 + $0x18] sm:$0xff] %v3664_v9 }
 0x864   :  { %v3663_v51 = vsel %vm7474_vm0, %v3652_v17, %v7387_v18 }
 0x865   :  { %3683 = vst [vmem:[%s7507_s5 + $0x10] sm:$0xff] %v3663_v51 }

</bundles_post_ra>
